<compile_context>
chip_gen: v7x
topology: tpu7x:2x2x1
jax: 0.10.0
libtpu: 0.0.40
codegen_flags: <defaults>
</compile_context>

<pallas_src>
import jax
import jax.numpy as jnp
from jax.experimental import pallas as pl
from jax.experimental.pallas import tpu as pltpu


# ----------------------------------------------------------------------------
# Model constants
# ----------------------------------------------------------------------------
FEAT_C, FEAT_H, FEAT_W = 1024, 16, 16        # backbone output feature map
IN_FEATURES = FEAT_C * FEAT_H * FEAT_W       # 262144
OUT_FEATURES = 107
N_PAD = 128                                  # lane-dense padded output width


# ----------------------------------------------------------------------------
# Pallas kernel: K-tiled, core-split matmul with f32 accumulation directly in
# the (resident) output block.
#   partial[c, M, N] = sum_{k in split c} X[M, k-tile] @ W[k-tile, N]
# Grid = (split, K // (split * tk)); axis 0 is "parallel" (megacore), axis 1 is
# the "arbitrary" reduction axis.  Bias + partial-sum happen outside in XLA.
# ----------------------------------------------------------------------------
def _head_matmul_kernel(x_ref, w_ref, o_ref):
    k = pl.program_id(1)

    @pl.when(k == 0)
    def _():
        o_ref[...] = jnp.zeros_like(o_ref)

    o_ref[...] += jnp.dot(
        x_ref[...], w_ref[...], preferred_element_type=jnp.float32
    )


def head_matmul(x, w, *, tk=16384, split=2):
    """x: (M, K) bf16, w: (K, N) bf16 -> (M, N) f32 (summed over core splits)."""
    M, K = x.shape
    K2, N = w.shape
    assert K == K2, (K, K2)
    assert K % (split * tk) == 0, (K, split, tk)
    kc = K // (split * tk)  # K-steps per core split

    partials = pl.pallas_call(
        _head_matmul_kernel,
        out_shape=jax.ShapeDtypeStruct((split, M, N), jnp.float32),
        grid_spec=pltpu.PrefetchScalarGridSpec(
            num_scalar_prefetch=0,
            grid=(split, kc),
            in_specs=[
                pl.BlockSpec((M, tk), lambda c, k: (0, c * kc + k)),
                pl.BlockSpec((tk, N), lambda c, k: (c * kc + k, 0)),
            ],
            out_specs=pl.BlockSpec((None, M, N), lambda c, k: (c, 0, 0)),
        ),
        compiler_params=pltpu.CompilerParams(
            dimension_semantics=("parallel", "arbitrary"),
            vmem_limit_bytes=32 * 1024 * 1024,
        ),
        cost_estimate=pl.CostEstimate(
            flops=2 * M * K * N,
            transcendentals=0,
            bytes_accessed=(
                M * K * x.dtype.itemsize
                + K * N * w.dtype.itemsize
                + split * M * N * 4
            ),
        ),
    )(x, w)
    return partials.sum(axis=0)


# ----------------------------------------------------------------------------
# Backbone stand-in (plain XLA): avg-pool to 16x16 + 1x1 conv to 1024 channels.
# Output is kept channels-last (B, 16, 16, 1024); the head weight rows are
# permuted at init to match the original NCHW flatten order.
# ----------------------------------------------------------------------------
def backbone_standin(x, conv_w, conv_b):
    B, C_in, H, W = x.shape
    ph, pw = H // FEAT_H, W // FEAT_W
    xp = x.reshape(B, C_in, FEAT_H, ph, FEAT_W, pw).mean(axis=(3, 5))  # (B,Cin,16,16)
    xl = jnp.transpose(xp, (0, 2, 3, 1))                               # (B,16,16,Cin)
    phi_nhwc = jnp.einsum("bhwc,cf->bhwf", xl, conv_w) + conv_b        # (B,16,16,1024)
    return phi_nhwc


def baseline_mimic_forward(x, params):
    """Full forward pass: backbone -> flatten -> linear head (Pallas)."""
    phi_nhwc = backbone_standin(x, params["conv_w"], params["conv_b"])
    B = phi_nhwc.shape[0]
    flat = phi_nhwc.reshape(B, IN_FEATURES).astype(jnp.bfloat16)       # (B, 262144)
    logits_pad = head_matmul(flat, params["lin_w_t"]) + params["lin_b"]
    return logits_pad[:, :OUT_FEATURES]                                # (B, 107)


def init_params(key, c_in):
    k1, k2, k3, k4 = jax.random.split(key, 4)
    # 1x1-conv stand-in: (C_in, 1024) + bias (1, 1024)
    conv_w = jax.random.normal(k1, (c_in, FEAT_C), jnp.float32) * 0.1
    conv_b = jax.random.normal(k2, (1, FEAT_C), jnp.float32) * 0.01

    # Linear(262144 -> 107), PyTorch-style uniform(-1/sqrt(in), 1/sqrt(in)),
    # with in-features ordered as the NCHW flatten (c*256 + h*16 + w).
    bound = 1.0 / (IN_FEATURES ** 0.5)
    lin_w = jax.random.uniform(
        k3, (OUT_FEATURES, IN_FEATURES), jnp.float32, -bound, bound
    )
    lin_b = jax.random.uniform(k4, (1, OUT_FEATURES), jnp.float32, -bound, bound)

    # Fold the runtime NHWC->NCHW transpose into a one-time weight permutation:
    # reorder in-features from (c, h, w) to (h, w, c) so the channels-last
    # activation can be flattened directly.
    lin_w_hwc = (
        lin_w.reshape(OUT_FEATURES, FEAT_C, FEAT_H, FEAT_W)
        .transpose(0, 2, 3, 1)
        .reshape(OUT_FEATURES, IN_FEATURES)
    )
    lin_w_t = jnp.transpose(lin_w_hwc)                                  # (K, 107)
    # Pad N 107 -> 128 (lane-dense stores); cast weight to bf16 (halves HBM).
    lin_w_t_pad = jnp.pad(lin_w_t, ((0, 0), (0, N_PAD - OUT_FEATURES)))
    lin_b_pad = jnp.pad(lin_b, ((0, 0), (0, N_PAD - OUT_FEATURES)))

    return {
        "conv_w": conv_w,
        "conv_b": conv_b,
        "lin_w_t": lin_w_t_pad.astype(jnp.bfloat16),   # (262144, 128) bf16
        "lin_b": lin_b_pad,                            # (1, 128) f32
    }


if __name__ == "__main__":
    key = jax.random.PRNGKey(0)
    kx, kp = jax.random.split(key)

    # Small NCHW input; the backbone stand-in pools it to 16x16 spatially.
    B, C_IN, H, W = 2, 3, 32, 32
    x = jax.random.normal(kx, (B, C_IN, H, W), jnp.float32)
    params = init_params(kp, C_IN)

    fwd = jax.jit(baseline_mimic_forward)
    logits = fwd(x, params)
    jax.block_until_ready(logits)
    assert logits.shape == (B, OUT_FEATURES), logits.shape

    # Reference check of the Pallas head matmul against plain XLA using the
    # identical bf16 inputs and f32 accumulation (differences are only from
    # reduction order).
    phi_ref = backbone_standin(x, params["conv_w"], params["conv_b"])
    flat_ref = phi_ref.reshape(B, IN_FEATURES).astype(jnp.bfloat16)
    ref_pad = (
        jnp.dot(flat_ref, params["lin_w_t"], preferred_element_type=jnp.float32)
        + params["lin_b"]
    )
    ref = ref_pad[:, :OUT_FEATURES]
    assert jnp.allclose(logits, ref, rtol=2e-2, atol=2e-3), (
        jnp.max(jnp.abs(logits - ref))
    )

    print("KERNEL_OK")
</pallas_src>

<mosaic_0001>
module attributes {stable_mosaic.version = 11 : i64} {
  func.func @_head_matmul_kernel(%arg0: i32, %arg1: i32, %arg2: memref<2x16384xbf16, #tpu.memory_space<vmem>>, %arg3: memref<16384x128xbf16, #tpu.memory_space<vmem>>, %arg4: memref<1x2x128xf32, #tpu.memory_space<vmem>>) attributes {dimension_semantics = [#tpu.dimension_semantics<parallel>, #tpu.dimension_semantics<arbitrary>], iteration_bounds = array<i64: 2, 8>, scalar_prefetch = 0 : i64, scratch_operands = 0 : i64, tpu.core_type = #tpu.core_type<tc>, window_params = [{transform_indices = @transform_0, window_bounds = array<i64: 2, 16384>}, {transform_indices = @transform_1, window_bounds = array<i64: 16384, 128>}, {transform_indices = @transform_2, window_bounds = array<i64: 1, 2, 128>}]} {
    %c0_i32 = arith.constant 0 : i32
    %0 = arith.cmpi eq, %arg1, %c0_i32 : i32
    %1 = arith.extui %0 : i1 to i32
    %c0_i32_0 = arith.constant 0 : i32
    %2 = arith.cmpi ne, %1, %c0_i32_0 : i32
    scf.if %2 {
      %cst_10 = arith.constant 0.000000e+00 : f32
      %12 = vector.broadcast %cst_10 : f32 to vector<2x128xf32>
      %c0_11 = arith.constant 0 : index
      %c0_12 = arith.constant 0 : index
      %c0_13 = arith.constant 0 : index
      %13 = vector.load %arg4[%c0_11, %c0_12, %c0_13] : memref<1x2x128xf32, #tpu.memory_space<vmem>>, vector<1x2x128xf32>
      %14 = vector.shape_cast %13 : vector<1x2x128xf32> to vector<2x128xf32>
      %15 = vector.shape_cast %12 : vector<2x128xf32> to vector<1x2x128xf32>
      tpu.vector_store %arg4[%c0_11, %c0_12, %c0_13], %15 {strides = array<i32>} : memref<1x2x128xf32, #tpu.memory_space<vmem>>, vector<1x2x128xf32>,
    } else {
    }
    %c0 = arith.constant 0 : index
    %c0_1 = arith.constant 0 : index
    %c0_2 = arith.constant 0 : index
    %3 = vector.load %arg4[%c0, %c0_1, %c0_2] : memref<1x2x128xf32, #tpu.memory_space<vmem>>, vector<1x2x128xf32>
    %4 = vector.shape_cast %3 : vector<1x2x128xf32> to vector<2x128xf32>
    %c0_3 = arith.constant 0 : index
    %c0_4 = arith.constant 0 : index
    %5 = vector.load %arg2[%c0_3, %c0_4] : memref<2x16384xbf16, #tpu.memory_space<vmem>>, vector<2x16384xbf16>
    %c0_5 = arith.constant 0 : index
    %c0_6 = arith.constant 0 : index
    %6 = vector.load %arg3[%c0_5, %c0_6] : memref<16384x128xbf16, #tpu.memory_space<vmem>>, vector<16384x128xbf16>
    %cst = arith.constant dense<0.000000e+00> : vector<2x128xf32>
    %7 = tpu.matmul %5, %6, %cst {dimension_numbers = #tpu.dot_dimension_numbers<[1], [0], [0], [1], [0, 0, 1, 1], [], []>} : vector<2x16384xbf16>, vector<16384x128xbf16>, vector<2x128xf32> -> vector<2x128xf32>
    %8 = arith.addf %4, %7 : vector<2x128xf32>
    %c0_7 = arith.constant 0 : index
    %c0_8 = arith.constant 0 : index
    %c0_9 = arith.constant 0 : index
    %9 = vector.load %arg4[%c0_7, %c0_8, %c0_9] : memref<1x2x128xf32, #tpu.memory_space<vmem>>, vector<1x2x128xf32>
    %10 = vector.shape_cast %9 : vector<1x2x128xf32> to vector<2x128xf32>
    %11 = vector.shape_cast %8 : vector<2x128xf32> to vector<1x2x128xf32>
    tpu.vector_store %arg4[%c0_7, %c0_8, %c0_9], %11 {strides = array<i32>} : memref<1x2x128xf32, #tpu.memory_space<vmem>>, vector<1x2x128xf32>,
    return
  }
  func.func @transform_0(%arg0: i32, %arg1: i32) -> (i32, i32) {
    %c8_i32 = arith.constant 8 : i32
    %0 = arith.muli %arg0, %c8_i32 : i32
    %1 = arith.addi %0, %arg1 : i32
    %c0_i32 = arith.constant 0 : i32
    %c0_i32_0 = arith.constant 0 : i32
    return %c0_i32, %1 : i32, i32
  }
  func.func @transform_1(%arg0: i32, %arg1: i32) -> (i32, i32) {
    %c8_i32 = arith.constant 8 : i32
    %0 = arith.muli %arg0, %c8_i32 : i32
    %1 = arith.addi %0, %arg1 : i32
    %c0_i32 = arith.constant 0 : i32
    %c0_i32_0 = arith.constant 0 : i32
    return %1, %c0_i32 : i32, i32
  }
  func.func @transform_2(%arg0: i32, %arg1: i32) -> (i32, i32, i32) {
    %c0_i32 = arith.constant 0 : i32
    %c0_i32_0 = arith.constant 0 : i32
    %c0_i32_1 = arith.constant 0 : i32
    return %arg0, %c0_i32, %c0_i32_0 : i32, i32, i32
  }
}

</mosaic_0001>

<bundles_post_ra>
// kernel: baseline_mimic_forward.1
= control target key start
LH: loop header
LB: loop body
LE: loop exit
PB: predicated region body
PF: predicated region fallthrough
CT: control target
= control target key end

     0   :  { %7 = vsyncpa [#allocation3], 0  ;;  %s17144_s0 = inlined_call_operand.vmem [shape: bf16[2,262144], index: 0, kind: input, shape index: {}]   ;;  %s17145_s1 = inlined_call_operand.hbm [shape: bf16[262144,128], index: 1, kind: input, shape index: {}]   ;;  %s17146_s2 = inlined_call_operand.vmem [shape: f32[2,2,128], index: 2, kind: output, shape index: {}]  }
   0x1   :  { %9 = vsyncpa [#allocation3 + $0x1], 0  ;;  %s15694_s9 = smov 0   ;;  %s15696_s10 = smov 0  }
   0x2   :  { %s15698_s11 = smov 0   ;;  %s15700_s12 = smov 0  }
   0x3   :  { %s15702_s13 = smov 0   ;;  %s15704_s14 = smov 0  }
   0x4   :  { %s15706_s15 = smov 0   ;;  %s15708_s16 = smov 0  }
   0x5 LB: > { %s12008_s17 = sadd.s32 4294967295, %s15672_s16   ;;  %s24_s18 = sadd.s32 1, %s15664_s14  ;;  %s15672_s16 = sphi %s15708_s16, %s15_s16   ;;  %s15668_s15 = sphi %s15706_s15, %s17156_s15   ;;  %s15664_s14 = sphi %s15704_s14, %s17155_s14   ;;  %s15660_s13 = sphi %s15702_s13, %s17154_s13   ;;  %s15656_s12 = sphi %s15700_s12, %s17153_s12   ;;  %s15652_s11 = sphi %s15698_s11, %s17152_s11   ;;  %s15648_s10 = sphi %s15696_s10, %s17151_s10   ;;  %s15644_s9 = sphi %s15694_s9, %s17150_s9  }
   0x6   : > { %p25_p0 = scmp.ge.s32.totalorder %s24_s18, 8  ;;  %s27_s19 = sadd.s32 1, %s15668_s15 }
   0x7   : > { %s12012_s20 = sshll.u32 %s15668_s15, 3  ;;  %s68_s21 = sadd.s32 1, %s15652_s11 }
   0x8   : > { %s17158_s18 = smov (%p25_p0, %s24_s18), 0  ;;  %s17160_s19 = smov (!%p25_p0, %s27_s19), %s15668_s15 }
   0x9   : > { %s62_s22 = sadd.s32 %s15664_s14, %s12012_s20  ;;  %p75_p1 = scmp.ne.s32.totalorder %s15652_s11, %s15648_s10 }
   0xa   : > { %p29_p2 = scmp.ge.s32.totalorder %s17160_s19, 2  ;;  %p76_p3 = scmp.eq.s32.totalorder %s15672_s16, 0 }
   0xb   : > { %p81_p4 = scmp.ne.s32.totalorder %s15648_s10, %s15644_s9  ;;  %p82_p5 = scmp.eq.s32.totalorder %s12008_s17, 0 }
   0xc   : > { %s17162_s19 = smov (%p29_p2, %s17160_s19), 0  ;;  %p15747_p6 = por %p76_p3, %p75_p1 }
   0xd   : > { %p15751_p7 = por %p82_p5, %p81_p4  ;;  %s12013_s25 = sshll.u32 %s17162_s19, 3 }
   0xe   : > { %s64_s26 = sadd.s32 %s12013_s25, %s17158_s18  ;;  %p14467_p8 = scmp.lt.s32.totalorder %s15672_s16, 16 }
   0xf   : > { %s65_s27 = ssub.s32 %s62_s22, %s64_s26  ;;  %s143_s28 = sand.u32 1, %s15652_s11  }
  0x10   : > { %p66_p9 = scmp.eq.s32.totalorder %s65_s27, 0  ;;  %s12016_s29 = sshll.u32 %s143_s28, 13 }
  0x11   : > { %s13052_s30 = sshll.u32 %s62_s22, 17  ;;  %s147_s7 = scalar_lea.vmem [#allocation2], %s12016_s29 }
  0x12   : > { %s15760_s3 = scalar_select %p66_p9, %s15652_s11, %s68_s21  }
  0x13   : > { %s15765_s6 = scalar_lea.hbm %s17145_s1, %s13052_s30  ;;  %s156_s8 = sshll.u32 %s147_s7, 4  ;;  %s15773_s8 = int_to_ptr.vmem [resolvable:$true] %s156_s8 }
  0x14   : > { %p15769_p10 = pnand %p14467_p8, %p15747_p6  ;;  %s15775_s17 = scalar_lea.sflag [#allocation3], %s143_s28 }
  0x15   : > { %s15576_s20 = scalar_lea.hbm %s15765_s6, 131072  ;;  %s15581_s23 = scalar_lea.hbm %s17145_s1, 2097152 }
  0x16   : > { %p15577_p11 = scmp.ne.s32.totalorder %s15765_s6, %s15576_s20  ;;  %p15578_p12 = pneg %p15769_p10 }
  0x17   : > { %p15582_p1 = scmp.lt.u32.totalorder %s15765_s6, %s17145_s1  ;;  %p15583_p2 = scmp.lt.u32.totalorder %s15581_s23, %s15576_s20 }
  0x18   : > { %p15579_p13 = pnand %p15578_p12, %p15577_p11  ;;  %p15585_p4 = scmp.lt.u32.totalorder %s15576_s20, %s15765_s6 }
  0x19   : > { %p15584_p3 = por %p15583_p2, %p15582_p1 }
  0x1a   : > { %p15580_p0 = pneg %p15579_p13 }
  0x1b   : > { %p15586_p5 = por %p15585_p4, %p15584_p3 }
  0x1d   : > { %p15587_p6 = pnand %p15586_p5, %p15580_p0 }
  0x1f   : > { %15590 = shalt.err (!%p15587_p6)
}
  0x20   : > { %s15591_s27 = scalar_lea.vmem %s15773_s8, 131072  ;;  %s15674_s28 = smov [#allocation2]  }
  0x21   : > { %p15592_p8 = scmp.ne.s32.totalorder %s15773_s8, %s15591_s27  ;;  %s15596_s29 = sshll.u32 %s15674_s28, 4  ;;  %s15597_s29 = int_to_ptr.vmem [resolvable:$false] %s15596_s29 }
  0x22   : > { %s15598_s30 = scalar_lea.vmem %s15597_s29, 262144  ;;  %p15599_p13 = scmp.lt.s32.totalorder %s15773_s8, %s15597_s29 }
  0x23   : > { %p15594_p9 = pnand %p15592_p8, %p15578_p12  ;;  %p15600_p1 = scmp.lt.s32.totalorder %s15598_s30, %s15591_s27 }
  0x25   : > { %p15595_p11 = pneg %p15594_p9  ;;  %p15601_p2 = por %p15600_p1, %p15599_p13 }
  0x27   : > { %p15602_p3 = pnand %p15601_p2, %p15595_p11 }
  0x29   : > { %15605 = shalt.err (!%p15602_p3)
}
  0x2a   : > { %s15675_s4 = smov 64   ;;  %s15676_s5 = smov 4  }
  0x2b   : > { %14466 = dma.hbm_to_vmem [thread:$0]  (!%p15769_p10), %s15765_s6, 131072, %s15773_s8, %s15775_s17, %s15675_s4, %s15675_s4, %s15676_s5  }
  0x2c   : > { %p12020_p12 = scmp.ge.s32.totalorder %s15672_s16, 1  ;;  %p164_p0 = scmp.lt.s32.totalorder %s15672_s16, 17 }
  0x2e   : > { %p165_p4 = pnand %p12020_p12, %p164_p0 }
  0x2f   : > { %s170_s7 = sand.u32 (!%p165_p4), 1, %s15648_s10  }
  0x30   : > { %168 = sbr.rel (%p165_p4) target bundleno = 1315 (0x523), region = 28  ;;  %s12021_s20 = sshll.u32 (!%p165_p4), %s170_s7, 13 }
  0x31   : > { %s171_s21 = scalar_lea.sflag (!%p165_p4), [#allocation3], %s170_s7  ;;  %s15806_s22 = scalar_lea.vmem (!%p165_p4), [#allocation2], %s12021_s20 }
  0x37   : > { %15639 = dma.done.wait (%p15751_p7), %s171_s21, 131072  }
  0x38   : > { %15641 = vsyncadd (%p15751_p7), %s171_s21, 4294836224  ;;  %s12022_s6 = sshll.u32 %s15660_s13, 3  ;;  %p212_p10 = scmp.lt.s32.totalorder %s15660_s13, 1 }
  0x39   : > { %s201_s8 = sadd.s32 %s15656_s12, %s12022_s6  ;;  %p12025_p7 = scmp.ne.s32.totalorder %s15656_s12, 0 }
  0x3a   : > { %s12023_s9 = sshll.u32 %s201_s8, 7  ;;  %s17164_s13 = smov (!%p212_p10, %s15660_s13), 1  ;;  %v15677_v0 = vmov (!%p12025_p7), 0.0  }
  0x3b   : > { %p203_p5 = scmp.lt.s32.totalorder %s12023_s9, 2047  ;;  %s12024_s17 = sshll.u32 %s17164_s13, 1 }
  0x3c   : > { %s15824_s28 = scalar_lea.vmem %s17146_s2, %s12024_s17  ;;  %220 = sbr.rel (%p12025_p7) target bundleno = 67 (0x43), region = 36 }
  0x3d   : > { %s17166_s9 = smov (!%p203_p5, %s12023_s9), 2047  ;;  %221 = vst [vmem:[%s15824_s28] sm:$0x3] (!%p12025_p7), %v15677_v0 }
  0x3e   : > { %s15819_s26 = scalar_lea.vmem %s17144_s0, %s17166_s9 }
  0x43 PF: > { %v14536_v1 = vld [vmem:[%s15806_s22 + $0x40] sm:$0xff]   ;;  %v14540_v5 = vld [vmem:[%s15806_s22 + $0x48] sm:$0xff]   ;;  %v14544_v9 = vld [vmem:[%s15806_s22 + $0x50] sm:$0xff]   ;;  %v2307_v29 = vlaneseq  ;;  %v15678_v37 = vmov 1966171168  }
  0x44   : > { %v14537_v2 = vld [vmem:[%s15806_s22 + $0xc0] sm:$0xff]   ;;  %13053 = vmatprep.subr.bf16.mxu0 %v14536_v1  ;;  %v14541_v6 = vld [vmem:[%s15806_s22 + $0xc8] sm:$0xff]   ;;  %v14545_v10 = vld [vmem:[%s15806_s22 + $0xd0] sm:$0xff]   ;;  %v2305_v38 = vunpack.c.l.s4 %v15678_v37 }
  0x45   : > { %v14538_v3 = vld [vmem:[%s15806_s22] sm:$0xff]   ;;  %13075 = vmatprep.subr.bf16.mxu1 %v14537_v2  ;;  %v14542_v7 = vld [vmem:[%s15806_s22 + $0x8] sm:$0xff]   ;;  %v14546_v11 = vld [vmem:[%s15806_s22 + $0x10] sm:$0xff]   ;;  %v2308_v34 = vshrl.u32 %v2307_v29, 7 }
  0x46   : > { %v14539_v4 = vld [vmem:[%s15806_s22 + $0x80] sm:$0xff]   ;;  %13054 = vmatpush3.bf16.msra.mxu0 %v14538_v3  ;;  %v14543_v8 = vld [vmem:[%s15806_s22 + $0x88] sm:$0xff]   ;;  %v14547_v12 = vld [vmem:[%s15806_s22 + $0x90] sm:$0xff]   ;;  %v2306_v41 = vunpack.c.0.s8 %v2305_v38 }
  0x47   : > { %13076 = vmatpush3.bf16.msra.mxu1 %v14539_v4  ;;  %13055 = vmatprep.subr.bf16.mxu0 %v14540_v5  ;;  %v14548_v13 = vld [vmem:[%s15806_s22 + $0x58] sm:$0xff]   ;;  %v14552_v17 = vld [vmem:[%s15806_s22 + $0x60] sm:$0xff]   ;;  %v14556_v21 = vld [vmem:[%s15806_s22 + $0x68] sm:$0xff]  }
  0x48   : > { %13077 = vmatprep.subr.bf16.mxu1 %v14541_v6  ;;  %v14549_v14 = vld [vmem:[%s15806_s22 + $0xd8] sm:$0xff]   ;;  %v14553_v18 = vld [vmem:[%s15806_s22 + $0xe0] sm:$0xff]   ;;  %v14557_v22 = vld [vmem:[%s15806_s22 + $0xe8] sm:$0xff]   ;;  %v15863_v42 = vsub.s32 %v2306_v41, %v2308_v34 }
  0x49   : > { %v14550_v15 = vld [vmem:[%s15806_s22 + $0x18] sm:$0xff]   ;;  %v14554_v19 = vld [vmem:[%s15806_s22 + $0x20] sm:$0xff]   ;;  %v14558_v23 = vld [vmem:[%s15806_s22 + $0x28] sm:$0xff]  }
  0x4a   : > { %13056 = vmatpush3.bf16.msra.mxu0 %v14542_v7  ;;  %v14551_v16 = vld [vmem:[%s15806_s22 + $0x98] sm:$0xff]   ;;  %v14555_v20 = vld [vmem:[%s15806_s22 + $0xa0] sm:$0xff]   ;;  %v14559_v24 = vld [vmem:[%s15806_s22 + $0xa8] sm:$0xff]  }
  0x4b   : > { %13078 = vmatpush3.bf16.msra.mxu1 %v14543_v8  ;;  %13057 = vmatprep.subr.bf16.mxu0 %v14544_v9  ;;  %v14560_v25 = vld [vmem:[%s15806_s22 + $0x70] sm:$0xff]   ;;  %v14564_v30 = vld [vmem:[%s15806_s22 + $0x78] sm:$0xff]   ;;  %v223_v35 = vld [vmem:[%s15819_s26] sm:$0xff] }
  0x4c   : > { %13079 = vmatprep.subr.bf16.mxu1 %v14545_v10  ;;  %v14561_v26 = vld [vmem:[%s15806_s22 + $0xf0] sm:$0xff]   ;;  %v14565_v31 = vld [vmem:[%s15806_s22 + $0xf8] sm:$0xff]   ;;  %v14569_v36 = vld [vmem:[%s15806_s22 + $0x140] sm:$0xff]   ;;  %v2303_v40 = vcombine.high %v223_v35, %v223_v35  ;;  %v2310_v43 = vrot.slane %v223_v35, %v15863_v42 }
  0x4d   : > { %v14562_v27 = vld [vmem:[%s15806_s22 + $0x30] sm:$0xff]   ;;  %v14566_v32 = vld [vmem:[%s15806_s22 + $0x38] sm:$0xff]   ;;  %v14570_v39 = vld [vmem:[%s15806_s22 + $0x1c0] sm:$0xff]  }
  0x4e   : > { %13058 = vmatpush3.bf16.msra.mxu0 %v14546_v11  ;;  %v14563_v28 = vld [vmem:[%s15806_s22 + $0xb0] sm:$0xff]   ;;  %v14567_v33 = vld [vmem:[%s15806_s22 + $0xb8] sm:$0xff]   ;;  %v15867_v44 = vrot.slane %v2303_v40, %v15863_v42  ;;  %v2318_v45 = vcombine.high %v2310_v43, %v2310_v43  ;;  %v2326_v46 = vrot.slane %v2310_v43, %v15863_v42  ;;  %v14571_v48 = vld [vmem:[%s15806_s22 + $0x100] sm:$0xff]  }
  0x4f   : > { %13080 = vmatpush3.bf16.msra.mxu1 %v14547_v12  ;;  %13059 = vmatprep.subr.bf16.mxu0 %v14548_v13  ;;  %v14572_v50 = vld [vmem:[%s15806_s22 + $0x180] sm:$0xff]   ;;  %v14573_v53 = vld [vmem:[%s15806_s22 + $0x148] sm:$0xff]   ;;  %v14577_v59 = vld [vmem:[%s15806_s22 + $0x150] sm:$0xff]  }
  0x50   : > { %13081 = vmatprep.subr.bf16.mxu1 %v14549_v14  ;;  %v2319_v47 = vcombine.high %v15867_v44, %v15867_v44  ;;  %v2340_v49 = vrot.slane %v2318_v45, %v15863_v42  ;;  %v2348_v52 = vcombine.high %v2326_v46, %v2326_v46  ;;  %v14574_v55 = vld [vmem:[%s15806_s22 + $0x1c8] sm:$0xff]   ;;  %v14578_v60 = vld [vmem:[%s15806_s22 + $0x1d0] sm:$0xff]   ;;  %v14581_v63 = vld [vmem:[%s15806_s22 + $0x158] sm:$0xff]  }
  0x51   : > { %v14575_v56 = vld [vmem:[%s15806_s22 + $0x108] sm:$0xff]   ;;  %v14579_v61 = vld [vmem:[%s15806_s22 + $0x110] sm:$0xff]   ;;  %v14582_v0 = vld [vmem:[%s15806_s22 + $0x1d8] sm:$0xff]  }
  0x52   : > { %13060 = vmatpush3.bf16.msra.mxu0 %v14550_v15  ;;  %v2347_v51 = vrot.slane %v2319_v47, %v15863_v42  ;;  %9391 = vmatprep.mubr.bf16.mxu0 %v2340_v49  ;;  %v2350_v54 = vcombine.high %v2340_v49, %v2340_v49  ;;  %v14576_v58 = vld [vmem:[%s15806_s22 + $0x188] sm:$0xff]   ;;  %v14580_v62 = vld [vmem:[%s15806_s22 + $0x190] sm:$0xff]   ;;  %v14583_v1 = vld [vmem:[%s15806_s22 + $0x118] sm:$0xff]  }
  0x53   : > { %13082 = vmatpush3.bf16.msra.mxu1 %v14551_v16  ;;  %13061 = vmatprep.subr.bf16.mxu0 %v14552_v17  ;;  %v14584_v2 = vld [vmem:[%s15806_s22 + $0x198] sm:$0xff]   ;;  %v14585_v3 = vld [vmem:[%s15806_s22 + $0x160] sm:$0xff]   ;;  %v14589_v7 = vld [vmem:[%s15806_s22 + $0x168] sm:$0xff]  }
  0x54   : > { %13083 = vmatprep.subr.bf16.mxu1 %v14553_v18  ;;  %v2351_v57 = vcombine.high %v2347_v51, %v2347_v51  ;;  %9431 = vmatprep.mubr.bf16.mxu1 %v2350_v54  ;;  %v14586_v4 = vld [vmem:[%s15806_s22 + $0x1e0] sm:$0xff]   ;;  %v14590_v8 = vld [vmem:[%s15806_s22 + $0x1e8] sm:$0xff]   ;;  %v14593_v11 = vld [vmem:[%s15806_s22 + $0x170] sm:$0xff]  }
  0x55   : > { %v14587_v5 = vld [vmem:[%s15806_s22 + $0x120] sm:$0xff]   ;;  %v14591_v9 = vld [vmem:[%s15806_s22 + $0x128] sm:$0xff]   ;;  %v14594_v12 = vld [vmem:[%s15806_s22 + $0x1f0] sm:$0xff]  }
  0x56   : > { %13062 = vmatpush3.bf16.msra.mxu0 %v14554_v19  ;;  %v14588_v6 = vld [vmem:[%s15806_s22 + $0x1a0] sm:$0xff]   ;;  %v14592_v10 = vld [vmem:[%s15806_s22 + $0x1a8] sm:$0xff]   ;;  %v14595_v13 = vld [vmem:[%s15806_s22 + $0x130] sm:$0xff]   ;;  %v2333_v19 = vrot.slane %v15867_v44, %v15863_v42 }
  0x57   : > { %13084 = vmatpush3.bf16.msra.mxu1 %v14555_v20  ;;  %13063 = vmatprep.subr.bf16.mxu0 %v14556_v21  ;;  %v14596_v14 = vld [vmem:[%s15806_s22 + $0x1b0] sm:$0xff]   ;;  %v14597_v15 = vld [vmem:[%s15806_s22 + $0x178] sm:$0xff]   ;;  %v14601_v20 = vld [vmem:[%s15806_s22 + $0x240] sm:$0xff]  }
  0x58   : > { %13085 = vmatprep.subr.bf16.mxu1 %v14557_v22  ;;  %v14598_v16 = vld [vmem:[%s15806_s22 + $0x1f8] sm:$0xff]   ;;  %v14602_v21 = vld [vmem:[%s15806_s22 + $0x2c0] sm:$0xff]   ;;  %v14609_v29 = vld [vmem:[%s15806_s22 + $0x250] sm:$0xff]  }
  0x59   : > { %v14599_v17 = vld [vmem:[%s15806_s22 + $0x138] sm:$0xff]   ;;  %v14603_v22 = vld [vmem:[%s15806_s22 + $0x200] sm:$0xff]   ;;  %v14621_v41 = vld [vmem:[%s15806_s22 + $0x268] sm:$0xff]  }
  0x5a   : > { %13064 = vmatpush3.bf16.msra.mxu0 %v14558_v23  ;;  %v14600_v18 = vld [vmem:[%s15806_s22 + $0x1b8] sm:$0xff]   ;;  %v14604_v23 = vld [vmem:[%s15806_s22 + $0x280] sm:$0xff]   ;;  %v14622_v43 = vld [vmem:[%s15806_s22 + $0x2e8] sm:$0xff]  }
  0x5b   : > { %13086 = vmatpush3.bf16.msra.mxu1 %v14559_v24  ;;  %13065 = vmatprep.subr.bf16.mxu0 %v14560_v25  ;;  %v2349_v24 = vcombine.high %v2333_v19, %v2333_v19  ;;  %v14605_v25 = vld [vmem:[%s15806_s22 + $0x248] sm:$0xff]   ;;  %v14614_v34 = vld [vmem:[%s15806_s22 + $0x2d8] sm:$0xff]   ;;  %v14617_v37 = vld [vmem:[%s15806_s22 + $0x260] sm:$0xff]  }
  0x5c   : > { %13087 = vmatprep.subr.bf16.mxu1 %v14561_v26  ;;  %v14606_v26 = vld [vmem:[%s15806_s22 + $0x2c8] sm:$0xff]   ;;  %v14615_v35 = vld [vmem:[%s15806_s22 + $0x218] sm:$0xff]   ;;  %v14618_v38 = vld [vmem:[%s15806_s22 + $0x2e0] sm:$0xff]  }
  0x5d   : > { %v14620_v40 = vld [vmem:[%s15806_s22 + $0x2a0] sm:$0xff]   ;;  %v14623_v44 = vld [vmem:[%s15806_s22 + $0x228] sm:$0xff]  }
  0x5e   : > { %13066 = vmatpush3.bf16.msra.mxu0 %v14562_v27  ;;  %v14607_v27 = vld [vmem:[%s15806_s22 + $0x208] sm:$0xff]  }
  0x5f   : > { %13088 = vmatpush3.bf16.msra.mxu1 %v14563_v28  ;;  %13067 = vmatprep.subr.bf16.mxu0 %v14564_v30  ;;  %v14608_v28 = vld [vmem:[%s15806_s22 + $0x288] sm:$0xff]   ;;  %v14610_v30 = vld [vmem:[%s15806_s22 + $0x2d0] sm:$0xff]  }
  0x60   : > { %13089 = vmatprep.subr.bf16.mxu1 %v14565_v31  ;;  %v14611_v31 = vld [vmem:[%s15806_s22 + $0x210] sm:$0xff]   ;;  %v14624_v45 = vld [vmem:[%s15806_s22 + $0x2a8] sm:$0xff]  }
  0x61   : > { %v224_v47 = vld [vmem:[%s15819_s26 + $0x8] sm:$0xff] }
  0x62   : > { %13068 = vmatpush3.bf16.msra.mxu0 %v14566_v32  ;;  %v14612_v32 = vld [vmem:[%s15806_s22 + $0x290] sm:$0xff]   ;;  %v2359_v49 = vrot.slane %v224_v47, %v15863_v42 }
  0x63   : > { %13090 = vmatpush3.bf16.msra.mxu1 %v14567_v33  ;;  %13097 = vmatprep.subr.bf16.mxu0 %v14569_v36  ;;  %v14613_v33 = vld [vmem:[%s15806_s22 + $0x258] sm:$0xff]  }
  0x64   : > { %13119 = vmatprep.subr.bf16.mxu1 %v14570_v39  ;;  %v14616_v36 = vld [vmem:[%s15806_s22 + $0x298] sm:$0xff]   ;;  %v14619_v39 = vld [vmem:[%s15806_s22 + $0x220] sm:$0xff]  }
  0x65   : > { %9392 = vmatmul.mubr.bf16.vlgmr.msra.gmra.mrb[0].mxu0 %v2326_v46  ;;  %v14625_v46 = vld [vmem:[%s15806_s22 + $0x270] sm:$0xff]  }
  0x66   : > { %13098 = vmatpush3.bf16.msra.mxu0 %v14571_v48  ;;  %9432 = vmatmul.mubr.bf16.vlgmr.msra.gmra.mrb[0].mxu1 %v2348_v52  ;;  %v14626_v48 = vld [vmem:[%s15806_s22 + $0x2f0] sm:$0xff]  }
  0x67   : > { %13099 = vmatprep.subr.bf16.mxu0 %v14573_v53  ;;  %13120 = vmatpush3.bf16.msra.mxu1 %v14572_v50  ;;  %v2352_v50 = vcombine.high %v224_v47, %v224_v47  ;;  %v14628_v52 = vld [vmem:[%s15806_s22 + $0x2b0] sm:$0xff]   ;;  %v2367_v53 = vcombine.high %v2359_v49, %v2359_v49 }
  0x68   : > { %9471 = vmatprep.mubr.bf16.mxu0 %v2347_v51  ;;  %13121 = vmatprep.subr.bf16.mxu1 %v14574_v55  ;;  %v14627_v51 = vld [vmem:[%s15806_s22 + $0x230] sm:$0xff]   ;;  %v14629_v55 = vld [vmem:[%s15806_s22 + $0x278] sm:$0xff]  }
  0x69   : > { %9511 = vmatprep.mubr.bf16.mxu1 %v2351_v57  ;;  %v15937_v54 = vrot.slane %v2352_v50, %v15863_v42  ;;  %v2389_v57 = vrot.slane %v2367_v53, %v15863_v42  ;;  %v14676_v47 = vld [vmem:[%s15806_s22 + $0x410] sm:$0xff]   ;;  %v14679_v50 = vld [vmem:[%s15806_s22 + $0x4d8] sm:$0xff]   ;;  %v14682_v53 = vld [vmem:[%s15806_s22 + $0x460] sm:$0xff]  }
  0x6a   : > { %13100 = vmatpush3.bf16.msra.mxu0 %v14575_v56  ;;  %v14630_v56 = vld [vmem:[%s15806_s22 + $0x2f8] sm:$0xff]  }
  0x6b   : > { %13101 = vmatprep.subr.bf16.mxu0 %v14577_v59  ;;  %13122 = vmatpush3.bf16.msra.mxu1 %v14576_v58  ;;  %v2368_v58 = vcombine.high %v15937_v54, %v15937_v54  ;;  %v14631_v59 = vld [vmem:[%s15806_s22 + $0x238] sm:$0xff]  }
  0x6c   : > { %13123 = vmatprep.subr.bf16.mxu1 %v14578_v60  ;;  %v14632_v60 = vld [vmem:[%s15806_s22 + $0x2b8] sm:$0xff]  }
  0x6e   : > { %13102 = vmatpush3.bf16.msra.mxu0 %v14579_v61  ;;  %v2399_v61 = vcombine.high %v2389_v57, %v2389_v57 }
  0x6f   : > { %13103 = vmatprep.subr.bf16.mxu0 %v14581_v63  ;;  %13124 = vmatpush3.bf16.msra.mxu1 %v14580_v62  ;;  %v2375_v62 = vrot.slane %v2359_v49, %v15863_v42  ;;  %v14633_v63 = vld [vmem:[%s15806_s22 + $0x340] sm:$0xff]   ;;  %v14678_v49 = vld [vmem:[%s15806_s22 + $0x458] sm:$0xff]  }
  0x70   : > { %13125 = vmatprep.subr.bf16.mxu1 %v14582_v0  ;;  %v14634_v0 = vld [vmem:[%s15806_s22 + $0x3c0] sm:$0xff]  }
  0x72   : > { %13104 = vmatpush3.bf16.msra.mxu0 %v14583_v1  ;;  %v2396_v1 = vrot.slane %v2368_v58, %v15863_v42  ;;  %v14687_v58 = vld [vmem:[%s15806_s22 + $0x4e8] sm:$0xff]  }
  0x73   : > { %13105 = vmatprep.subr.bf16.mxu0 %v14585_v3  ;;  %13126 = vmatpush3.bf16.msra.mxu1 %v14584_v2  ;;  %v14635_v2 = vld [vmem:[%s15806_s22 + $0x300] sm:$0xff]  }
  0x74   : > { %13127 = vmatprep.subr.bf16.mxu1 %v14586_v4  ;;  %v14636_v3 = vld [vmem:[%s15806_s22 + $0x380] sm:$0xff]   ;;  %v2397_v4 = vcombine.high %v2375_v62, %v2375_v62 }
  0x76   : > { %13106 = vmatpush3.bf16.msra.mxu0 %v14587_v5  ;;  %v14637_v5 = vld [vmem:[%s15806_s22 + $0x348] sm:$0xff]  }
  0x77   : > { %13107 = vmatprep.subr.bf16.mxu0 %v14589_v7  ;;  %13128 = vmatpush3.bf16.msra.mxu1 %v14588_v6  ;;  %v14638_v6 = vld [vmem:[%s15806_s22 + $0x3c8] sm:$0xff]   ;;  %v2400_v7 = vcombine.high %v2396_v1, %v2396_v1 }
  0x78   : > { %13129 = vmatprep.subr.bf16.mxu1 %v14590_v8  ;;  %v14639_v8 = vld [vmem:[%s15806_s22 + $0x308] sm:$0xff]  }
  0x7a   : > { %13108 = vmatpush3.bf16.msra.mxu0 %v14591_v9  ;;  %v14640_v9 = vld [vmem:[%s15806_s22 + $0x388] sm:$0xff]  }
  0x7b   : > { %13109 = vmatprep.subr.bf16.mxu0 %v14593_v11  ;;  %13130 = vmatpush3.bf16.msra.mxu1 %v14592_v10  ;;  %v14641_v10 = vld [vmem:[%s15806_s22 + $0x350] sm:$0xff]  }
  0x7c   : > { %13131 = vmatprep.subr.bf16.mxu1 %v14594_v12  ;;  %v14642_v11 = vld [vmem:[%s15806_s22 + $0x3d0] sm:$0xff]  }
  0x7d   : > { %v14643_v12 = vld [vmem:[%s15806_s22 + $0x310] sm:$0xff]  }
  0x7e   : > { %13110 = vmatpush3.bf16.msra.mxu0 %v14595_v13  ;;  %v14644_v13 = vld [vmem:[%s15806_s22 + $0x390] sm:$0xff]  }
  0x7f   : > { %13111 = vmatprep.subr.bf16.mxu0 %v14597_v15  ;;  %13132 = vmatpush3.bf16.msra.mxu1 %v14596_v14  ;;  %v14645_v14 = vld [vmem:[%s15806_s22 + $0x358] sm:$0xff]  }
  0x80   : > { %13133 = vmatprep.subr.bf16.mxu1 %v14598_v16  ;;  %v14646_v15 = vld [vmem:[%s15806_s22 + $0x3d8] sm:$0xff]  }
  0x81   : > { %v14647_v16 = vld [vmem:[%s15806_s22 + $0x318] sm:$0xff]  }
  0x82   : > { %13112 = vmatpush3.bf16.msra.mxu0 %v14599_v17  ;;  %v14648_v17 = vld [vmem:[%s15806_s22 + $0x398] sm:$0xff]  }
  0x83   : > { %13141 = vmatprep.subr.bf16.mxu0 %v14601_v20  ;;  %13134 = vmatpush3.bf16.msra.mxu1 %v14600_v18  ;;  %v14649_v18 = vld [vmem:[%s15806_s22 + $0x360] sm:$0xff]  }
  0x84   : > { %13163 = vmatprep.subr.bf16.mxu1 %v14602_v21  ;;  %v14651_v20 = vld [vmem:[%s15806_s22 + $0x320] sm:$0xff]  }
  0x85   : > { %9472 = vmatmul.mubr.bf16.vlgmr.msra.gmra.mrb[4].mxu0 %v2333_v19  ;;  %v14650_v19 = vld [vmem:[%s15806_s22 + $0x3e0] sm:$0xff]  }
  0x86   : > { %13142 = vmatpush3.bf16.msra.mxu0 %v14603_v22  ;;  %9512 = vmatmul.mubr.bf16.vlgmr.msra.gmra.mrb[4].mxu1 %v2349_v24  ;;  %v14652_v21 = vld [vmem:[%s15806_s22 + $0x3a0] sm:$0xff]   ;;  %v14653_v22 = vld [vmem:[%s15806_s22 + $0x368] sm:$0xff]  }
  0x87   : > { %13143 = vmatprep.subr.bf16.mxu0 %v14605_v25  ;;  %13164 = vmatpush3.bf16.msra.mxu1 %v14604_v23  ;;  %v14654_v23 = vld [vmem:[%s15806_s22 + $0x3e8] sm:$0xff]  }
  0x88   : > { %13165 = vmatprep.subr.bf16.mxu1 %v14606_v26  ;;  %9551 = vmatprep.mubr.bf16.mxu0 %v2389_v57  ;;  %v14655_v24 = vld [vmem:[%s15806_s22 + $0x328] sm:$0xff]   ;;  %v14657_v26 = vld [vmem:[%s15806_s22 + $0x370] sm:$0xff]  }
  0x89   : > { %9591 = vmatprep.mubr.bf16.mxu1 %v2399_v61  ;;  %v14656_v25 = vld [vmem:[%s15806_s22 + $0x3a8] sm:$0xff]   ;;  %v14690_v61 = vld [vmem:[%s15806_s22 + $0x470] sm:$0xff]  }
  0x8a   : > { %13144 = vmatpush3.bf16.msra.mxu0 %v14607_v27  ;;  %v14658_v27 = vld [vmem:[%s15806_s22 + $0x3f0] sm:$0xff]   ;;  %v14686_v57 = vld [vmem:[%s15806_s22 + $0x468] sm:$0xff]  }
  0x8b   : > { %13145 = vmatprep.subr.bf16.mxu0 %v14609_v29  ;;  %13166 = vmatpush3.bf16.msra.mxu1 %v14608_v28  ;;  %v14659_v28 = vld [vmem:[%s15806_s22 + $0x330] sm:$0xff]  }
  0x8c   : > { %13167 = vmatprep.subr.bf16.mxu1 %v14610_v30  ;;  %v14660_v29 = vld [vmem:[%s15806_s22 + $0x3b0] sm:$0xff]   ;;  %v14661_v30 = vld [vmem:[%s15806_s22 + $0x378] sm:$0xff]  }
  0x8e   : > { %13146 = vmatpush3.bf16.msra.mxu0 %v14611_v31  ;;  %v14662_v31 = vld [vmem:[%s15806_s22 + $0x3f8] sm:$0xff]  }
  0x8f   : > { %13147 = vmatprep.subr.bf16.mxu0 %v14613_v33  ;;  %13168 = vmatpush3.bf16.msra.mxu1 %v14612_v32  ;;  %v14663_v32 = vld [vmem:[%s15806_s22 + $0x338] sm:$0xff]  }
  0x90   : > { %13169 = vmatprep.subr.bf16.mxu1 %v14614_v34  ;;  %v14664_v33 = vld [vmem:[%s15806_s22 + $0x3b8] sm:$0xff]   ;;  %v2382_v34 = vrot.slane %v15937_v54, %v15863_v42  ;;  %v14683_v54 = vld [vmem:[%s15806_s22 + $0x4e0] sm:$0xff]  }
  0x92   : > { %13148 = vmatpush3.bf16.msra.mxu0 %v14615_v35  ;;  %v14666_v35 = vld [vmem:[%s15806_s22 + $0x440] sm:$0xff]  }
  0x93   : > { %13149 = vmatprep.subr.bf16.mxu0 %v14617_v37  ;;  %13170 = vmatpush3.bf16.msra.mxu1 %v14616_v36  ;;  %v14667_v36 = vld [vmem:[%s15806_s22 + $0x4c0] sm:$0xff]  }
  0x94   : > { %13171 = vmatprep.subr.bf16.mxu1 %v14618_v38  ;;  %v14668_v37 = vld [vmem:[%s15806_s22 + $0x400] sm:$0xff]  }
  0x95   : > { %v14669_v38 = vld [vmem:[%s15806_s22 + $0x480] sm:$0xff]  }
  0x96   : > { %13150 = vmatpush3.bf16.msra.mxu0 %v14619_v39  ;;  %v2398_v39 = vcombine.high %v2382_v34, %v2382_v34 }
  0x97   : > { %13151 = vmatprep.subr.bf16.mxu0 %v14621_v41  ;;  %13172 = vmatpush3.bf16.msra.mxu1 %v14620_v40  ;;  %v14670_v40 = vld [vmem:[%s15806_s22 + $0x448] sm:$0xff]  }
  0x98   : > { %13173 = vmatprep.subr.bf16.mxu1 %v14622_v43  ;;  %v14671_v41 = vld [vmem:[%s15806_s22 + $0x4c8] sm:$0xff]  }
  0x99   : > { %v14672_v43 = vld [vmem:[%s15806_s22 + $0x408] sm:$0xff]  }
  0x9a   : > { %13152 = vmatpush3.bf16.msra.mxu0 %v14623_v44  ;;  %v14673_v44 = vld [vmem:[%s15806_s22 + $0x488] sm:$0xff]  }
  0x9b   : > { %13153 = vmatprep.subr.bf16.mxu0 %v14625_v46  ;;  %13174 = vmatpush3.bf16.msra.mxu1 %v14624_v45  ;;  %v14674_v45 = vld [vmem:[%s15806_s22 + $0x450] sm:$0xff]  }
  0x9c   : > { %13175 = vmatprep.subr.bf16.mxu1 %v14626_v48  ;;  %v14675_v46 = vld [vmem:[%s15806_s22 + $0x4d0] sm:$0xff]  }
  0x9d   : > { %v14677_v48 = vld [vmem:[%s15806_s22 + $0x490] sm:$0xff]  }
  0x9e   : > { %13154 = vmatpush3.bf16.msra.mxu0 %v14627_v51  ;;  %v14680_v51 = vld [vmem:[%s15806_s22 + $0x418] sm:$0xff]  }
  0x9f   : > { %13155 = vmatprep.subr.bf16.mxu0 %v14629_v55  ;;  %13176 = vmatpush3.bf16.msra.mxu1 %v14628_v52  ;;  %v14681_v52 = vld [vmem:[%s15806_s22 + $0x498] sm:$0xff]   ;;  %v14684_v55 = vld [vmem:[%s15806_s22 + $0x420] sm:$0xff]  }
  0xa0   : > { %13177 = vmatprep.subr.bf16.mxu1 %v14630_v56  ;;  %v14685_v56 = vld [vmem:[%s15806_s22 + $0x4a0] sm:$0xff]  }
  0xa2   : > { %13156 = vmatpush3.bf16.msra.mxu0 %v14631_v59  ;;  %v14688_v59 = vld [vmem:[%s15806_s22 + $0x428] sm:$0xff]  }
  0xa3   : > { %13185 = vmatprep.subr.bf16.mxu0 %v14633_v63  ;;  %13178 = vmatpush3.bf16.msra.mxu1 %v14632_v60  ;;  %v14689_v60 = vld [vmem:[%s15806_s22 + $0x4a8] sm:$0xff]   ;;  %v14691_v63 = vld [vmem:[%s15806_s22 + $0x4f0] sm:$0xff]  }
  0xa4   : > { %13207 = vmatprep.subr.bf16.mxu1 %v14634_v0 }
  0xa5   : > { %9552 = vmatmul.mubr.bf16.vlgmr.msra.gmra.mrb[8].mxu0 %v2375_v62  ;;  %v225_v62 = vld [vmem:[%s15819_s26 + $0x10] sm:$0xff] }
  0xa6   : > { %13186 = vmatpush3.bf16.msra.mxu0 %v14635_v2  ;;  %9631 = vmatprep.mubr.bf16.mxu0 %v2396_v1  ;;  %v2408_v0 = vrot.slane %v225_v62, %v15863_v42  ;;  %v2401_v1 = vcombine.high %v225_v62, %v225_v62  ;;  %v14692_v2 = vld [vmem:[%s15806_s22 + $0x430] sm:$0xff]  }
  0xa7   : > { %9592 = vmatmul.mubr.bf16.vlgmr.msra.gmra.mrb[8].mxu1 %v2397_v4  ;;  %13187 = vmatprep.subr.bf16.mxu0 %v14637_v5  ;;  %v14741_v62 = vld [vmem:[%s15806_s22 + $0x610] sm:$0xff]  }
  0xa8   : > { %13208 = vmatpush3.bf16.msra.mxu1 %v14636_v3  ;;  %9671 = vmatprep.mubr.bf16.mxu1 %v2400_v7  ;;  %v14693_v3 = vld [vmem:[%s15806_s22 + $0x4b0] sm:$0xff]   ;;  %v2416_v4 = vcombine.high %v2408_v0, %v2408_v0  ;;  %v16013_v5 = vrot.slane %v2401_v1, %v15863_v42  ;;  %v14695_v7 = vld [vmem:[%s15806_s22 + $0x4f8] sm:$0xff]  }
  0xa9   : > { %13209 = vmatprep.subr.bf16.mxu1 %v14638_v6  ;;  %v14694_v6 = vld [vmem:[%s15806_s22 + $0x478] sm:$0xff]  }
  0xaa   : > { %13188 = vmatpush3.bf16.msra.mxu0 %v14639_v8  ;;  %v2438_v8 = vrot.slane %v2416_v4, %v15863_v42  ;;  %v14744_v1 = vld [vmem:[%s15806_s22 + $0x6d8] sm:$0xff]   ;;  %v14747_v4 = vld [vmem:[%s15806_s22 + $0x660] sm:$0xff]  }
  0xab   : > { %13189 = vmatprep.subr.bf16.mxu0 %v14641_v10  ;;  %v14696_v10 = vld [vmem:[%s15806_s22 + $0x438] sm:$0xff]  }
  0xac   : > { %13210 = vmatpush3.bf16.msra.mxu1 %v14640_v9  ;;  %v2417_v9 = vcombine.high %v16013_v5, %v16013_v5 }
  0xad   : > { %13211 = vmatprep.subr.bf16.mxu1 %v14642_v11  ;;  %v14697_v11 = vld [vmem:[%s15806_s22 + $0x4b8] sm:$0xff]  }
  0xae   : > { %13190 = vmatpush3.bf16.msra.mxu0 %v14643_v12  ;;  %v2448_v12 = vcombine.high %v2438_v8, %v2438_v8 }
  0xaf   : > { %13191 = vmatprep.subr.bf16.mxu0 %v14645_v14  ;;  %v14698_v14 = vld [vmem:[%s15806_s22 + $0x540] sm:$0xff]  }
  0xb0   : > { %13212 = vmatpush3.bf16.msra.mxu1 %v14644_v13  ;;  %v2424_v13 = vrot.slane %v2408_v0, %v15863_v42  ;;  %v14743_v0 = vld [vmem:[%s15806_s22 + $0x658] sm:$0xff]  }
  0xb1   : > { %13213 = vmatprep.subr.bf16.mxu1 %v14646_v15  ;;  %v14699_v15 = vld [vmem:[%s15806_s22 + $0x5c0] sm:$0xff]  }
  0xb2   : > { %13192 = vmatpush3.bf16.msra.mxu0 %v14647_v16  ;;  %v2445_v16 = vrot.slane %v2417_v9, %v15863_v42  ;;  %v14752_v9 = vld [vmem:[%s15806_s22 + $0x6e8] sm:$0xff]  }
  0xb3   : > { %13193 = vmatprep.subr.bf16.mxu0 %v14649_v18  ;;  %v14701_v18 = vld [vmem:[%s15806_s22 + $0x580] sm:$0xff]  }
  0xb4   : > { %13214 = vmatpush3.bf16.msra.mxu1 %v14648_v17  ;;  %v14700_v17 = vld [vmem:[%s15806_s22 + $0x500] sm:$0xff]  }
  0xb5   : > { %13215 = vmatprep.subr.bf16.mxu1 %v14650_v19  ;;  %v2446_v19 = vcombine.high %v2424_v13, %v2424_v13 }
  0xb6   : > { %13194 = vmatpush3.bf16.msra.mxu0 %v14651_v20  ;;  %v14702_v20 = vld [vmem:[%s15806_s22 + $0x548] sm:$0xff]  }
  0xb7   : > { %13195 = vmatprep.subr.bf16.mxu0 %v14653_v22  ;;  %v2449_v22 = vcombine.high %v2445_v16, %v2445_v16 }
  0xb8   : > { %13216 = vmatpush3.bf16.msra.mxu1 %v14652_v21  ;;  %v14703_v21 = vld [vmem:[%s15806_s22 + $0x5c8] sm:$0xff]  }
  0xb9   : > { %13217 = vmatprep.subr.bf16.mxu1 %v14654_v23  ;;  %v14704_v23 = vld [vmem:[%s15806_s22 + $0x508] sm:$0xff]  }
  0xba   : > { %13196 = vmatpush3.bf16.msra.mxu0 %v14655_v24  ;;  %v14705_v24 = vld [vmem:[%s15806_s22 + $0x588] sm:$0xff]  }
  0xbb   : > { %13197 = vmatprep.subr.bf16.mxu0 %v14657_v26  ;;  %v14707_v26 = vld [vmem:[%s15806_s22 + $0x5d0] sm:$0xff]  }
  0xbc   : > { %13218 = vmatpush3.bf16.msra.mxu1 %v14656_v25  ;;  %v14706_v25 = vld [vmem:[%s15806_s22 + $0x550] sm:$0xff]  }
  0xbd   : > { %13219 = vmatprep.subr.bf16.mxu1 %v14658_v27  ;;  %v14708_v27 = vld [vmem:[%s15806_s22 + $0x510] sm:$0xff]  }
  0xbe   : > { %13198 = vmatpush3.bf16.msra.mxu0 %v14659_v28  ;;  %v14709_v28 = vld [vmem:[%s15806_s22 + $0x590] sm:$0xff]  }
  0xbf   : > { %13199 = vmatprep.subr.bf16.mxu0 %v14661_v30  ;;  %v14711_v30 = vld [vmem:[%s15806_s22 + $0x5d8] sm:$0xff]  }
  0xc0   : > { %13220 = vmatpush3.bf16.msra.mxu1 %v14660_v29  ;;  %v14710_v29 = vld [vmem:[%s15806_s22 + $0x558] sm:$0xff]  }
  0xc1   : > { %13221 = vmatprep.subr.bf16.mxu1 %v14662_v31  ;;  %v14712_v31 = vld [vmem:[%s15806_s22 + $0x518] sm:$0xff]  }
  0xc2   : > { %13200 = vmatpush3.bf16.msra.mxu0 %v14663_v32  ;;  %v14713_v32 = vld [vmem:[%s15806_s22 + $0x598] sm:$0xff]  }
  0xc3   : > { %13229 = vmatprep.subr.bf16.mxu0 %v14666_v35  ;;  %v14716_v35 = vld [vmem:[%s15806_s22 + $0x520] sm:$0xff]  }
  0xc4   : > { %13222 = vmatpush3.bf16.msra.mxu1 %v14664_v33  ;;  %v14714_v33 = vld [vmem:[%s15806_s22 + $0x560] sm:$0xff]  }
  0xc5   : > { %9632 = vmatmul.mubr.bf16.vlgmr.msra.gmra.mrb[12].mxu0 %v2382_v34  ;;  %13251 = vmatprep.subr.bf16.mxu1 %v14667_v36  ;;  %v14715_v34 = vld [vmem:[%s15806_s22 + $0x5e0] sm:$0xff]  }
  0xc6   : > { %13230 = vmatpush3.bf16.msra.mxu0 %v14668_v37  ;;  %9711 = vmatprep.mubr.bf16.mxu0 %v2438_v8  ;;  %v14717_v36 = vld [vmem:[%s15806_s22 + $0x5a0] sm:$0xff]   ;;  %v14718_v37 = vld [vmem:[%s15806_s22 + $0x568] sm:$0xff]  }
  0xc7   : > { %9672 = vmatmul.mubr.bf16.vlgmr.msra.gmra.mrb[12].mxu1 %v2398_v39  ;;  %13231 = vmatprep.subr.bf16.mxu0 %v14670_v40  ;;  %v14720_v39 = vld [vmem:[%s15806_s22 + $0x528] sm:$0xff]  }
  0xc8   : > { %13252 = vmatpush3.bf16.msra.mxu1 %v14669_v38  ;;  %9751 = vmatprep.mubr.bf16.mxu1 %v2448_v12  ;;  %v14719_v38 = vld [vmem:[%s15806_s22 + $0x5e8] sm:$0xff]   ;;  %v14755_v12 = vld [vmem:[%s15806_s22 + $0x670] sm:$0xff]  }
  0xc9   : > { %13253 = vmatprep.subr.bf16.mxu1 %v14671_v41  ;;  %v14721_v40 = vld [vmem:[%s15806_s22 + $0x5a8] sm:$0xff]   ;;  %v14722_v41 = vld [vmem:[%s15806_s22 + $0x570] sm:$0xff]  }
  0xca   : > { %13232 = vmatpush3.bf16.msra.mxu0 %v14672_v43  ;;  %v14723_v43 = vld [vmem:[%s15806_s22 + $0x5f0] sm:$0xff]   ;;  %v14751_v8 = vld [vmem:[%s15806_s22 + $0x668] sm:$0xff]  }
  0xcb   : > { %13233 = vmatprep.subr.bf16.mxu0 %v14674_v45  ;;  %v14725_v45 = vld [vmem:[%s15806_s22 + $0x5b0] sm:$0xff]  }
  0xcc   : > { %13254 = vmatpush3.bf16.msra.mxu1 %v14673_v44  ;;  %v14724_v44 = vld [vmem:[%s15806_s22 + $0x530] sm:$0xff]  }
  0xcd   : > { %13255 = vmatprep.subr.bf16.mxu1 %v14675_v46  ;;  %v14726_v46 = vld [vmem:[%s15806_s22 + $0x578] sm:$0xff]  }
  0xce   : > { %13234 = vmatpush3.bf16.msra.mxu0 %v14676_v47  ;;  %v14727_v47 = vld [vmem:[%s15806_s22 + $0x5f8] sm:$0xff]  }
  0xcf   : > { %13235 = vmatprep.subr.bf16.mxu0 %v14678_v49  ;;  %v14729_v49 = vld [vmem:[%s15806_s22 + $0x5b8] sm:$0xff]  }
  0xd0   : > { %13256 = vmatpush3.bf16.msra.mxu1 %v14677_v48  ;;  %v14728_v48 = vld [vmem:[%s15806_s22 + $0x538] sm:$0xff]  }
  0xd1   : > { %13257 = vmatprep.subr.bf16.mxu1 %v14679_v50  ;;  %v2431_v50 = vrot.slane %v16013_v5, %v15863_v42  ;;  %v14748_v5 = vld [vmem:[%s15806_s22 + $0x6e0] sm:$0xff]  }
  0xd2   : > { %13236 = vmatpush3.bf16.msra.mxu0 %v14680_v51  ;;  %v14731_v51 = vld [vmem:[%s15806_s22 + $0x640] sm:$0xff]  }
  0xd3   : > { %13237 = vmatprep.subr.bf16.mxu0 %v14682_v53  ;;  %v14733_v53 = vld [vmem:[%s15806_s22 + $0x600] sm:$0xff]  }
  0xd4   : > { %13258 = vmatpush3.bf16.msra.mxu1 %v14681_v52  ;;  %v14732_v52 = vld [vmem:[%s15806_s22 + $0x6c0] sm:$0xff]  }
  0xd5   : > { %13259 = vmatprep.subr.bf16.mxu1 %v14683_v54  ;;  %v14734_v54 = vld [vmem:[%s15806_s22 + $0x680] sm:$0xff]  }
  0xd6   : > { %13238 = vmatpush3.bf16.msra.mxu0 %v14684_v55  ;;  %v2447_v55 = vcombine.high %v2431_v50, %v2431_v50 }
  0xd7   : > { %13239 = vmatprep.subr.bf16.mxu0 %v14686_v57  ;;  %v14736_v57 = vld [vmem:[%s15806_s22 + $0x6c8] sm:$0xff]  }
  0xd8   : > { %13260 = vmatpush3.bf16.msra.mxu1 %v14685_v56  ;;  %v14735_v56 = vld [vmem:[%s15806_s22 + $0x648] sm:$0xff]  }
  0xd9   : > { %13261 = vmatprep.subr.bf16.mxu1 %v14687_v58  ;;  %v14737_v58 = vld [vmem:[%s15806_s22 + $0x608] sm:$0xff]  }
  0xda   : > { %13240 = vmatpush3.bf16.msra.mxu0 %v14688_v59  ;;  %v14738_v59 = vld [vmem:[%s15806_s22 + $0x688] sm:$0xff]  }
  0xdb   : > { %13241 = vmatprep.subr.bf16.mxu0 %v14690_v61  ;;  %v14740_v61 = vld [vmem:[%s15806_s22 + $0x6d0] sm:$0xff]  }
  0xdc   : > { %13262 = vmatpush3.bf16.msra.mxu1 %v14689_v60  ;;  %v14739_v60 = vld [vmem:[%s15806_s22 + $0x650] sm:$0xff]  }
  0xdd   : > { %13263 = vmatprep.subr.bf16.mxu1 %v14691_v63  ;;  %v14742_v63 = vld [vmem:[%s15806_s22 + $0x690] sm:$0xff]  }
  0xde   : > { %13242 = vmatpush3.bf16.msra.mxu0 %v14692_v2  ;;  %v14745_v2 = vld [vmem:[%s15806_s22 + $0x618] sm:$0xff]  }
  0xdf   : > { %13243 = vmatprep.subr.bf16.mxu0 %v14694_v6  ;;  %v14749_v6 = vld [vmem:[%s15806_s22 + $0x620] sm:$0xff]  }
  0xe0   : > { %13264 = vmatpush3.bf16.msra.mxu1 %v14693_v3  ;;  %v14746_v3 = vld [vmem:[%s15806_s22 + $0x698] sm:$0xff]  }
  0xe1   : > { %13265 = vmatprep.subr.bf16.mxu1 %v14695_v7  ;;  %v14750_v7 = vld [vmem:[%s15806_s22 + $0x6a0] sm:$0xff]  }
  0xe2   : > { %13244 = vmatpush3.bf16.msra.mxu0 %v14696_v10  ;;  %v14753_v10 = vld [vmem:[%s15806_s22 + $0x628] sm:$0xff]  }
  0xe3   : > { %13273 = vmatprep.subr.bf16.mxu0 %v14698_v14  ;;  %v226_v14 = vld [vmem:[%s15819_s26 + $0x18] sm:$0xff] }
  0xe4   : > { %13266 = vmatpush3.bf16.msra.mxu1 %v14697_v11  ;;  %v14754_v11 = vld [vmem:[%s15806_s22 + $0x6a8] sm:$0xff]  }
  0xe5   : > { %9712 = vmatmul.mubr.bf16.vlgmr.msra.gmra.mrb[16].mxu0 %v2424_v13  ;;  %13295 = vmatprep.subr.bf16.mxu1 %v14699_v15  ;;  %v14756_v13 = vld [vmem:[%s15806_s22 + $0x6f0] sm:$0xff]  }
  0xe6   : > { %13274 = vmatpush3.bf16.msra.mxu0 %v14700_v17  ;;  %9791 = vmatprep.mubr.bf16.mxu0 %v2445_v16  ;;  %v14757_v15 = vld [vmem:[%s15806_s22 + $0x630] sm:$0xff]   ;;  %v2457_v16 = vrot.slane %v226_v14, %v15863_v42  ;;  %v2450_v17 = vcombine.high %v226_v14, %v226_v14  ;;  %v14797_v14 = vld [vmem:[%s15806_s22 + $0x8c0] sm:$0xff]  }
  0xe7   : > { %9752 = vmatmul.mubr.bf16.vlgmr.msra.gmra.mrb[16].mxu1 %v2446_v19  ;;  %13275 = vmatprep.subr.bf16.mxu0 %v14702_v20  ;;  %v14759_v19 = vld [vmem:[%s15806_s22 + $0x678] sm:$0xff]  }
  0xe8   : > { %13296 = vmatpush3.bf16.msra.mxu1 %v14701_v18  ;;  %9831 = vmatprep.mubr.bf16.mxu1 %v2449_v22  ;;  %v14758_v18 = vld [vmem:[%s15806_s22 + $0x6b0] sm:$0xff]   ;;  %v2465_v20 = vcombine.high %v2457_v16, %v2457_v16  ;;  %v14760_v22 = vld [vmem:[%s15806_s22 + $0x6f8] sm:$0xff]  }
  0xe9   : > { %13297 = vmatprep.subr.bf16.mxu1 %v14703_v21  ;;  %v16090_v21 = vrot.slane %v2450_v17, %v15863_v42 }
  0xea   : > { %13276 = vmatpush3.bf16.msra.mxu0 %v14704_v23  ;;  %v14761_v23 = vld [vmem:[%s15806_s22 + $0x638] sm:$0xff]  }
  0xeb   : > { %13277 = vmatprep.subr.bf16.mxu0 %v14706_v25  ;;  %v2466_v25 = vcombine.high %v16090_v21, %v16090_v21 }
  0xec   : > { %13298 = vmatpush3.bf16.msra.mxu1 %v14705_v24  ;;  %v2487_v24 = vrot.slane %v2465_v20, %v15863_v42  ;;  %v14802_v20 = vld [vmem:[%s15806_s22 + $0x808] sm:$0xff]  }
  0xed   : > { %13299 = vmatprep.subr.bf16.mxu1 %v14707_v26  ;;  %v14762_v26 = vld [vmem:[%s15806_s22 + $0x6b8] sm:$0xff]  }
  0xee   : > { %13278 = vmatpush3.bf16.msra.mxu0 %v14708_v27  ;;  %v2497_v27 = vcombine.high %v2487_v24, %v2487_v24 }
  0xef   : > { %13279 = vmatprep.subr.bf16.mxu0 %v14710_v29  ;;  %v14763_v29 = vld [vmem:[%s15806_s22 + $0x740] sm:$0xff]  }
  0xf0   : > { %13300 = vmatpush3.bf16.msra.mxu1 %v14709_v28  ;;  %v2473_v28 = vrot.slane %v2457_v16, %v15863_v42  ;;  %v14799_v16 = vld [vmem:[%s15806_s22 + $0x880] sm:$0xff]  }
  0xf1   : > { %13301 = vmatprep.subr.bf16.mxu1 %v14711_v30  ;;  %v14764_v30 = vld [vmem:[%s15806_s22 + $0x7c0] sm:$0xff]  }
  0xf2   : > { %13280 = vmatpush3.bf16.msra.mxu0 %v14712_v31  ;;  %v2494_v31 = vrot.slane %v2466_v25, %v15863_v42  ;;  %v14807_v25 = vld [vmem:[%s15806_s22 + $0x890] sm:$0xff]  }
  0xf3   : > { %13281 = vmatprep.subr.bf16.mxu0 %v14714_v33  ;;  %v14766_v33 = vld [vmem:[%s15806_s22 + $0x780] sm:$0xff]  }
  0xf4   : > { %13302 = vmatpush3.bf16.msra.mxu1 %v14713_v32  ;;  %v14765_v32 = vld [vmem:[%s15806_s22 + $0x700] sm:$0xff]  }
  0xf5   : > { %13303 = vmatprep.subr.bf16.mxu1 %v14715_v34  ;;  %v2495_v34 = vcombine.high %v2473_v28, %v2473_v28 }
  0xf6   : > { %13282 = vmatpush3.bf16.msra.mxu0 %v14716_v35  ;;  %v14767_v35 = vld [vmem:[%s15806_s22 + $0x748] sm:$0xff]  }
  0xf7   : > { %13283 = vmatprep.subr.bf16.mxu0 %v14718_v37  ;;  %v2498_v37 = vcombine.high %v2494_v31, %v2494_v31 }
  0xf8   : > { %13304 = vmatpush3.bf16.msra.mxu1 %v14717_v36  ;;  %v14768_v36 = vld [vmem:[%s15806_s22 + $0x7c8] sm:$0xff]  }
  0xf9   : > { %13305 = vmatprep.subr.bf16.mxu1 %v14719_v38  ;;  %v14769_v38 = vld [vmem:[%s15806_s22 + $0x708] sm:$0xff]  }
  0xfa   : > { %13284 = vmatpush3.bf16.msra.mxu0 %v14720_v39  ;;  %v14770_v39 = vld [vmem:[%s15806_s22 + $0x788] sm:$0xff]  }
  0xfb   : > { %13285 = vmatprep.subr.bf16.mxu0 %v14722_v41  ;;  %v14772_v41 = vld [vmem:[%s15806_s22 + $0x7d0] sm:$0xff]  }
  0xfc   : > { %13306 = vmatpush3.bf16.msra.mxu1 %v14721_v40  ;;  %v14771_v40 = vld [vmem:[%s15806_s22 + $0x750] sm:$0xff]  }
  0xfd   : > { %13307 = vmatprep.subr.bf16.mxu1 %v14723_v43  ;;  %v14773_v43 = vld [vmem:[%s15806_s22 + $0x710] sm:$0xff]  }
  0xfe   : > { %13286 = vmatpush3.bf16.msra.mxu0 %v14724_v44  ;;  %v14774_v44 = vld [vmem:[%s15806_s22 + $0x790] sm:$0xff]  }
  0xff   : > { %13287 = vmatprep.subr.bf16.mxu0 %v14726_v46  ;;  %v14776_v46 = vld [vmem:[%s15806_s22 + $0x7d8] sm:$0xff]  }
 0x100   : > { %13308 = vmatpush3.bf16.msra.mxu1 %v14725_v45  ;;  %v14775_v45 = vld [vmem:[%s15806_s22 + $0x758] sm:$0xff]  }
 0x101   : > { %13309 = vmatprep.subr.bf16.mxu1 %v14727_v47  ;;  %v14777_v47 = vld [vmem:[%s15806_s22 + $0x718] sm:$0xff]  }
 0x102   : > { %13288 = vmatpush3.bf16.msra.mxu0 %v14728_v48  ;;  %v14778_v48 = vld [vmem:[%s15806_s22 + $0x798] sm:$0xff]  }
 0x103   : > { %13317 = vmatprep.subr.bf16.mxu0 %v14731_v51  ;;  %v14781_v51 = vld [vmem:[%s15806_s22 + $0x720] sm:$0xff]  }
 0x104   : > { %13310 = vmatpush3.bf16.msra.mxu1 %v14729_v49  ;;  %v14779_v49 = vld [vmem:[%s15806_s22 + $0x760] sm:$0xff]  }
 0x105   : > { %9792 = vmatmul.mubr.bf16.vlgmr.msra.gmra.mrb[20].mxu0 %v2431_v50  ;;  %13339 = vmatprep.subr.bf16.mxu1 %v14732_v52  ;;  %v14780_v50 = vld [vmem:[%s15806_s22 + $0x7e0] sm:$0xff]  }
 0x106   : > { %13318 = vmatpush3.bf16.msra.mxu0 %v14733_v53  ;;  %9871 = vmatprep.mubr.bf16.mxu0 %v2487_v24  ;;  %v14782_v52 = vld [vmem:[%s15806_s22 + $0x7a0] sm:$0xff]   ;;  %v14783_v53 = vld [vmem:[%s15806_s22 + $0x768] sm:$0xff]   ;;  %v14806_v24 = vld [vmem:[%s15806_s22 + $0x810] sm:$0xff]  }
 0x107   : > { %9832 = vmatmul.mubr.bf16.vlgmr.msra.gmra.mrb[20].mxu1 %v2447_v55  ;;  %13319 = vmatprep.subr.bf16.mxu0 %v14735_v56  ;;  %v14785_v55 = vld [vmem:[%s15806_s22 + $0x728] sm:$0xff]  }
 0x108   : > { %13340 = vmatpush3.bf16.msra.mxu1 %v14734_v54  ;;  %9911 = vmatprep.mubr.bf16.mxu1 %v2497_v27  ;;  %v14784_v54 = vld [vmem:[%s15806_s22 + $0x7e8] sm:$0xff]   ;;  %v14809_v27 = vld [vmem:[%s15806_s22 + $0x8d8] sm:$0xff]  }
 0x109   : > { %13341 = vmatprep.subr.bf16.mxu1 %v14736_v57  ;;  %v14786_v56 = vld [vmem:[%s15806_s22 + $0x7a8] sm:$0xff]   ;;  %v14787_v57 = vld [vmem:[%s15806_s22 + $0x770] sm:$0xff]  }
 0x10a   : > { %13320 = vmatpush3.bf16.msra.mxu0 %v14737_v58 }
 0x10b   : > { %13321 = vmatprep.subr.bf16.mxu0 %v14739_v60 }
 0x10c   : > { %13342 = vmatpush3.bf16.msra.mxu1 %v14738_v59  ;;  %v14788_v59 = vld [vmem:[%s15806_s22 + $0x7f0] sm:$0xff]  }
 0x10d   : > { %13343 = vmatprep.subr.bf16.mxu1 %v14740_v61  ;;  %v14789_v61 = vld [vmem:[%s15806_s22 + $0x730] sm:$0xff]  }
 0x10e   : > { %13322 = vmatpush3.bf16.msra.mxu0 %v14741_v62 }
 0x10f   : > { %13323 = vmatprep.subr.bf16.mxu0 %v14743_v0 }
 0x110   : > { %13344 = vmatpush3.bf16.msra.mxu1 %v14742_v63 }
 0x111   : > { %13345 = vmatprep.subr.bf16.mxu1 %v14744_v1  ;;  %v14790_v1 = vld [vmem:[%s15806_s22 + $0x7b0] sm:$0xff]  }
 0x112   : > { %13324 = vmatpush3.bf16.msra.mxu0 %v14745_v2  ;;  %v14791_v2 = vld [vmem:[%s15806_s22 + $0x778] sm:$0xff]  }
 0x113   : > { %13325 = vmatprep.subr.bf16.mxu0 %v14747_v4 }
 0x114   : > { %13346 = vmatpush3.bf16.msra.mxu1 %v14746_v3 }
 0x115   : > { %13347 = vmatprep.subr.bf16.mxu1 %v14748_v5 }
 0x116   : > { %13326 = vmatpush3.bf16.msra.mxu0 %v14749_v6 }
 0x117   : > { %13327 = vmatprep.subr.bf16.mxu0 %v14751_v8 }
 0x118   : > { %13348 = vmatpush3.bf16.msra.mxu1 %v14750_v7  ;;  %v14792_v7 = vld [vmem:[%s15806_s22 + $0x7f8] sm:$0xff]  }
 0x119   : > { %13349 = vmatprep.subr.bf16.mxu1 %v14752_v9  ;;  %v14793_v9 = vld [vmem:[%s15806_s22 + $0x738] sm:$0xff]  }
 0x11a   : > { %13328 = vmatpush3.bf16.msra.mxu0 %v14753_v10 }
 0x11b   : > { %13329 = vmatprep.subr.bf16.mxu0 %v14755_v12  ;;  %v2480_v12 = vrot.slane %v16090_v21, %v15863_v42  ;;  %v14803_v21 = vld [vmem:[%s15806_s22 + $0x888] sm:$0xff]  }
 0x11c   : > { %13350 = vmatpush3.bf16.msra.mxu1 %v14754_v11  ;;  %v14794_v11 = vld [vmem:[%s15806_s22 + $0x7b8] sm:$0xff]  }
 0x11d   : > { %13351 = vmatprep.subr.bf16.mxu1 %v14756_v13  ;;  %v14796_v13 = vld [vmem:[%s15806_s22 + $0x840] sm:$0xff]   ;;  %v2496_v17 = vcombine.high %v2480_v12, %v2480_v12 }
 0x11e   : > { %13330 = vmatpush3.bf16.msra.mxu0 %v14757_v15  ;;  %v14798_v15 = vld [vmem:[%s15806_s22 + $0x800] sm:$0xff]  }
 0x11f   : > { %13331 = vmatprep.subr.bf16.mxu0 %v14759_v19  ;;  %v14801_v19 = vld [vmem:[%s15806_s22 + $0x8c8] sm:$0xff]  }
 0x120   : > { %13352 = vmatpush3.bf16.msra.mxu1 %v14758_v18  ;;  %v14800_v18 = vld [vmem:[%s15806_s22 + $0x848] sm:$0xff]  }
 0x121   : > { %13353 = vmatprep.subr.bf16.mxu1 %v14760_v22  ;;  %v14804_v22 = vld [vmem:[%s15806_s22 + $0x850] sm:$0xff]  }
 0x122   : > { %13332 = vmatpush3.bf16.msra.mxu0 %v14761_v23  ;;  %v14805_v23 = vld [vmem:[%s15806_s22 + $0x8d0] sm:$0xff]  }
 0x123   : > { %13361 = vmatprep.subr.bf16.mxu0 %v14763_v29  ;;  %v14811_v29 = vld [vmem:[%s15806_s22 + $0x898] sm:$0xff]  }
 0x124   : > { %13354 = vmatpush3.bf16.msra.mxu1 %v14762_v26  ;;  %v14808_v26 = vld [vmem:[%s15806_s22 + $0x858] sm:$0xff]  }
 0x125   : > { %9872 = vmatmul.mubr.bf16.vlgmr.msra.gmra.mrb[24].mxu0 %v2473_v28  ;;  %13383 = vmatprep.subr.bf16.mxu1 %v14764_v30  ;;  %v14810_v28 = vld [vmem:[%s15806_s22 + $0x818] sm:$0xff]   ;;  %v14812_v30 = vld [vmem:[%s15806_s22 + $0x860] sm:$0xff]  }
 0x126   : > { %13362 = vmatpush3.bf16.msra.mxu0 %v14765_v32  ;;  %9951 = vmatprep.mubr.bf16.mxu0 %v2494_v31  ;;  %v14813_v31 = vld [vmem:[%s15806_s22 + $0x8e0] sm:$0xff]  }
 0x127   : > { %9912 = vmatmul.mubr.bf16.vlgmr.msra.gmra.mrb[24].mxu1 %v2495_v34  ;;  %13363 = vmatprep.subr.bf16.mxu0 %v14767_v35  ;;  %v14814_v32 = vld [vmem:[%s15806_s22 + $0x820] sm:$0xff]   ;;  %v14816_v34 = vld [vmem:[%s15806_s22 + $0x868] sm:$0xff]  }
 0x128   : > { %13384 = vmatpush3.bf16.msra.mxu1 %v14766_v33  ;;  %9991 = vmatprep.mubr.bf16.mxu1 %v2498_v37  ;;  %v14815_v33 = vld [vmem:[%s15806_s22 + $0x8a0] sm:$0xff]   ;;  %v14817_v35 = vld [vmem:[%s15806_s22 + $0x8e8] sm:$0xff]  }
 0x129   : > { %13385 = vmatprep.subr.bf16.mxu1 %v14768_v36  ;;  %v14818_v36 = vld [vmem:[%s15806_s22 + $0x828] sm:$0xff]  }
 0x12a   : > { %13364 = vmatpush3.bf16.msra.mxu0 %v14769_v38  ;;  %v14819_v37 = vld [vmem:[%s15806_s22 + $0x8a8] sm:$0xff]   ;;  %v14820_v38 = vld [vmem:[%s15806_s22 + $0x870] sm:$0xff]  }
 0x12b   : > { %13365 = vmatprep.subr.bf16.mxu0 %v14771_v40  ;;  %v14821_v40 = vld [vmem:[%s15806_s22 + $0x8f0] sm:$0xff]  }
 0x12c   : > { %13386 = vmatpush3.bf16.msra.mxu1 %v14770_v39 }
 0x12d   : > { %13387 = vmatprep.subr.bf16.mxu1 %v14772_v41  ;;  %v227_v41 = vld [vmem:[%s15819_s26 + $0x20] sm:$0xff] }
 0x12e   : > { %13366 = vmatpush3.bf16.msra.mxu0 %v14773_v43 }
 0x12f   : > { %13367 = vmatprep.subr.bf16.mxu0 %v14775_v45  ;;  %v2506_v45 = vrot.slane %v227_v41, %v15863_v42 }
 0x130   : > { %13388 = vmatpush3.bf16.msra.mxu1 %v14774_v44  ;;  %v14822_v44 = vld [vmem:[%s15806_s22 + $0x830] sm:$0xff]  }
 0x131   : > { %13389 = vmatprep.subr.bf16.mxu1 %v14776_v46  ;;  %v2499_v46 = vcombine.high %v227_v41, %v227_v41 }
 0x132   : > { %13368 = vmatpush3.bf16.msra.mxu0 %v14777_v47 }
 0x133   : > { %13369 = vmatprep.subr.bf16.mxu0 %v14779_v49 }
 0x134   : > { %13390 = vmatpush3.bf16.msra.mxu1 %v14778_v48 }
 0x135   : > { %13391 = vmatprep.subr.bf16.mxu1 %v14780_v50 }
 0x136   : > { %13370 = vmatpush3.bf16.msra.mxu0 %v14781_v51 }
 0x137   : > { %13371 = vmatprep.subr.bf16.mxu0 %v14783_v53  ;;  %v14824_v53 = vld [vmem:[%s15806_s22 + $0x878] sm:$0xff]  }
 0x138   : > { %13392 = vmatpush3.bf16.msra.mxu1 %v14782_v52  ;;  %v13069_v58 = vpop.f32.mrb[0].mxu0  ;;  %v14823_v52 = vld [vmem:[%s15806_s22 + $0x8b0] sm:$0xff]  }
 0x139   : > { %v13070_v60 = vpop.f32.mrb[1].mxu0  ;;  %13393 = vmatprep.subr.bf16.mxu1 %v14784_v54  ;;  %v13091_v62 = vpop.f32.mrb[0].mxu1  ;;  %v2514_v54 = vcombine.high %v2506_v45, %v2506_v45 }
 0x13a   : > { %v13071_v63 = vadd.f32 %v13070_v60, %v13069_v58  ;;  %v13072_v0 = vpop.f32.mrb[2].mxu0  ;;  %13372 = vmatpush3.bf16.msra.mxu0 %v14785_v55  ;;  %v13092_v3 = vpop.f32.mrb[1].mxu1  ;;  %v16168_v55 = vrot.slane %v2499_v46, %v15863_v42 }
 0x13b   : > { %v13073_v4 = vpop.f32.mrb[3].mxu0  ;;  %13373 = vmatprep.subr.bf16.mxu0 %v14787_v57  ;;  %v13093_v5 = vadd.f32 %v13092_v3, %v13091_v62  ;;  %v13094_v6 = vpop.f32.mrb[2].mxu1  ;;  %v2536_v62 = vrot.slane %v2514_v54, %v15863_v42  ;;  %v2522_v3 = vrot.slane %v2506_v45, %v15863_v42  ;;  %v14862_v54 = vld [vmem:[%s15806_s22 + $0xac0] sm:$0xff]  }
 0x13c   : > { %13394 = vmatpush3.bf16.msra.mxu1 %v14786_v56  ;;  %v13095_v8 = vpop.f32.mrb[3].mxu1  ;;  %v14828_v4 = vld [vmem:[%s15806_s22 + $0x940] sm:$0xff]  }
 0x13d   : > { %13395 = vmatprep.subr.bf16.mxu1 %v14788_v59  ;;  %v16131_v10 = vadd.f32 %v13093_v5, %v13071_v63  ;;  %v14825_v59 = vld [vmem:[%s15806_s22 + $0x8f8] sm:$0xff]   ;;  %v2515_v63 = vcombine.high %v16168_v55, %v16168_v55  ;;  %v14829_v5 = vld [vmem:[%s15806_s22 + $0x9c0] sm:$0xff]  }
 0x13e   : > { %13374 = vmatpush3.bf16.msra.mxu0 %v14789_v61  ;;  %v14826_v61 = vld [vmem:[%s15806_s22 + $0x838] sm:$0xff]   ;;  %v14831_v8 = vld [vmem:[%s15806_s22 + $0x980] sm:$0xff]  }
 0x13f   : > { %13375 = vmatprep.subr.bf16.mxu0 %v14791_v2  ;;  %v2546_v2 = vcombine.high %v2536_v62, %v2536_v62  ;;  %v2543_v6 = vrot.slane %v2515_v63, %v15863_v42  ;;  %v14870_v63 = vld [vmem:[%s15806_s22 + $0xad0] sm:$0xff]  }
 0x140   : > { %13396 = vmatpush3.bf16.msra.mxu1 %v14790_v1  ;;  %v14827_v1 = vld [vmem:[%s15806_s22 + $0x8b8] sm:$0xff]  }
 0x141   : > { %13397 = vmatprep.subr.bf16.mxu1 %v14792_v7  ;;  %v14830_v7 = vld [vmem:[%s15806_s22 + $0x900] sm:$0xff]  }
 0x142   : > { %13376 = vmatpush3.bf16.msra.mxu0 %v14793_v9  ;;  %v2544_v9 = vcombine.high %v2522_v3, %v2522_v3 }
 0x143   : > { %13405 = vmatprep.subr.bf16.mxu0 %v14796_v13  ;;  %v14834_v13 = vld [vmem:[%s15806_s22 + $0x908] sm:$0xff]  }
 0x144   : > { %13398 = vmatpush3.bf16.msra.mxu1 %v14794_v11  ;;  %v14833_v11 = vld [vmem:[%s15806_s22 + $0x9c8] sm:$0xff]  }
 0x145   : > { %9952 = vmatmul.mubr.bf16.vlgmr.msra.gmra.mrb[28].mxu0 %v2480_v12  ;;  %13427 = vmatprep.subr.bf16.mxu1 %v14797_v14  ;;  %v2547_v12 = vcombine.high %v2543_v6, %v2543_v6  ;;  %v14835_v14 = vld [vmem:[%s15806_s22 + $0x988] sm:$0xff]  }
 0x146   : > { %13406 = vmatpush3.bf16.msra.mxu0 %v14798_v15  ;;  %10031 = vmatprep.mubr.bf16.mxu0 %v2536_v62  ;;  %v14836_v15 = vld [vmem:[%s15806_s22 + $0x950] sm:$0xff]  }
 0x147   : > { %9992 = vmatmul.mubr.bf16.vlgmr.msra.gmra.mrb[28].mxu1 %v2496_v17  ;;  %13407 = vmatprep.subr.bf16.mxu0 %v14800_v18  ;;  %v14838_v17 = vld [vmem:[%s15806_s22 + $0x910] sm:$0xff]  }
 0x148   : > { %13428 = vmatpush3.bf16.msra.mxu1 %v14799_v16  ;;  %10071 = vmatprep.mubr.bf16.mxu1 %v2546_v2  ;;  %v14837_v16 = vld [vmem:[%s15806_s22 + $0x9d0] sm:$0xff]   ;;  %v14873_v2 = vld [vmem:[%s15806_s22 + $0xa58] sm:$0xff]  }
 0x149   : > { %13429 = vmatprep.subr.bf16.mxu1 %v14801_v19  ;;  %v14839_v18 = vld [vmem:[%s15806_s22 + $0x990] sm:$0xff]   ;;  %v14840_v19 = vld [vmem:[%s15806_s22 + $0x958] sm:$0xff]  }
 0x14a   : > { %13408 = vmatpush3.bf16.msra.mxu0 %v14802_v20  ;;  %v14841_v20 = vld [vmem:[%s15806_s22 + $0x9d8] sm:$0xff]   ;;  %v14869_v62 = vld [vmem:[%s15806_s22 + $0xa50] sm:$0xff]  }
 0x14b   : > { %13409 = vmatprep.subr.bf16.mxu0 %v14804_v22  ;;  %v14843_v22 = vld [vmem:[%s15806_s22 + $0x998] sm:$0xff]  }
 0x14c   : > { %13430 = vmatpush3.bf16.msra.mxu1 %v14803_v21  ;;  %v14842_v21 = vld [vmem:[%s15806_s22 + $0x918] sm:$0xff]  }
 0x14d   : > { %13431 = vmatprep.subr.bf16.mxu1 %v14805_v23  ;;  %v14844_v23 = vld [vmem:[%s15806_s22 + $0x960] sm:$0xff]  }
 0x14e   : > { %13410 = vmatpush3.bf16.msra.mxu0 %v14806_v24  ;;  %v14845_v24 = vld [vmem:[%s15806_s22 + $0x9e0] sm:$0xff]  }
 0x14f   : > { %13411 = vmatprep.subr.bf16.mxu0 %v14808_v26  ;;  %v14847_v26 = vld [vmem:[%s15806_s22 + $0x9a0] sm:$0xff]  }
 0x150   : > { %13432 = vmatpush3.bf16.msra.mxu1 %v14807_v25  ;;  %v14846_v25 = vld [vmem:[%s15806_s22 + $0x920] sm:$0xff]  }
 0x151   : > { %13433 = vmatprep.subr.bf16.mxu1 %v14809_v27  ;;  %v14848_v27 = vld [vmem:[%s15806_s22 + $0x968] sm:$0xff]  }
 0x152   : > { %13412 = vmatpush3.bf16.msra.mxu0 %v14810_v28  ;;  %v14849_v28 = vld [vmem:[%s15806_s22 + $0x9e8] sm:$0xff]  }
 0x153   : > { %13413 = vmatprep.subr.bf16.mxu0 %v14812_v30  ;;  %v14851_v30 = vld [vmem:[%s15806_s22 + $0x9a8] sm:$0xff]  }
 0x154   : > { %13434 = vmatpush3.bf16.msra.mxu1 %v14811_v29  ;;  %v14850_v29 = vld [vmem:[%s15806_s22 + $0x928] sm:$0xff]  }
 0x155   : > { %13435 = vmatprep.subr.bf16.mxu1 %v14813_v31  ;;  %v14852_v31 = vld [vmem:[%s15806_s22 + $0x970] sm:$0xff]  }
 0x156   : > { %13414 = vmatpush3.bf16.msra.mxu0 %v14814_v32 }
 0x157   : > { %13415 = vmatprep.subr.bf16.mxu0 %v14816_v34 }
 0x158   : > { %13436 = vmatpush3.bf16.msra.mxu1 %v14815_v33  ;;  %v13113_v39 = vpop.f32.mrb[4].mxu0  ;;  %v14853_v33 = vld [vmem:[%s15806_s22 + $0x9f0] sm:$0xff]  }
 0x159   : > { %v13114_v43 = vpop.f32.mrb[5].mxu0  ;;  %13437 = vmatprep.subr.bf16.mxu1 %v14817_v35  ;;  %v13135_v47 = vpop.f32.mrb[4].mxu1  ;;  %v14854_v35 = vld [vmem:[%s15806_s22 + $0x930] sm:$0xff]  }
 0x15a   : > { %v13115_v48 = vadd.f32 %v13114_v43, %v13113_v39  ;;  %v13116_v49 = vpop.f32.mrb[6].mxu0  ;;  %13416 = vmatpush3.bf16.msra.mxu0 %v14818_v36  ;;  %v13136_v50 = vpop.f32.mrb[5].mxu1  ;;  %v14855_v39 = vld [vmem:[%s15806_s22 + $0x9b0] sm:$0xff]  }
 0x15b   : > { %v13117_v51 = vpop.f32.mrb[7].mxu0  ;;  %13417 = vmatprep.subr.bf16.mxu0 %v14820_v38  ;;  %v13137_v57 = vadd.f32 %v13136_v50, %v13135_v47  ;;  %v13138_v58 = vpop.f32.mrb[6].mxu1  ;;  %v14857_v47 = vld [vmem:[%s15806_s22 + $0x9f8] sm:$0xff]  }
 0x15c   : > { %v9474_v56 = vadd.f32 %v13115_v48, %v16131_v10  ;;  %13438 = vmatpush3.bf16.msra.mxu1 %v14819_v37  ;;  %v13139_v60 = vpop.f32.mrb[7].mxu1  ;;  %v14832_v10 = vld [vmem:[%s15806_s22 + $0x948] sm:$0xff]   ;;  %v14858_v49 = vld [vmem:[%s15806_s22 + $0x938] sm:$0xff]  }
 0x15d   : > { %13439 = vmatprep.subr.bf16.mxu1 %v14821_v40  ;;  %v14856_v40 = vld [vmem:[%s15806_s22 + $0x978] sm:$0xff]   ;;  %v14866_v60 = vld [vmem:[%s15806_s22 + $0xac8] sm:$0xff]  }
 0x15e   : > { %v16176_v0 = vadd.f32 %v13137_v57, %v9474_v56  ;;  %13418 = vmatpush3.bf16.msra.mxu0 %v14822_v44  ;;  %v14859_v51 = vld [vmem:[%s15806_s22 + $0x9b8] sm:$0xff]   ;;  %v14863_v56 = vld [vmem:[%s15806_s22 + $0xa00] sm:$0xff]  }
 0x15f   : > { %13419 = vmatprep.subr.bf16.mxu0 %v14824_v53  ;;  %v14861_v53 = vld [vmem:[%s15806_s22 + $0xa40] sm:$0xff]  }
 0x160   : > { %13440 = vmatpush3.bf16.msra.mxu1 %v14823_v52  ;;  %v2529_v52 = vrot.slane %v16168_v55, %v15863_v42  ;;  %v14864_v57 = vld [vmem:[%s15806_s22 + $0xa80] sm:$0xff]   ;;  %v14867_v55 = vld [vmem:[%s15806_s22 + $0xa08] sm:$0xff]  }
 0x161   : > { %13441 = vmatprep.subr.bf16.mxu1 %v14825_v59  ;;  %v14865_v59 = vld [vmem:[%s15806_s22 + $0xa48] sm:$0xff]  }
 0x162   : > { %13420 = vmatpush3.bf16.msra.mxu0 %v14826_v61  ;;  %v2545_v58 = vcombine.high %v2529_v52, %v2529_v52  ;;  %v14868_v61 = vld [vmem:[%s15806_s22 + $0xa88] sm:$0xff]  }
 0x163   : > { %13449 = vmatprep.subr.bf16.mxu0 %v14828_v4  ;;  %v14875_v4 = vld [vmem:[%s15806_s22 + $0xa18] sm:$0xff]  }
 0x164   : > { %13442 = vmatpush3.bf16.msra.mxu1 %v14827_v1  ;;  %v14872_v1 = vld [vmem:[%s15806_s22 + $0xa90] sm:$0xff]  }
 0x165   : > { %10032 = vmatmul.mubr.bf16.vlgmr.msra.gmra.mrb[32].mxu0 %v2522_v3  ;;  %13471 = vmatprep.subr.bf16.mxu1 %v14829_v5  ;;  %v14874_v3 = vld [vmem:[%s15806_s22 + $0xad8] sm:$0xff]  }
 0x166   : > { %13450 = vmatpush3.bf16.msra.mxu0 %v14830_v7  ;;  %10111 = vmatprep.mubr.bf16.mxu0 %v2543_v6  ;;  %v14876_v5 = vld [vmem:[%s15806_s22 + $0xa98] sm:$0xff]   ;;  %v14877_v6 = vld [vmem:[%s15806_s22 + $0xa60] sm:$0xff]  }
 0x167   : > { %10072 = vmatmul.mubr.bf16.vlgmr.msra.gmra.mrb[32].mxu1 %v2544_v9  ;;  %13451 = vmatprep.subr.bf16.mxu0 %v14832_v10  ;;  %v14878_v7 = vld [vmem:[%s15806_s22 + $0xae0] sm:$0xff]   ;;  %v14881_v10 = vld [vmem:[%s15806_s22 + $0xa68] sm:$0xff]  }
 0x168   : > { %13472 = vmatpush3.bf16.msra.mxu1 %v14831_v8  ;;  %10151 = vmatprep.mubr.bf16.mxu1 %v2547_v12  ;;  %v14879_v8 = vld [vmem:[%s15806_s22 + $0xa20] sm:$0xff]   ;;  %v14883_v12 = vld [vmem:[%s15806_s22 + $0xa28] sm:$0xff]  }
 0x169   : > { %13473 = vmatprep.subr.bf16.mxu1 %v14833_v11  ;;  %v14880_v9 = vld [vmem:[%s15806_s22 + $0xaa0] sm:$0xff]   ;;  %v14882_v11 = vld [vmem:[%s15806_s22 + $0xae8] sm:$0xff]  }
 0x16a   : > { %13452 = vmatpush3.bf16.msra.mxu0 %v14834_v13  ;;  %v14884_v13 = vld [vmem:[%s15806_s22 + $0xaa8] sm:$0xff]  }
 0x16b   : > { %13453 = vmatprep.subr.bf16.mxu0 %v14836_v15 }
 0x16c   : > { %13474 = vmatpush3.bf16.msra.mxu1 %v14835_v14  ;;  %v14885_v14 = vld [vmem:[%s15806_s22 + $0xa70] sm:$0xff]  }
 0x16d   : > { %13475 = vmatprep.subr.bf16.mxu1 %v14837_v16  ;;  %v14886_v16 = vld [vmem:[%s15806_s22 + $0xaf0] sm:$0xff]  }
 0x16e   : > { %13454 = vmatpush3.bf16.msra.mxu0 %v14838_v17 }
 0x16f   : > { %13455 = vmatprep.subr.bf16.mxu0 %v14840_v19  ;;  %v228_v19 = vld [vmem:[%s15819_s26 + $0x28] sm:$0xff] }
 0x170   : > { %13476 = vmatpush3.bf16.msra.mxu1 %v14839_v18  ;;  %v14887_v18 = vld [vmem:[%s15806_s22 + $0xa30] sm:$0xff]  }
 0x171   : > { %13477 = vmatprep.subr.bf16.mxu1 %v14841_v20 }
 0x172   : > { %13456 = vmatpush3.bf16.msra.mxu0 %v14842_v21 }
 0x173   : > { %13457 = vmatprep.subr.bf16.mxu0 %v14844_v23  ;;  %v2555_v23 = vrot.slane %v228_v19, %v15863_v42 }
 0x174   : > { %13478 = vmatpush3.bf16.msra.mxu1 %v14843_v22 }
 0x175   : > { %13479 = vmatprep.subr.bf16.mxu1 %v14845_v24  ;;  %v2548_v24 = vcombine.high %v228_v19, %v228_v19 }
 0x176   : > { %13458 = vmatpush3.bf16.msra.mxu0 %v14846_v25 }
 0x177   : > { %13459 = vmatprep.subr.bf16.mxu0 %v14848_v27  ;;  %v14888_v27 = vld [vmem:[%s15806_s22 + $0xab0] sm:$0xff]  }
 0x178   : > { %13480 = vmatpush3.bf16.msra.mxu1 %v14847_v26  ;;  %v13157_v32 = vpop.f32.mrb[8].mxu0 }
 0x179   : > { %v13158_v34 = vpop.f32.mrb[9].mxu0  ;;  %13481 = vmatprep.subr.bf16.mxu1 %v14849_v28  ;;  %v14889_v28 = vld [vmem:[%s15806_s22 + $0xa78] sm:$0xff]  }
 0x17a   : > { %v13179_v36 = vpop.f32.mrb[8].mxu1  ;;  %v13159_v37 = vadd.f32 %v13158_v34, %v13157_v32  ;;  %v13160_v38 = vpop.f32.mrb[10].mxu0  ;;  %13460 = vmatpush3.bf16.msra.mxu0 %v14850_v29  ;;  %v14890_v32 = vld [vmem:[%s15806_s22 + $0xaf8] sm:$0xff]  }
 0x17b   : > { %v13180_v41 = vpop.f32.mrb[9].mxu1  ;;  %v13161_v43 = vpop.f32.mrb[11].mxu0  ;;  %13461 = vmatprep.subr.bf16.mxu0 %v14852_v31  ;;  %v14892_v38 = vld [vmem:[%s15806_s22 + $0xab8] sm:$0xff]  }
 0x17c   : > { %v9554_v44 = vadd.f32 %v13159_v37, %v16176_v0  ;;  %v13181_v45 = vadd.f32 %v13180_v41, %v13179_v36  ;;  %v13182_v46 = vpop.f32.mrb[10].mxu1  ;;  %13482 = vmatpush3.bf16.msra.mxu1 %v14851_v30  ;;  %v14871_v0 = vld [vmem:[%s15806_s22 + $0xa10] sm:$0xff]   ;;  %v16253_v36 = vrot.slane %v2548_v24, %v15863_v42  ;;  %v14893_v41 = vld [vmem:[%s15806_s22 + $0xb40] sm:$0xff]   ;;  %v14923_v24 = vld [vmem:[%s15806_s22 + $0xb38] sm:$0xff]  }
 0x17d   : > { %v13183_v48 = vpop.f32.mrb[11].mxu1  ;;  %13483 = vmatprep.subr.bf16.mxu1 %v14853_v33  ;;  %v2563_v33 = vcombine.high %v2555_v23, %v2555_v23  ;;  %v14895_v46 = vld [vmem:[%s15806_s22 + $0xb00] sm:$0xff]  }
 0x17e   : > { %v16213_v50 = vadd.f32 %v13181_v45, %v9554_v44  ;;  %13462 = vmatpush3.bf16.msra.mxu0 %v14854_v35  ;;  %v14891_v35 = vld [vmem:[%s15806_s22 + $0xa38] sm:$0xff]   ;;  %v2564_v43 = vcombine.high %v16253_v36, %v16253_v36  ;;  %v14894_v45 = vld [vmem:[%s15806_s22 + $0xbc0] sm:$0xff]  }
 0x17f   : > { %13463 = vmatprep.subr.bf16.mxu0 %v14856_v40  ;;  %v2571_v40 = vrot.slane %v2555_v23, %v15863_v42  ;;  %v14896_v48 = vld [vmem:[%s15806_s22 + $0xb80] sm:$0xff]  }
 0x180   : > { %13484 = vmatpush3.bf16.msra.mxu1 %v14855_v39  ;;  %v2585_v39 = vrot.slane %v2563_v33, %v15863_v42  ;;  %v14930_v33 = vld [vmem:[%s15806_s22 + $0xc48] sm:$0xff]  }
 0x181   : > { %13485 = vmatprep.subr.bf16.mxu1 %v14857_v47  ;;  %v2592_v47 = vrot.slane %v2564_v43, %v15863_v42  ;;  %v14939_v43 = vld [vmem:[%s15806_s22 + $0xcd8] sm:$0xff]  }
 0x182   : > { %13464 = vmatpush3.bf16.msra.mxu0 %v14858_v49  ;;  %v2595_v44 = vcombine.high %v2585_v39, %v2585_v39  ;;  %v2593_v49 = vcombine.high %v2571_v40, %v2571_v40 }
 0x183   : > { %13493 = vmatprep.subr.bf16.mxu0 %v14861_v53  ;;  %v14899_v53 = vld [vmem:[%s15806_s22 + $0xb08] sm:$0xff]  }
 0x184   : > { %13486 = vmatpush3.bf16.msra.mxu1 %v14859_v51  ;;  %v14898_v51 = vld [vmem:[%s15806_s22 + $0xbc8] sm:$0xff]  }
 0x185   : > { %10112 = vmatmul.mubr.bf16.vlgmr.msra.gmra.mrb[36].mxu0 %v2529_v52  ;;  %13515 = vmatprep.subr.bf16.mxu1 %v14862_v54  ;;  %v2596_v52 = vcombine.high %v2592_v47, %v2592_v47  ;;  %v14900_v54 = vld [vmem:[%s15806_s22 + $0xb88] sm:$0xff]  }
 0x186   : > { %13494 = vmatpush3.bf16.msra.mxu0 %v14863_v56  ;;  %10191 = vmatprep.mubr.bf16.mxu0 %v2585_v39  ;;  %v14901_v56 = vld [vmem:[%s15806_s22 + $0xb50] sm:$0xff]  }
 0x187   : > { %10152 = vmatmul.mubr.bf16.vlgmr.msra.gmra.mrb[36].mxu1 %v2545_v58  ;;  %13495 = vmatprep.subr.bf16.mxu0 %v14865_v59  ;;  %v14903_v58 = vld [vmem:[%s15806_s22 + $0xb10] sm:$0xff]  }
 0x188   : > { %13516 = vmatpush3.bf16.msra.mxu1 %v14864_v57  ;;  %10231 = vmatprep.mubr.bf16.mxu1 %v2595_v44  ;;  %v14902_v57 = vld [vmem:[%s15806_s22 + $0xbd0] sm:$0xff]   ;;  %v14940_v44 = vld [vmem:[%s15806_s22 + $0xc18] sm:$0xff]  }
 0x189   : > { %13517 = vmatprep.subr.bf16.mxu1 %v14866_v60  ;;  %v14904_v59 = vld [vmem:[%s15806_s22 + $0xb90] sm:$0xff]   ;;  %v14905_v60 = vld [vmem:[%s15806_s22 + $0xb58] sm:$0xff]  }
 0x18a   : > { %13496 = vmatpush3.bf16.msra.mxu0 %v14867_v55  ;;  %v14906_v55 = vld [vmem:[%s15806_s22 + $0xbd8] sm:$0xff]   ;;  %v14936_v39 = vld [vmem:[%s15806_s22 + $0xc10] sm:$0xff]  }
 0x18b   : > { %13497 = vmatprep.subr.bf16.mxu0 %v14869_v62  ;;  %v14908_v62 = vld [vmem:[%s15806_s22 + $0xb98] sm:$0xff]  }
 0x18c   : > { %13518 = vmatpush3.bf16.msra.mxu1 %v14868_v61  ;;  %v14907_v61 = vld [vmem:[%s15806_s22 + $0xb18] sm:$0xff]  }
 0x18d   : > { %13519 = vmatprep.subr.bf16.mxu1 %v14870_v63  ;;  %v14909_v63 = vld [vmem:[%s15806_s22 + $0xb60] sm:$0xff]  }
 0x18e   : > { %13498 = vmatpush3.bf16.msra.mxu0 %v14871_v0  ;;  %v14910_v0 = vld [vmem:[%s15806_s22 + $0xbe0] sm:$0xff]  }
 0x18f   : > { %13499 = vmatprep.subr.bf16.mxu0 %v14873_v2  ;;  %v14912_v2 = vld [vmem:[%s15806_s22 + $0xba0] sm:$0xff]  }
 0x190   : > { %13520 = vmatpush3.bf16.msra.mxu1 %v14872_v1  ;;  %v14911_v1 = vld [vmem:[%s15806_s22 + $0xb20] sm:$0xff]  }
 0x191   : > { %13521 = vmatprep.subr.bf16.mxu1 %v14874_v3  ;;  %v14913_v3 = vld [vmem:[%s15806_s22 + $0xb68] sm:$0xff]  }
 0x192   : > { %13500 = vmatpush3.bf16.msra.mxu0 %v14875_v4  ;;  %v14914_v4 = vld [vmem:[%s15806_s22 + $0xbe8] sm:$0xff]  }
 0x193   : > { %13501 = vmatprep.subr.bf16.mxu0 %v14877_v6  ;;  %v14916_v6 = vld [vmem:[%s15806_s22 + $0xba8] sm:$0xff]  }
 0x194   : > { %13522 = vmatpush3.bf16.msra.mxu1 %v14876_v5  ;;  %v14915_v5 = vld [vmem:[%s15806_s22 + $0xb28] sm:$0xff]  }
 0x195   : > { %13523 = vmatprep.subr.bf16.mxu1 %v14878_v7  ;;  %v14917_v7 = vld [vmem:[%s15806_s22 + $0xb70] sm:$0xff]  }
 0x196   : > { %13502 = vmatpush3.bf16.msra.mxu0 %v14879_v8 }
 0x197   : > { %13503 = vmatprep.subr.bf16.mxu0 %v14881_v10 }
 0x198   : > { %13524 = vmatpush3.bf16.msra.mxu1 %v14880_v9  ;;  %v13201_v15 = vpop.f32.mrb[12].mxu0  ;;  %v14918_v9 = vld [vmem:[%s15806_s22 + $0xbf0] sm:$0xff]  }
 0x199   : > { %v13202_v17 = vpop.f32.mrb[13].mxu0  ;;  %13525 = vmatprep.subr.bf16.mxu1 %v14882_v11  ;;  %v14919_v11 = vld [vmem:[%s15806_s22 + $0xb30] sm:$0xff]  }
 0x19a   : > { %v13223_v20 = vpop.f32.mrb[12].mxu1  ;;  %v13203_v21 = vadd.f32 %v13202_v17, %v13201_v15  ;;  %v13204_v22 = vpop.f32.mrb[14].mxu0  ;;  %13504 = vmatpush3.bf16.msra.mxu0 %v14883_v12  ;;  %v14920_v15 = vld [vmem:[%s15806_s22 + $0xbb0] sm:$0xff]  }
 0x19b   : > { %v13224_v25 = vpop.f32.mrb[13].mxu1  ;;  %v13205_v26 = vpop.f32.mrb[15].mxu0  ;;  %13505 = vmatprep.subr.bf16.mxu0 %v14885_v14  ;;  %v14922_v22 = vld [vmem:[%s15806_s22 + $0xbf8] sm:$0xff]  }
 0x19c   : > { %v9634_v29 = vadd.f32 %v13203_v21, %v16213_v50  ;;  %v13225_v30 = vadd.f32 %v13224_v25, %v13223_v20  ;;  %v13226_v31 = vpop.f32.mrb[14].mxu1  ;;  %13526 = vmatpush3.bf16.msra.mxu1 %v14884_v13  ;;  %v14897_v50 = vld [vmem:[%s15806_s22 + $0xb48] sm:$0xff]   ;;  %v14924_v26 = vld [vmem:[%s15806_s22 + $0xbb8] sm:$0xff]  }
 0x19d   : > { %v13227_v34 = vpop.f32.mrb[15].mxu1  ;;  %13527 = vmatprep.subr.bf16.mxu1 %v14886_v16  ;;  %v14921_v16 = vld [vmem:[%s15806_s22 + $0xb78] sm:$0xff]   ;;  %v14929_v31 = vld [vmem:[%s15806_s22 + $0xc80] sm:$0xff]  }
 0x19e   : > { %v16255_v37 = vadd.f32 %v13225_v30, %v9634_v29  ;;  %13506 = vmatpush3.bf16.msra.mxu0 %v14887_v18  ;;  %v14927_v29 = vld [vmem:[%s15806_s22 + $0xcc0] sm:$0xff]   ;;  %v14931_v34 = vld [vmem:[%s15806_s22 + $0xcc8] sm:$0xff]  }
 0x19f   : > { %13507 = vmatprep.subr.bf16.mxu0 %v14889_v28  ;;  %v14926_v28 = vld [vmem:[%s15806_s22 + $0xc40] sm:$0xff]  }
 0x1a0   : > { %13528 = vmatpush3.bf16.msra.mxu1 %v14888_v27  ;;  %v2578_v27 = vrot.slane %v16253_v36, %v15863_v42  ;;  %v14928_v30 = vld [vmem:[%s15806_s22 + $0xc00] sm:$0xff]   ;;  %v14933_v36 = vld [vmem:[%s15806_s22 + $0xc88] sm:$0xff]  }
 0x1a1   : > { %13529 = vmatprep.subr.bf16.mxu1 %v14890_v32 }
 0x1a2   : > { %13508 = vmatpush3.bf16.msra.mxu0 %v14891_v35  ;;  %v2594_v32 = vcombine.high %v2578_v27, %v2578_v27  ;;  %v14932_v35 = vld [vmem:[%s15806_s22 + $0xc08] sm:$0xff]  }
 0x1a3   : > { %13537 = vmatprep.subr.bf16.mxu0 %v14893_v41  ;;  %v14938_v41 = vld [vmem:[%s15806_s22 + $0xc58] sm:$0xff]  }
 0x1a4   : > { %13530 = vmatpush3.bf16.msra.mxu1 %v14892_v38  ;;  %v14935_v38 = vld [vmem:[%s15806_s22 + $0xcd0] sm:$0xff]  }
 0x1a5   : > { %10192 = vmatmul.mubr.bf16.vlgmr.msra.gmra.mrb[40].mxu0 %v2571_v40  ;;  %13559 = vmatprep.subr.bf16.mxu1 %v14894_v45  ;;  %v14937_v40 = vld [vmem:[%s15806_s22 + $0xc90] sm:$0xff]   ;;  %v14941_v45 = vld [vmem:[%s15806_s22 + $0xc98] sm:$0xff]  }
 0x1a6   : > { %13538 = vmatpush3.bf16.msra.mxu0 %v14895_v46  ;;  %10271 = vmatprep.mubr.bf16.mxu0 %v2592_v47  ;;  %v14942_v46 = vld [vmem:[%s15806_s22 + $0xc60] sm:$0xff]  }
 0x1a7   : > { %10232 = vmatmul.mubr.bf16.vlgmr.msra.gmra.mrb[40].mxu1 %v2593_v49  ;;  %13539 = vmatprep.subr.bf16.mxu0 %v14897_v50  ;;  %v14943_v47 = vld [vmem:[%s15806_s22 + $0xce0] sm:$0xff]   ;;  %v14946_v50 = vld [vmem:[%s15806_s22 + $0xc68] sm:$0xff]  }
 0x1a8   : > { %13560 = vmatpush3.bf16.msra.mxu1 %v14896_v48  ;;  %10311 = vmatprep.mubr.bf16.mxu1 %v2596_v52  ;;  %v14944_v48 = vld [vmem:[%s15806_s22 + $0xc20] sm:$0xff]   ;;  %v14948_v52 = vld [vmem:[%s15806_s22 + $0xc28] sm:$0xff]  }
 0x1a9   : > { %13561 = vmatprep.subr.bf16.mxu1 %v14898_v51  ;;  %v14945_v49 = vld [vmem:[%s15806_s22 + $0xca0] sm:$0xff]   ;;  %v14947_v51 = vld [vmem:[%s15806_s22 + $0xce8] sm:$0xff]  }
 0x1aa   : > { %13540 = vmatpush3.bf16.msra.mxu0 %v14899_v53  ;;  %v14949_v53 = vld [vmem:[%s15806_s22 + $0xca8] sm:$0xff]  }
 0x1ab   : > { %13541 = vmatprep.subr.bf16.mxu0 %v14901_v56 }
 0x1ac   : > { %13562 = vmatpush3.bf16.msra.mxu1 %v14900_v54  ;;  %v14950_v54 = vld [vmem:[%s15806_s22 + $0xc70] sm:$0xff]  }
 0x1ad   : > { %13563 = vmatprep.subr.bf16.mxu1 %v14902_v57  ;;  %v14951_v57 = vld [vmem:[%s15806_s22 + $0xcf0] sm:$0xff]  }
 0x1ae   : > { %13542 = vmatpush3.bf16.msra.mxu0 %v14903_v58 }
 0x1af   : > { %13543 = vmatprep.subr.bf16.mxu0 %v14905_v60 }
 0x1b0   : > { %13564 = vmatpush3.bf16.msra.mxu1 %v14904_v59  ;;  %v14952_v59 = vld [vmem:[%s15806_s22 + $0xc30] sm:$0xff]  }
 0x1b1   : > { %13565 = vmatprep.subr.bf16.mxu1 %v14906_v55 }
 0x1b2   : > { %13544 = vmatpush3.bf16.msra.mxu0 %v14907_v61 }
 0x1b3   : > { %13545 = vmatprep.subr.bf16.mxu0 %v14909_v63  ;;  %v14954_v63 = vld [vmem:[%s15806_s22 + $0xc78] sm:$0xff]  }
 0x1b4   : > { %13566 = vmatpush3.bf16.msra.mxu1 %v14908_v62  ;;  %v14953_v62 = vld [vmem:[%s15806_s22 + $0xcb0] sm:$0xff]  }
 0x1b5   : > { %13567 = vmatprep.subr.bf16.mxu1 %v14910_v0  ;;  %v229_v0 = vld [vmem:[%s15819_s26 + $0x30] sm:$0xff] }
 0x1b6   : > { %13546 = vmatpush3.bf16.msra.mxu0 %v14911_v1 }
 0x1b7   : > { %13547 = vmatprep.subr.bf16.mxu0 %v14913_v3  ;;  %v2604_v3 = vrot.slane %v229_v0, %v15863_v42 }
 0x1b8   : > { %13568 = vmatpush3.bf16.msra.mxu1 %v14912_v2  ;;  %v13245_v8 = vpop.f32.mrb[16].mxu0 }
 0x1b9   : > { %v13246_v10 = vpop.f32.mrb[17].mxu0  ;;  %13569 = vmatprep.subr.bf16.mxu1 %v14914_v4  ;;  %v2597_v4 = vcombine.high %v229_v0, %v229_v0  ;;  %v14988_v0 = vld [vmem:[%s15806_s22 + $0xd38] sm:$0xff]  }
 0x1ba   : > { %v13267_v12 = vpop.f32.mrb[16].mxu1  ;;  %v13247_v13 = vadd.f32 %v13246_v10, %v13245_v8  ;;  %v13248_v14 = vpop.f32.mrb[18].mxu0  ;;  %13548 = vmatpush3.bf16.msra.mxu0 %v14915_v5  ;;  %v14955_v8 = vld [vmem:[%s15806_s22 + $0xcf8] sm:$0xff]  }
 0x1bb   : > { %v13268_v17 = vpop.f32.mrb[17].mxu1  ;;  %v13249_v18 = vpop.f32.mrb[19].mxu0  ;;  %13549 = vmatprep.subr.bf16.mxu0 %v14917_v7  ;;  %v14956_v10 = vld [vmem:[%s15806_s22 + $0xc38] sm:$0xff]  }
 0x1bc   : > { %v9714_v19 = vadd.f32 %v13247_v13, %v16255_v37  ;;  %v13269_v20 = vadd.f32 %v13268_v17, %v13267_v12  ;;  %v13270_v21 = vpop.f32.mrb[18].mxu1  ;;  %13570 = vmatpush3.bf16.msra.mxu1 %v14916_v6  ;;  %v14934_v37 = vld [vmem:[%s15806_s22 + $0xc50] sm:$0xff]   ;;  %v16335_v12 = vrot.slane %v2597_v4, %v15863_v42  ;;  %v14957_v14 = vld [vmem:[%s15806_s22 + $0xcb8] sm:$0xff]   ;;  %v14958_v17 = vld [vmem:[%s15806_s22 + $0xd40] sm:$0xff]  }
 0x1bd   : > { %v13271_v23 = vpop.f32.mrb[19].mxu1  ;;  %13571 = vmatprep.subr.bf16.mxu1 %v14918_v9  ;;  %v14960_v21 = vld [vmem:[%s15806_s22 + $0xd00] sm:$0xff]  }
 0x1be   : > { %v16295_v25 = vadd.f32 %v13269_v20, %v9714_v19  ;;  %13550 = vmatpush3.bf16.msra.mxu0 %v14919_v11  ;;  %v2612_v11 = vcombine.high %v2604_v3, %v2604_v3  ;;  %v2613_v18 = vcombine.high %v16335_v12, %v16335_v12  ;;  %v14959_v19 = vld [vmem:[%s15806_s22 + $0xdc0] sm:$0xff]  }
 0x1bf   : > { %13551 = vmatprep.subr.bf16.mxu0 %v14921_v16  ;;  %v2620_v16 = vrot.slane %v2604_v3, %v15863_v42  ;;  %v14961_v23 = vld [vmem:[%s15806_s22 + $0xd80] sm:$0xff]   ;;  %v2627_v3 = vrot.slane %v16335_v12, %v15863_v42  ;;  %v14998_v12 = vld [vmem:[%s15806_s22 + $0xe88] sm:$0xff]  }
 0x1c0   : > { %13572 = vmatpush3.bf16.msra.mxu1 %v14920_v15  ;;  %v2634_v15 = vrot.slane %v2612_v11, %v15863_v42  ;;  %v14991_v4 = vld [vmem:[%s15806_s22 + $0xe40] sm:$0xff]   ;;  %v14997_v11 = vld [vmem:[%s15806_s22 + $0xe08] sm:$0xff]  }
 0x1c1   : > { %13573 = vmatprep.subr.bf16.mxu1 %v14922_v22  ;;  %v2641_v22 = vrot.slane %v2613_v18, %v15863_v42  ;;  %v15004_v18 = vld [vmem:[%s15806_s22 + $0xed8] sm:$0xff]  }
 0x1c2   : > { %13552 = vmatpush3.bf16.msra.mxu0 %v14923_v24  ;;  %v2644_v20 = vcombine.high %v2634_v15, %v2634_v15  ;;  %v2642_v24 = vcombine.high %v2620_v16, %v2620_v16 }
 0x1c3   : > { %13581 = vmatprep.subr.bf16.mxu0 %v14926_v28  ;;  %v14964_v28 = vld [vmem:[%s15806_s22 + $0xd08] sm:$0xff]  }
 0x1c4   : > { %13574 = vmatpush3.bf16.msra.mxu1 %v14924_v26  ;;  %v14963_v26 = vld [vmem:[%s15806_s22 + $0xdc8] sm:$0xff]  }
 0x1c5   : > { %10272 = vmatmul.mubr.bf16.vlgmr.msra.gmra.mrb[44].mxu0 %v2578_v27  ;;  %13603 = vmatprep.subr.bf16.mxu1 %v14927_v29  ;;  %v2645_v27 = vcombine.high %v2641_v22, %v2641_v22  ;;  %v14965_v29 = vld [vmem:[%s15806_s22 + $0xd88] sm:$0xff]  }
 0x1c6   : > { %13582 = vmatpush3.bf16.msra.mxu0 %v14928_v30  ;;  %10351 = vmatprep.mubr.bf16.mxu0 %v2634_v15  ;;  %v14966_v30 = vld [vmem:[%s15806_s22 + $0xd50] sm:$0xff]  }
 0x1c7   : > { %10312 = vmatmul.mubr.bf16.vlgmr.msra.gmra.mrb[44].mxu1 %v2594_v32  ;;  %13583 = vmatprep.subr.bf16.mxu0 %v14930_v33  ;;  %v14968_v32 = vld [vmem:[%s15806_s22 + $0xd10] sm:$0xff]  }
 0x1c8   : > { %13604 = vmatpush3.bf16.msra.mxu1 %v14929_v31  ;;  %10391 = vmatprep.mubr.bf16.mxu1 %v2644_v20  ;;  %v14967_v31 = vld [vmem:[%s15806_s22 + $0xdd0] sm:$0xff]   ;;  %v15006_v20 = vld [vmem:[%s15806_s22 + $0xe98] sm:$0xff]  }
 0x1c9   : > { %13605 = vmatprep.subr.bf16.mxu1 %v14931_v34  ;;  %v14969_v33 = vld [vmem:[%s15806_s22 + $0xd90] sm:$0xff]   ;;  %v14970_v34 = vld [vmem:[%s15806_s22 + $0xd58] sm:$0xff]  }
 0x1ca   : > { %13584 = vmatpush3.bf16.msra.mxu0 %v14932_v35  ;;  %v14971_v35 = vld [vmem:[%s15806_s22 + $0xdd8] sm:$0xff]   ;;  %v15001_v15 = vld [vmem:[%s15806_s22 + $0xe10] sm:$0xff]  }
 0x1cb   : > { %13585 = vmatprep.subr.bf16.mxu0 %v14934_v37  ;;  %v14973_v37 = vld [vmem:[%s15806_s22 + $0xd98] sm:$0xff]  }
 0x1cc   : > { %13606 = vmatpush3.bf16.msra.mxu1 %v14933_v36  ;;  %v14972_v36 = vld [vmem:[%s15806_s22 + $0xd18] sm:$0xff]  }
 0x1cd   : > { %13607 = vmatprep.subr.bf16.mxu1 %v14935_v38  ;;  %v14974_v38 = vld [vmem:[%s15806_s22 + $0xd60] sm:$0xff]  }
 0x1ce   : > { %13586 = vmatpush3.bf16.msra.mxu0 %v14936_v39  ;;  %v14975_v39 = vld [vmem:[%s15806_s22 + $0xde0] sm:$0xff]  }
 0x1cf   : > { %13587 = vmatprep.subr.bf16.mxu0 %v14938_v41  ;;  %v14977_v41 = vld [vmem:[%s15806_s22 + $0xda0] sm:$0xff]  }
 0x1d0   : > { %13608 = vmatpush3.bf16.msra.mxu1 %v14937_v40  ;;  %v14976_v40 = vld [vmem:[%s15806_s22 + $0xd20] sm:$0xff]  }
 0x1d1   : > { %13609 = vmatprep.subr.bf16.mxu1 %v14939_v43  ;;  %v14978_v43 = vld [vmem:[%s15806_s22 + $0xd68] sm:$0xff]  }
 0x1d2   : > { %13588 = vmatpush3.bf16.msra.mxu0 %v14940_v44  ;;  %v14979_v44 = vld [vmem:[%s15806_s22 + $0xde8] sm:$0xff]  }
 0x1d3   : > { %13589 = vmatprep.subr.bf16.mxu0 %v14942_v46  ;;  %v14981_v46 = vld [vmem:[%s15806_s22 + $0xda8] sm:$0xff]  }
 0x1d4   : > { %13610 = vmatpush3.bf16.msra.mxu1 %v14941_v45  ;;  %v14980_v45 = vld [vmem:[%s15806_s22 + $0xd28] sm:$0xff]  }
 0x1d5   : > { %13611 = vmatprep.subr.bf16.mxu1 %v14943_v47  ;;  %v14982_v47 = vld [vmem:[%s15806_s22 + $0xd70] sm:$0xff]  }
 0x1d6   : > { %13590 = vmatpush3.bf16.msra.mxu0 %v14944_v48 }
 0x1d7   : > { %13591 = vmatprep.subr.bf16.mxu0 %v14946_v50 }
 0x1d8   : > { %13612 = vmatpush3.bf16.msra.mxu1 %v14945_v49  ;;  %v13289_v56 = vpop.f32.mrb[20].mxu0  ;;  %v14983_v49 = vld [vmem:[%s15806_s22 + $0xdf0] sm:$0xff]  }
 0x1d9   : > { %v13290_v58 = vpop.f32.mrb[21].mxu0  ;;  %13613 = vmatprep.subr.bf16.mxu1 %v14947_v51  ;;  %v14984_v51 = vld [vmem:[%s15806_s22 + $0xd30] sm:$0xff]  }
 0x1da   : > { %v13311_v60 = vpop.f32.mrb[20].mxu1  ;;  %v13291_v55 = vadd.f32 %v13290_v58, %v13289_v56  ;;  %v13292_v61 = vpop.f32.mrb[22].mxu0  ;;  %13592 = vmatpush3.bf16.msra.mxu0 %v14948_v52  ;;  %v14985_v56 = vld [vmem:[%s15806_s22 + $0xdb0] sm:$0xff]  }
 0x1db   : > { %v13312_v1 = vpop.f32.mrb[21].mxu1  ;;  %v13293_v2 = vpop.f32.mrb[23].mxu0  ;;  %13593 = vmatprep.subr.bf16.mxu0 %v14950_v54 }
 0x1dc   : > { %v9794_v5 = vadd.f32 %v13291_v55, %v16295_v25  ;;  %v13313_v6 = vadd.f32 %v13312_v1, %v13311_v60  ;;  %v13314_v7 = vpop.f32.mrb[22].mxu1  ;;  %13614 = vmatpush3.bf16.msra.mxu1 %v14949_v53  ;;  %v14962_v25 = vld [vmem:[%s15806_s22 + $0xd48] sm:$0xff]   ;;  %v14989_v2 = vld [vmem:[%s15806_s22 + $0xdb8] sm:$0xff]  }
 0x1dd   : > { %v13315_v9 = vpop.f32.mrb[23].mxu1  ;;  %13615 = vmatprep.subr.bf16.mxu1 %v14951_v57  ;;  %v14986_v57 = vld [vmem:[%s15806_s22 + $0xd78] sm:$0xff]   ;;  %v14994_v7 = vld [vmem:[%s15806_s22 + $0xe80] sm:$0xff]  }
 0x1de   : > { %v16337_v13 = vadd.f32 %v13313_v6, %v9794_v5  ;;  %13594 = vmatpush3.bf16.msra.mxu0 %v14952_v59  ;;  %v14992_v5 = vld [vmem:[%s15806_s22 + $0xec0] sm:$0xff]   ;;  %v14995_v9 = vld [vmem:[%s15806_s22 + $0xe48] sm:$0xff]  }
 0x1df   : > { %13595 = vmatprep.subr.bf16.mxu0 %v14954_v63  ;;  %v14993_v6 = vld [vmem:[%s15806_s22 + $0xe00] sm:$0xff]  }
 0x1e0   : > { %13616 = vmatpush3.bf16.msra.mxu1 %v14953_v62  ;;  %v14987_v62 = vld [vmem:[%s15806_s22 + $0xdf8] sm:$0xff]  }
 0x1e1   : > { %13617 = vmatprep.subr.bf16.mxu1 %v14955_v8  ;;  %v2643_v8 = vcombine.high %v2627_v3, %v2627_v3 }
 0x1e2   : > { %13596 = vmatpush3.bf16.msra.mxu0 %v14956_v10  ;;  %v14996_v10 = vld [vmem:[%s15806_s22 + $0xec8] sm:$0xff]  }
 0x1e3   : > { %13625 = vmatprep.subr.bf16.mxu0 %v14958_v17  ;;  %v15003_v17 = vld [vmem:[%s15806_s22 + $0xe58] sm:$0xff]  }
 0x1e4   : > { %13618 = vmatpush3.bf16.msra.mxu1 %v14957_v14  ;;  %v15000_v14 = vld [vmem:[%s15806_s22 + $0xed0] sm:$0xff]  }
 0x1e5   : > { %10352 = vmatmul.mubr.bf16.vlgmr.msra.gmra.mrb[48].mxu0 %v2620_v16  ;;  %13647 = vmatprep.subr.bf16.mxu1 %v14959_v19  ;;  %v15002_v16 = vld [vmem:[%s15806_s22 + $0xe90] sm:$0xff]   ;;  %v15005_v19 = vld [vmem:[%s15806_s22 + $0xe18] sm:$0xff]  }
 0x1e6   : > { %13626 = vmatpush3.bf16.msra.mxu0 %v14960_v21  ;;  %10431 = vmatprep.mubr.bf16.mxu0 %v2641_v22  ;;  %v15007_v21 = vld [vmem:[%s15806_s22 + $0xe60] sm:$0xff]  }
 0x1e7   : > { %10392 = vmatmul.mubr.bf16.vlgmr.msra.gmra.mrb[48].mxu1 %v2642_v24  ;;  %13627 = vmatprep.subr.bf16.mxu0 %v14962_v25  ;;  %v15008_v22 = vld [vmem:[%s15806_s22 + $0xee0] sm:$0xff]   ;;  %v15011_v25 = vld [vmem:[%s15806_s22 + $0xe68] sm:$0xff]  }
 0x1e8   : > { %13648 = vmatpush3.bf16.msra.mxu1 %v14961_v23  ;;  %10471 = vmatprep.mubr.bf16.mxu1 %v2645_v27  ;;  %v15009_v23 = vld [vmem:[%s15806_s22 + $0xe20] sm:$0xff]   ;;  %v15013_v27 = vld [vmem:[%s15806_s22 + $0xe28] sm:$0xff]  }
 0x1e9   : > { %13649 = vmatprep.subr.bf16.mxu1 %v14963_v26  ;;  %v15010_v24 = vld [vmem:[%s15806_s22 + $0xea0] sm:$0xff]   ;;  %v15012_v26 = vld [vmem:[%s15806_s22 + $0xee8] sm:$0xff]  }
 0x1ea   : > { %13628 = vmatpush3.bf16.msra.mxu0 %v14964_v28  ;;  %v15014_v28 = vld [vmem:[%s15806_s22 + $0xea8] sm:$0xff]  }
 0x1eb   : > { %13629 = vmatprep.subr.bf16.mxu0 %v14966_v30 }
 0x1ec   : > { %13650 = vmatpush3.bf16.msra.mxu1 %v14965_v29  ;;  %v15015_v29 = vld [vmem:[%s15806_s22 + $0xe70] sm:$0xff]  }
 0x1ed   : > { %13651 = vmatprep.subr.bf16.mxu1 %v14967_v31  ;;  %v15016_v31 = vld [vmem:[%s15806_s22 + $0xef0] sm:$0xff]  }
 0x1ee   : > { %13630 = vmatpush3.bf16.msra.mxu0 %v14968_v32 }
 0x1ef   : > { %13631 = vmatprep.subr.bf16.mxu0 %v14970_v34 }
 0x1f0   : > { %13652 = vmatpush3.bf16.msra.mxu1 %v14969_v33  ;;  %v15017_v33 = vld [vmem:[%s15806_s22 + $0xe30] sm:$0xff]  }
 0x1f1   : > { %13653 = vmatprep.subr.bf16.mxu1 %v14971_v35 }
 0x1f2   : > { %13632 = vmatpush3.bf16.msra.mxu0 %v14972_v36 }
 0x1f3   : > { %13633 = vmatprep.subr.bf16.mxu0 %v14974_v38  ;;  %v15019_v38 = vld [vmem:[%s15806_s22 + $0xe78] sm:$0xff]  }
 0x1f4   : > { %13654 = vmatpush3.bf16.msra.mxu1 %v14973_v37  ;;  %v15018_v37 = vld [vmem:[%s15806_s22 + $0xeb0] sm:$0xff]  }
 0x1f5   : > { %13655 = vmatprep.subr.bf16.mxu1 %v14975_v39 }
 0x1f6   : > { %13634 = vmatpush3.bf16.msra.mxu0 %v14976_v40 }
 0x1f7   : > { %13635 = vmatprep.subr.bf16.mxu0 %v14978_v43 }
 0x1f8   : > { %13656 = vmatpush3.bf16.msra.mxu1 %v14977_v41  ;;  %v13333_v48 = vpop.f32.mrb[24].mxu0  ;;  %v15020_v41 = vld [vmem:[%s15806_s22 + $0xef8] sm:$0xff]  }
 0x1f9   : > { %v13334_v50 = vpop.f32.mrb[25].mxu0  ;;  %13657 = vmatprep.subr.bf16.mxu1 %v14979_v44 }
 0x1fa   : > { %v13355_v52 = vpop.f32.mrb[24].mxu1  ;;  %v13335_v53 = vadd.f32 %v13334_v50, %v13333_v48  ;;  %v13336_v54 = vpop.f32.mrb[26].mxu0  ;;  %13636 = vmatpush3.bf16.msra.mxu0 %v14980_v45  ;;  %v15021_v48 = vld [vmem:[%s15806_s22 + $0xe38] sm:$0xff]  }
 0x1fb   : > { %v13356_v58 = vpop.f32.mrb[25].mxu1  ;;  %v13337_v59 = vpop.f32.mrb[27].mxu0  ;;  %13637 = vmatprep.subr.bf16.mxu0 %v14982_v47 }
 0x1fc   : > { %v9874_v60 = vadd.f32 %v13335_v53, %v16337_v13  ;;  %v13357_v55 = vadd.f32 %v13356_v58, %v13355_v52  ;;  %v13358_v61 = vpop.f32.mrb[26].mxu1  ;;  %13658 = vmatpush3.bf16.msra.mxu1 %v14981_v46  ;;  %v14999_v13 = vld [vmem:[%s15806_s22 + $0xe50] sm:$0xff]   ;;  %v230_v46 = vld [vmem:[%s15819_s26 + $0x38] sm:$0xff]  ;;  %v15024_v58 = vld [vmem:[%s15806_s22 + $0xfc0] sm:$0xff]  }
 0x1fd   : > { %v13359_v63 = vpop.f32.mrb[27].mxu1  ;;  %13659 = vmatprep.subr.bf16.mxu1 %v14983_v49  ;;  %v2653_v49 = vrot.slane %v230_v46, %v15863_v42  ;;  %v2646_v50 = vcombine.high %v230_v46, %v230_v46  ;;  %v15022_v52 = vld [vmem:[%s15806_s22 + $0xeb8] sm:$0xff]   ;;  %v15026_v61 = vld [vmem:[%s15806_s22 + $0xf80] sm:$0xff]  }
 0x1fe   : > { %v16377_v1 = vadd.f32 %v13357_v55, %v9874_v60  ;;  %13638 = vmatpush3.bf16.msra.mxu0 %v14984_v51  ;;  %v15025_v60 = vld [vmem:[%s15806_s22 + $0xf00] sm:$0xff]  }
 0x1ff   : > { %13639 = vmatprep.subr.bf16.mxu0 %v14986_v57  ;;  %v2661_v53 = vcombine.high %v2653_v49, %v2653_v49  ;;  %v2669_v54 = vrot.slane %v2653_v49, %v15863_v42  ;;  %v16422_v57 = vrot.slane %v2646_v50, %v15863_v42  ;;  %v15058_v46 = vld [vmem:[%s15806_s22 + $0x1000] sm:$0xff]   ;;  %v15060_v49 = vld [vmem:[%s15806_s22 + $0x1048] sm:$0xff]  }
 0x200   : > { %13660 = vmatpush3.bf16.msra.mxu1 %v14985_v56  ;;  %v15023_v56 = vld [vmem:[%s15806_s22 + $0xf40] sm:$0xff]   ;;  %v15061_v50 = vld [vmem:[%s15806_s22 + $0x10c8] sm:$0xff]  }
 0x201   : > { %13661 = vmatprep.subr.bf16.mxu1 %v14987_v62  ;;  %v2683_v59 = vrot.slane %v2661_v53, %v15863_v42  ;;  %v2662_v55 = vcombine.high %v16422_v57, %v16422_v57  ;;  %v2691_v63 = vcombine.high %v2669_v54, %v2669_v54  ;;  %v15064_v53 = vld [vmem:[%s15806_s22 + $0x1050] sm:$0xff]  }
 0x202   : > { %13640 = vmatpush3.bf16.msra.mxu0 %v14988_v0  ;;  %v15027_v0 = vld [vmem:[%s15806_s22 + $0xf48] sm:$0xff]  }
 0x203   : > { %13669 = vmatprep.subr.bf16.mxu0 %v14991_v4  ;;  %v2693_v62 = vcombine.high %v2683_v59, %v2683_v59 }
 0x204   : > { %13662 = vmatpush3.bf16.msra.mxu1 %v14989_v2  ;;  %v15028_v2 = vld [vmem:[%s15806_s22 + $0xfc8] sm:$0xff]  }
 0x205   : > { %10432 = vmatmul.mubr.bf16.vlgmr.msra.gmra.mrb[52].mxu0 %v2627_v3  ;;  %13691 = vmatprep.subr.bf16.mxu1 %v14992_v5  ;;  %v15029_v3 = vld [vmem:[%s15806_s22 + $0xf08] sm:$0xff]  }
 0x206   : > { %13670 = vmatpush3.bf16.msra.mxu0 %v14993_v6  ;;  %10511 = vmatprep.mubr.bf16.mxu0 %v2683_v59  ;;  %v15030_v5 = vld [vmem:[%s15806_s22 + $0xf88] sm:$0xff]   ;;  %v15031_v6 = vld [vmem:[%s15806_s22 + $0xf50] sm:$0xff]   ;;  %v15069_v59 = vld [vmem:[%s15806_s22 + $0x10d8] sm:$0xff]  }
 0x207   : > { %10472 = vmatmul.mubr.bf16.vlgmr.msra.gmra.mrb[52].mxu1 %v2643_v8  ;;  %13671 = vmatprep.subr.bf16.mxu0 %v14995_v9  ;;  %v15033_v8 = vld [vmem:[%s15806_s22 + $0xf10] sm:$0xff]  }
 0x208   : > { %13692 = vmatpush3.bf16.msra.mxu1 %v14994_v7  ;;  %10551 = vmatprep.mubr.bf16.mxu1 %v2693_v62  ;;  %v15032_v7 = vld [vmem:[%s15806_s22 + $0xfd0] sm:$0xff]   ;;  %v15073_v62 = vld [vmem:[%s15806_s22 + $0x10e0] sm:$0xff]  }
 0x209   : > { %13693 = vmatprep.subr.bf16.mxu1 %v14996_v10  ;;  %v15034_v9 = vld [vmem:[%s15806_s22 + $0xf90] sm:$0xff]   ;;  %v15035_v10 = vld [vmem:[%s15806_s22 + $0xf58] sm:$0xff]  }
 0x20a   : > { %13672 = vmatpush3.bf16.msra.mxu0 %v14997_v11  ;;  %v15036_v11 = vld [vmem:[%s15806_s22 + $0xfd8] sm:$0xff]  }
 0x20b   : > { %13673 = vmatprep.subr.bf16.mxu0 %v14999_v13  ;;  %v15038_v13 = vld [vmem:[%s15806_s22 + $0xf98] sm:$0xff]  }
 0x20c   : > { %13694 = vmatpush3.bf16.msra.mxu1 %v14998_v12  ;;  %v15037_v12 = vld [vmem:[%s15806_s22 + $0xf18] sm:$0xff]  }
 0x20d   : > { %13695 = vmatprep.subr.bf16.mxu1 %v15000_v14  ;;  %v15039_v14 = vld [vmem:[%s15806_s22 + $0xf60] sm:$0xff]  }
 0x20e   : > { %13674 = vmatpush3.bf16.msra.mxu0 %v15001_v15  ;;  %v15040_v15 = vld [vmem:[%s15806_s22 + $0xfe0] sm:$0xff]  }
 0x20f   : > { %13675 = vmatprep.subr.bf16.mxu0 %v15003_v17  ;;  %v15042_v17 = vld [vmem:[%s15806_s22 + $0xfa0] sm:$0xff]  }
 0x210   : > { %13696 = vmatpush3.bf16.msra.mxu1 %v15002_v16  ;;  %v15041_v16 = vld [vmem:[%s15806_s22 + $0xf20] sm:$0xff]  }
 0x211   : > { %13697 = vmatprep.subr.bf16.mxu1 %v15004_v18  ;;  %v15043_v18 = vld [vmem:[%s15806_s22 + $0xf68] sm:$0xff]  }
 0x212   : > { %13676 = vmatpush3.bf16.msra.mxu0 %v15005_v19  ;;  %v15044_v19 = vld [vmem:[%s15806_s22 + $0xfe8] sm:$0xff]  }
 0x213   : > { %13677 = vmatprep.subr.bf16.mxu0 %v15007_v21  ;;  %v15046_v21 = vld [vmem:[%s15806_s22 + $0xfa8] sm:$0xff]  }
 0x214   : > { %13698 = vmatpush3.bf16.msra.mxu1 %v15006_v20  ;;  %v15045_v20 = vld [vmem:[%s15806_s22 + $0xf28] sm:$0xff]  }
 0x215   : > { %13699 = vmatprep.subr.bf16.mxu1 %v15008_v22  ;;  %v15047_v22 = vld [vmem:[%s15806_s22 + $0xf70] sm:$0xff]  }
 0x216   : > { %13678 = vmatpush3.bf16.msra.mxu0 %v15009_v23 }
 0x217   : > { %13679 = vmatprep.subr.bf16.mxu0 %v15011_v25 }
 0x218   : > { %13700 = vmatpush3.bf16.msra.mxu1 %v15010_v24  ;;  %v13377_v30 = vpop.f32.mrb[28].mxu0  ;;  %v15048_v24 = vld [vmem:[%s15806_s22 + $0xff0] sm:$0xff]  }
 0x219   : > { %v13378_v32 = vpop.f32.mrb[29].mxu0  ;;  %13701 = vmatprep.subr.bf16.mxu1 %v15012_v26  ;;  %v15049_v26 = vld [vmem:[%s15806_s22 + $0xf30] sm:$0xff]  }
 0x21a   : > { %v13399_v34 = vpop.f32.mrb[28].mxu1  ;;  %v13379_v35 = vadd.f32 %v13378_v32, %v13377_v30  ;;  %v13380_v36 = vpop.f32.mrb[30].mxu0  ;;  %13680 = vmatpush3.bf16.msra.mxu0 %v15013_v27  ;;  %v15050_v30 = vld [vmem:[%s15806_s22 + $0xfb0] sm:$0xff]  }
 0x21b   : > { %v13400_v39 = vpop.f32.mrb[29].mxu1  ;;  %v13381_v40 = vpop.f32.mrb[31].mxu0  ;;  %13681 = vmatprep.subr.bf16.mxu0 %v15015_v29 }
 0x21c   : > { %v9954_v43 = vadd.f32 %v13379_v35, %v16377_v1  ;;  %v13401_v44 = vadd.f32 %v13400_v39, %v13399_v34  ;;  %v13402_v45 = vpop.f32.mrb[30].mxu1  ;;  %13702 = vmatpush3.bf16.msra.mxu1 %v15014_v28  ;;  %v2690_v1 = vrot.slane %v2662_v55, %v15863_v42  ;;  %v15053_v39 = vld [vmem:[%s15806_s22 + $0xf38] sm:$0xff]  }
 0x21d   : > { %v13403_v47 = vpop.f32.mrb[31].mxu1  ;;  %13703 = vmatprep.subr.bf16.mxu1 %v15016_v31  ;;  %v15051_v31 = vld [vmem:[%s15806_s22 + $0xf78] sm:$0xff]   ;;  %v15057_v45 = vld [vmem:[%s15806_s22 + $0x10c0] sm:$0xff]  }
 0x21e   : > { %v16416_v51 = vadd.f32 %v13401_v44, %v9954_v43  ;;  %13682 = vmatpush3.bf16.msra.mxu0 %v15017_v33  ;;  %v2694_v4 = vcombine.high %v2690_v1, %v2690_v1  ;;  %v2676_v43 = vrot.slane %v16422_v57, %v15863_v42  ;;  %v15056_v44 = vld [vmem:[%s15806_s22 + $0x1040] sm:$0xff]   ;;  %v15067_v57 = vld [vmem:[%s15806_s22 + $0x1090] sm:$0xff]   ;;  %v15071_v55 = vld [vmem:[%s15806_s22 + $0x1098] sm:$0xff]  }
 0x21f   : > { %13683 = vmatprep.subr.bf16.mxu0 %v15019_v38  ;;  %v15059_v47 = vld [vmem:[%s15806_s22 + $0x1080] sm:$0xff]  }
 0x220   : > { %13704 = vmatpush3.bf16.msra.mxu1 %v15018_v37  ;;  %v15052_v37 = vld [vmem:[%s15806_s22 + $0xff8] sm:$0xff]  }
 0x221   : > { %13705 = vmatprep.subr.bf16.mxu1 %v15020_v41  ;;  %v15054_v41 = vld [vmem:[%s15806_s22 + $0xfb8] sm:$0xff]  }
 0x222   : > { %13684 = vmatpush3.bf16.msra.mxu0 %v15021_v48  ;;  %v2692_v48 = vcombine.high %v2676_v43, %v2676_v43 }
 0x223   : > { %13713 = vmatprep.subr.bf16.mxu0 %v15023_v56  ;;  %v15066_v56 = vld [vmem:[%s15806_s22 + $0x1010] sm:$0xff]  }
 0x224   : > { %13706 = vmatpush3.bf16.msra.mxu1 %v15022_v52  ;;  %v15063_v52 = vld [vmem:[%s15806_s22 + $0x1088] sm:$0xff]  }
 0x225   : > { %10512 = vmatmul.mubr.bf16.vlgmr.msra.gmra.mrb[56].mxu0 %v2669_v54  ;;  %13735 = vmatprep.subr.bf16.mxu1 %v15024_v58  ;;  %v15065_v54 = vld [vmem:[%s15806_s22 + $0x10d0] sm:$0xff]   ;;  %v15068_v58 = vld [vmem:[%s15806_s22 + $0x1058] sm:$0xff]  }
 0x226   : > { %13714 = vmatpush3.bf16.msra.mxu0 %v15025_v60  ;;  %10591 = vmatprep.mubr.bf16.mxu0 %v2690_v1  ;;  %v15070_v60 = vld [vmem:[%s15806_s22 + $0x1018] sm:$0xff]   ;;  %v15076_v1 = vld [vmem:[%s15806_s22 + $0x1068] sm:$0xff]  }
 0x227   : > { %10552 = vmatmul.mubr.bf16.vlgmr.msra.gmra.mrb[56].mxu1 %v2691_v63  ;;  %13715 = vmatprep.subr.bf16.mxu0 %v15027_v0  ;;  %v15074_v63 = vld [vmem:[%s15806_s22 + $0x1020] sm:$0xff]  }
 0x228   : > { %13736 = vmatpush3.bf16.msra.mxu1 %v15026_v61  ;;  %10631 = vmatprep.mubr.bf16.mxu1 %v2694_v4  ;;  %v15072_v61 = vld [vmem:[%s15806_s22 + $0x1060] sm:$0xff]   ;;  %v15079_v4 = vld [vmem:[%s15806_s22 + $0x10a8] sm:$0xff]  }
 0x229   : > { %13737 = vmatprep.subr.bf16.mxu1 %v15028_v2  ;;  %v15075_v0 = vld [vmem:[%s15806_s22 + $0x10a0] sm:$0xff]   ;;  %v15077_v2 = vld [vmem:[%s15806_s22 + $0x10e8] sm:$0xff]  }
 0x22a   : > { %13716 = vmatpush3.bf16.msra.mxu0 %v15029_v3  ;;  %v15078_v3 = vld [vmem:[%s15806_s22 + $0x1028] sm:$0xff]  }
 0x22b   : > { %13717 = vmatprep.subr.bf16.mxu0 %v15031_v6 }
 0x22c   : > { %13738 = vmatpush3.bf16.msra.mxu1 %v15030_v5  ;;  %v15080_v5 = vld [vmem:[%s15806_s22 + $0x1070] sm:$0xff]  }
 0x22d   : > { %13739 = vmatprep.subr.bf16.mxu1 %v15032_v7  ;;  %v15081_v7 = vld [vmem:[%s15806_s22 + $0x10f0] sm:$0xff]  }
 0x22e   : > { %13718 = vmatpush3.bf16.msra.mxu0 %v15033_v8 }
 0x22f   : > { %13719 = vmatprep.subr.bf16.mxu0 %v15035_v10 }
 0x230   : > { %13740 = vmatpush3.bf16.msra.mxu1 %v15034_v9  ;;  %v15082_v9 = vld [vmem:[%s15806_s22 + $0x1030] sm:$0xff]  }
 0x231   : > { %13741 = vmatprep.subr.bf16.mxu1 %v15036_v11 }
 0x232   : > { %13720 = vmatpush3.bf16.msra.mxu0 %v15037_v12 }
 0x233   : > { %13721 = vmatprep.subr.bf16.mxu0 %v15039_v14  ;;  %v15084_v14 = vld [vmem:[%s15806_s22 + $0x1078] sm:$0xff]  }
 0x234   : > { %13742 = vmatpush3.bf16.msra.mxu1 %v15038_v13  ;;  %v15083_v13 = vld [vmem:[%s15806_s22 + $0x10b0] sm:$0xff]  }
 0x235   : > { %13743 = vmatprep.subr.bf16.mxu1 %v15040_v15 }
 0x236   : > { %13722 = vmatpush3.bf16.msra.mxu0 %v15041_v16 }
 0x237   : > { %13723 = vmatprep.subr.bf16.mxu0 %v15043_v18 }
 0x238   : > { %13744 = vmatpush3.bf16.msra.mxu1 %v15042_v17  ;;  %v13421_v23 = vpop.f32.mrb[32].mxu0  ;;  %v15085_v17 = vld [vmem:[%s15806_s22 + $0x10f8] sm:$0xff]  }
 0x239   : > { %v13422_v25 = vpop.f32.mrb[33].mxu0  ;;  %13745 = vmatprep.subr.bf16.mxu1 %v15044_v19 }
 0x23a   : > { %v13443_v27 = vpop.f32.mrb[32].mxu1  ;;  %v13423_v28 = vadd.f32 %v13422_v25, %v13421_v23  ;;  %v13424_v29 = vpop.f32.mrb[34].mxu0  ;;  %13724 = vmatpush3.bf16.msra.mxu0 %v15045_v20  ;;  %v231_v23 = vld [vmem:[%s15819_s26 + $0x40] sm:$0xff]  ;;  %v15087_v25 = vld [vmem:[%s15806_s22 + $0x10b8] sm:$0xff]  }
 0x23b   : > { %v13444_v32 = vpop.f32.mrb[33].mxu1  ;;  %v13425_v33 = vpop.f32.mrb[35].mxu0  ;;  %13725 = vmatprep.subr.bf16.mxu0 %v15047_v22 }
 0x23c   : > { %v10034_v34 = vadd.f32 %v13423_v28, %v16416_v51  ;;  %v13445_v35 = vadd.f32 %v13444_v32, %v13443_v27  ;;  %v13446_v36 = vpop.f32.mrb[34].mxu1  ;;  %13746 = vmatpush3.bf16.msra.mxu1 %v15046_v21  ;;  %v15062_v51 = vld [vmem:[%s15806_s22 + $0x1008] sm:$0xff]   ;;  %v15086_v21 = vld [vmem:[%s15806_s22 + $0x1038] sm:$0xff]   ;;  %v2695_v27 = vcombine.high %v231_v23, %v231_v23  ;;  %v15088_v28 = vld [vmem:[%s15806_s22 + $0x1140] sm:$0xff]  }
 0x23d   : > { %v13447_v38 = vpop.f32.mrb[35].mxu1  ;;  %13747 = vmatprep.subr.bf16.mxu1 %v15048_v24  ;;  %v15090_v33 = vld [vmem:[%s15806_s22 + $0x1100] sm:$0xff]  }
 0x23e   : > { %v16459_v40 = vadd.f32 %v13445_v35, %v10034_v34  ;;  %13726 = vmatpush3.bf16.msra.mxu0 %v15049_v26  ;;  %v2702_v26 = vrot.slane %v231_v23, %v15863_v42  ;;  %v16505_v32 = vrot.slane %v2695_v27, %v15863_v42  ;;  %v15091_v35 = vld [vmem:[%s15806_s22 + $0x1180] sm:$0xff]   ;;  %v15092_v38 = vld [vmem:[%s15806_s22 + $0x1148] sm:$0xff]  }
 0x23f   : > { %13727 = vmatprep.subr.bf16.mxu0 %v15051_v31  ;;  %v15089_v31 = vld [vmem:[%s15806_s22 + $0x11c0] sm:$0xff]   ;;  %v15128_v27 = vld [vmem:[%s15806_s22 + $0x1288] sm:$0xff]  }
 0x240   : > { %13748 = vmatpush3.bf16.msra.mxu1 %v15050_v30  ;;  %v2710_v29 = vcombine.high %v2702_v26, %v2702_v26  ;;  %v2718_v30 = vrot.slane %v2702_v26, %v15863_v42  ;;  %v2711_v36 = vcombine.high %v16505_v32, %v16505_v32  ;;  %v15127_v26 = vld [vmem:[%s15806_s22 + $0x1208] sm:$0xff]  }
 0x241   : > { %13749 = vmatprep.subr.bf16.mxu1 %v15052_v37 }
 0x242   : > { %13728 = vmatpush3.bf16.msra.mxu0 %v15053_v39  ;;  %v2732_v34 = vrot.slane %v2710_v29, %v15863_v42  ;;  %v2740_v37 = vcombine.high %v2718_v30, %v2718_v30  ;;  %v15130_v29 = vld [vmem:[%s15806_s22 + $0x12d0] sm:$0xff]  }
 0x243   : > { %13757 = vmatprep.subr.bf16.mxu0 %v15056_v44  ;;  %v15095_v44 = vld [vmem:[%s15806_s22 + $0x1188] sm:$0xff]  }
 0x244   : > { %13750 = vmatpush3.bf16.msra.mxu1 %v15054_v41  ;;  %v2742_v39 = vcombine.high %v2732_v34, %v2732_v34  ;;  %v2739_v41 = vrot.slane %v2711_v36, %v15863_v42  ;;  %v15137_v36 = vld [vmem:[%s15806_s22 + $0x1260] sm:$0xff]  }
 0x245   : > { %10592 = vmatmul.mubr.bf16.vlgmr.msra.gmra.mrb[60].mxu0 %v2676_v43  ;;  %13779 = vmatprep.subr.bf16.mxu1 %v15057_v45  ;;  %v15094_v43 = vld [vmem:[%s15806_s22 + $0x1108] sm:$0xff]  }
 0x246   : > { %13758 = vmatpush3.bf16.msra.mxu0 %v15058_v46  ;;  %10671 = vmatprep.mubr.bf16.mxu0 %v2732_v34  ;;  %v2743_v45 = vcombine.high %v2739_v41, %v2739_v41  ;;  %v15096_v46 = vld [vmem:[%s15806_s22 + $0x1150] sm:$0xff]   ;;  %v15135_v34 = vld [vmem:[%s15806_s22 + $0x1218] sm:$0xff]  }
 0x247   : > { %10632 = vmatmul.mubr.bf16.vlgmr.msra.gmra.mrb[60].mxu1 %v2692_v48  ;;  %13759 = vmatprep.subr.bf16.mxu0 %v15060_v49  ;;  %v15098_v48 = vld [vmem:[%s15806_s22 + $0x1110] sm:$0xff]  }
 0x248   : > { %13780 = vmatpush3.bf16.msra.mxu1 %v15059_v47  ;;  %10711 = vmatprep.mubr.bf16.mxu1 %v2742_v39  ;;  %v15097_v47 = vld [vmem:[%s15806_s22 + $0x11d0] sm:$0xff]   ;;  %v15140_v39 = vld [vmem:[%s15806_s22 + $0x12a0] sm:$0xff]  }
 0x249   : > { %13781 = vmatprep.subr.bf16.mxu1 %v15061_v50  ;;  %v15099_v49 = vld [vmem:[%s15806_s22 + $0x1190] sm:$0xff]   ;;  %v15100_v50 = vld [vmem:[%s15806_s22 + $0x1158] sm:$0xff]  }
 0x24a   : > { %13760 = vmatpush3.bf16.msra.mxu0 %v15062_v51  ;;  %v15101_v51 = vld [vmem:[%s15806_s22 + $0x11d8] sm:$0xff]  }
 0x24b   : > { %13761 = vmatprep.subr.bf16.mxu0 %v15064_v53  ;;  %v15103_v53 = vld [vmem:[%s15806_s22 + $0x1198] sm:$0xff]  }
 0x24c   : > { %13782 = vmatpush3.bf16.msra.mxu1 %v15063_v52  ;;  %v15102_v52 = vld [vmem:[%s15806_s22 + $0x1118] sm:$0xff]  }
 0x24d   : > { %13783 = vmatprep.subr.bf16.mxu1 %v15065_v54  ;;  %v15104_v54 = vld [vmem:[%s15806_s22 + $0x1160] sm:$0xff]  }
 0x24e   : > { %13762 = vmatpush3.bf16.msra.mxu0 %v15066_v56  ;;  %v15105_v56 = vld [vmem:[%s15806_s22 + $0x11e0] sm:$0xff]  }
 0x24f   : > { %13763 = vmatprep.subr.bf16.mxu0 %v15068_v58  ;;  %v15107_v58 = vld [vmem:[%s15806_s22 + $0x11a0] sm:$0xff]  }
 0x250   : > { %13784 = vmatpush3.bf16.msra.mxu1 %v15067_v57  ;;  %v15106_v57 = vld [vmem:[%s15806_s22 + $0x1120] sm:$0xff]  }
 0x251   : > { %13785 = vmatprep.subr.bf16.mxu1 %v15069_v59  ;;  %v15108_v59 = vld [vmem:[%s15806_s22 + $0x1168] sm:$0xff]  }
 0x252   : > { %13764 = vmatpush3.bf16.msra.mxu0 %v15070_v60  ;;  %v15109_v60 = vld [vmem:[%s15806_s22 + $0x11e8] sm:$0xff]  }
 0x253   : > { %13765 = vmatprep.subr.bf16.mxu0 %v15072_v61  ;;  %v15111_v61 = vld [vmem:[%s15806_s22 + $0x11a8] sm:$0xff]  }
 0x254   : > { %13786 = vmatpush3.bf16.msra.mxu1 %v15071_v55  ;;  %v15110_v55 = vld [vmem:[%s15806_s22 + $0x1128] sm:$0xff]  }
 0x255   : > { %13787 = vmatprep.subr.bf16.mxu1 %v15073_v62  ;;  %v15112_v62 = vld [vmem:[%s15806_s22 + $0x1170] sm:$0xff]  }
 0x256   : > { %13766 = vmatpush3.bf16.msra.mxu0 %v15074_v63 }
 0x257   : > { %13767 = vmatprep.subr.bf16.mxu0 %v15076_v1 }
 0x258   : > { %13788 = vmatpush3.bf16.msra.mxu1 %v15075_v0  ;;  %v13465_v6 = vpop.f32.mrb[36].mxu0  ;;  %v15113_v0 = vld [vmem:[%s15806_s22 + $0x11f0] sm:$0xff]  }
 0x259   : > { %v13466_v8 = vpop.f32.mrb[37].mxu0  ;;  %13789 = vmatprep.subr.bf16.mxu1 %v15077_v2  ;;  %v15114_v2 = vld [vmem:[%s15806_s22 + $0x1130] sm:$0xff]  }
 0x25a   : > { %v13487_v10 = vpop.f32.mrb[36].mxu1  ;;  %v13467_v11 = vadd.f32 %v13466_v8, %v13465_v6  ;;  %v13468_v12 = vpop.f32.mrb[38].mxu0  ;;  %13768 = vmatpush3.bf16.msra.mxu0 %v15078_v3  ;;  %v15115_v6 = vld [vmem:[%s15806_s22 + $0x11b0] sm:$0xff]  }
 0x25b   : > { %v13488_v15 = vpop.f32.mrb[37].mxu1  ;;  %v13469_v16 = vpop.f32.mrb[39].mxu0  ;;  %13769 = vmatprep.subr.bf16.mxu0 %v15080_v5 }
 0x25c   : > { %v10114_v18 = vadd.f32 %v13467_v11, %v16459_v40  ;;  %v13489_v19 = vadd.f32 %v13488_v15, %v13487_v10  ;;  %v13490_v20 = vpop.f32.mrb[38].mxu1  ;;  %13790 = vmatpush3.bf16.msra.mxu1 %v15079_v4  ;;  %v15093_v40 = vld [vmem:[%s15806_s22 + $0x11c8] sm:$0xff]   ;;  %v15118_v15 = vld [vmem:[%s15806_s22 + $0x1138] sm:$0xff]  }
 0x25d   : > { %v13491_v22 = vpop.f32.mrb[39].mxu1  ;;  %13791 = vmatprep.subr.bf16.mxu1 %v15081_v7  ;;  %v15116_v7 = vld [vmem:[%s15806_s22 + $0x1178] sm:$0xff]   ;;  %v15122_v20 = vld [vmem:[%s15806_s22 + $0x12c0] sm:$0xff]  }
 0x25e   : > { %v16497_v24 = vadd.f32 %v13489_v19, %v10114_v18  ;;  %13770 = vmatpush3.bf16.msra.mxu0 %v15082_v9  ;;  %v2725_v18 = vrot.slane %v16505_v32, %v15863_v42  ;;  %v15121_v19 = vld [vmem:[%s15806_s22 + $0x1240] sm:$0xff]   ;;  %v15133_v32 = vld [vmem:[%s15806_s22 + $0x1258] sm:$0xff]  }
 0x25f   : > { %13771 = vmatprep.subr.bf16.mxu0 %v15084_v14  ;;  %v15124_v22 = vld [vmem:[%s15806_s22 + $0x1280] sm:$0xff]  }
 0x260   : > { %13792 = vmatpush3.bf16.msra.mxu1 %v15083_v13  ;;  %v15117_v13 = vld [vmem:[%s15806_s22 + $0x11f8] sm:$0xff]   ;;  %v2741_v23 = vcombine.high %v2725_v18, %v2725_v18 }
 0x261   : > { %13793 = vmatprep.subr.bf16.mxu1 %v15085_v17  ;;  %v15119_v17 = vld [vmem:[%s15806_s22 + $0x11b8] sm:$0xff]  }
 0x262   : > { %13772 = vmatpush3.bf16.msra.mxu0 %v15086_v21  ;;  %v15123_v21 = vld [vmem:[%s15806_s22 + $0x1200] sm:$0xff]  }
 0x263   : > { %13801 = vmatprep.subr.bf16.mxu0 %v15088_v28  ;;  %v15129_v28 = vld [vmem:[%s15806_s22 + $0x1250] sm:$0xff]  }
 0x264   : > { %13794 = vmatpush3.bf16.msra.mxu1 %v15087_v25  ;;  %v15126_v25 = vld [vmem:[%s15806_s22 + $0x12c8] sm:$0xff]  }
 0x265   : > { %10672 = vmatmul.mubr.bf16.vlgmr.msra.gmra.mrb[64].mxu0 %v2718_v30  ;;  %13823 = vmatprep.subr.bf16.mxu1 %v15089_v31  ;;  %v15131_v30 = vld [vmem:[%s15806_s22 + $0x1210] sm:$0xff]  }
 0x266   : > { %13802 = vmatpush3.bf16.msra.mxu0 %v15090_v33  ;;  %10751 = vmatprep.mubr.bf16.mxu0 %v2739_v41  ;;  %v15132_v31 = vld [vmem:[%s15806_s22 + $0x1290] sm:$0xff]   ;;  %v15134_v33 = vld [vmem:[%s15806_s22 + $0x12d8] sm:$0xff]   ;;  %v15142_v41 = vld [vmem:[%s15806_s22 + $0x12e8] sm:$0xff]  }
 0x267   : > { %10712 = vmatmul.mubr.bf16.vlgmr.msra.gmra.mrb[64].mxu1 %v2740_v37  ;;  %13803 = vmatprep.subr.bf16.mxu0 %v15092_v38  ;;  %v15138_v37 = vld [vmem:[%s15806_s22 + $0x12e0] sm:$0xff]  }
 0x268   : > { %13824 = vmatpush3.bf16.msra.mxu1 %v15091_v35  ;;  %10791 = vmatprep.mubr.bf16.mxu1 %v2743_v45  ;;  %v15136_v35 = vld [vmem:[%s15806_s22 + $0x1298] sm:$0xff]   ;;  %v15139_v38 = vld [vmem:[%s15806_s22 + $0x1220] sm:$0xff]   ;;  %v15145_v45 = vld [vmem:[%s15806_s22 + $0x1270] sm:$0xff]  }
 0x269   : > { %13825 = vmatprep.subr.bf16.mxu1 %v15093_v40  ;;  %v15141_v40 = vld [vmem:[%s15806_s22 + $0x1268] sm:$0xff]  }
 0x26a   : > { %13804 = vmatpush3.bf16.msra.mxu0 %v15094_v43  ;;  %v15143_v43 = vld [vmem:[%s15806_s22 + $0x1228] sm:$0xff]  }
 0x26b   : > { %13805 = vmatprep.subr.bf16.mxu0 %v15096_v46 }
 0x26c   : > { %13826 = vmatpush3.bf16.msra.mxu1 %v15095_v44  ;;  %v15144_v44 = vld [vmem:[%s15806_s22 + $0x12a8] sm:$0xff]  }
 0x26d   : > { %13827 = vmatprep.subr.bf16.mxu1 %v15097_v47  ;;  %v15146_v47 = vld [vmem:[%s15806_s22 + $0x12f0] sm:$0xff]  }
 0x26e   : > { %13806 = vmatpush3.bf16.msra.mxu0 %v15098_v48 }
 0x26f   : > { %13807 = vmatprep.subr.bf16.mxu0 %v15100_v50 }
 0x270   : > { %13828 = vmatpush3.bf16.msra.mxu1 %v15099_v49  ;;  %v15147_v49 = vld [vmem:[%s15806_s22 + $0x1230] sm:$0xff]  }
 0x271   : > { %13829 = vmatprep.subr.bf16.mxu1 %v15101_v51 }
 0x272   : > { %13808 = vmatpush3.bf16.msra.mxu0 %v15102_v52 }
 0x273   : > { %13809 = vmatprep.subr.bf16.mxu0 %v15104_v54  ;;  %v15149_v54 = vld [vmem:[%s15806_s22 + $0x1278] sm:$0xff]  }
 0x274   : > { %13830 = vmatpush3.bf16.msra.mxu1 %v15103_v53  ;;  %v15148_v53 = vld [vmem:[%s15806_s22 + $0x12b0] sm:$0xff]  }
 0x275   : > { %13831 = vmatprep.subr.bf16.mxu1 %v15105_v56 }
 0x276   : > { %13810 = vmatpush3.bf16.msra.mxu0 %v15106_v57 }
 0x277   : > { %13811 = vmatprep.subr.bf16.mxu0 %v15108_v59 }
 0x278   : > { %13832 = vmatpush3.bf16.msra.mxu1 %v15107_v58  ;;  %v13509_v63 = vpop.f32.mrb[40].mxu0 }
 0x279   : > { %v13510_v1 = vpop.f32.mrb[41].mxu0  ;;  %13833 = vmatprep.subr.bf16.mxu1 %v15109_v60 }
 0x27a   : > { %v13531_v3 = vpop.f32.mrb[40].mxu1  ;;  %v13511_v4 = vadd.f32 %v13510_v1, %v13509_v63  ;;  %v13512_v5 = vpop.f32.mrb[42].mxu0  ;;  %13812 = vmatpush3.bf16.msra.mxu0 %v15110_v55  ;;  %v15150_v55 = vld [vmem:[%s15806_s22 + $0x12f8] sm:$0xff]  }
 0x27b   : > { %v13532_v8 = vpop.f32.mrb[41].mxu1  ;;  %v13513_v9 = vpop.f32.mrb[43].mxu0  ;;  %13813 = vmatprep.subr.bf16.mxu0 %v15112_v62  ;;  %v15151_v62 = vld [vmem:[%s15806_s22 + $0x1238] sm:$0xff]  }
 0x27c   : > { %v10194_v10 = vadd.f32 %v13511_v4, %v16497_v24  ;;  %v13533_v11 = vadd.f32 %v13532_v8, %v13531_v3  ;;  %v13534_v12 = vpop.f32.mrb[42].mxu1  ;;  %13834 = vmatpush3.bf16.msra.mxu1 %v15111_v61  ;;  %v15125_v24 = vld [vmem:[%s15806_s22 + $0x1248] sm:$0xff]   ;;  %v15152_v4 = vld [vmem:[%s15806_s22 + $0x12b8] sm:$0xff]  }
 0x27d   : > { %v13535_v14 = vpop.f32.mrb[43].mxu1  ;;  %13835 = vmatprep.subr.bf16.mxu1 %v15113_v0  ;;  %v232_v0 = vld [vmem:[%s15819_s26 + $0x48] sm:$0xff] }
 0x27e   : > { %v16541_v16 = vadd.f32 %v13533_v11, %v10194_v10  ;;  %13814 = vmatpush3.bf16.msra.mxu0 %v15114_v2  ;;  %v2751_v1 = vrot.slane %v232_v0, %v15863_v42  ;;  %v15153_v2 = vld [vmem:[%s15806_s22 + $0x1340] sm:$0xff]   ;;  %v2744_v3 = vcombine.high %v232_v0, %v232_v0 }
 0x27f   : > { %13815 = vmatprep.subr.bf16.mxu0 %v15116_v7  ;;  %v15154_v7 = vld [vmem:[%s15806_s22 + $0x13c0] sm:$0xff]  }
 0x280   : > { %13836 = vmatpush3.bf16.msra.mxu1 %v15115_v6  ;;  %v2759_v5 = vcombine.high %v2751_v1, %v2751_v1  ;;  %v2767_v6 = vrot.slane %v2751_v1, %v15863_v42  ;;  %v16587_v8 = vrot.slane %v2744_v3, %v15863_v42  ;;  %v15155_v10 = vld [vmem:[%s15806_s22 + $0x1300] sm:$0xff]   ;;  %v15191_v1 = vld [vmem:[%s15806_s22 + $0x14c8] sm:$0xff]   ;;  %v15194_v3 = vld [vmem:[%s15806_s22 + $0x1450] sm:$0xff]  }
 0x281   : > { %13837 = vmatprep.subr.bf16.mxu1 %v15117_v13  ;;  %v15157_v13 = vld [vmem:[%s15806_s22 + $0x1348] sm:$0xff]   ;;  %v15189_v0 = vld [vmem:[%s15806_s22 + $0x1480] sm:$0xff]  }
 0x282   : > { %13816 = vmatpush3.bf16.msra.mxu0 %v15118_v15  ;;  %v2781_v9 = vrot.slane %v2759_v5, %v15863_v42  ;;  %v2760_v11 = vcombine.high %v16587_v8, %v16587_v8  ;;  %v2789_v12 = vcombine.high %v2767_v6, %v2767_v6  ;;  %v15156_v15 = vld [vmem:[%s15806_s22 + $0x1380] sm:$0xff]   ;;  %v15195_v5 = vld [vmem:[%s15806_s22 + $0x14d0] sm:$0xff]  }
 0x283   : > { %13845 = vmatprep.subr.bf16.mxu0 %v15121_v19 }
 0x284   : > { %13838 = vmatpush3.bf16.msra.mxu1 %v15119_v17  ;;  %v2791_v14 = vcombine.high %v2781_v9, %v2781_v9  ;;  %v15158_v17 = vld [vmem:[%s15806_s22 + $0x13c8] sm:$0xff]  }
 0x285   : > { %10752 = vmatmul.mubr.bf16.vlgmr.msra.gmra.mrb[68].mxu0 %v2725_v18  ;;  %13867 = vmatprep.subr.bf16.mxu1 %v15122_v20  ;;  %v15159_v18 = vld [vmem:[%s15806_s22 + $0x1308] sm:$0xff]   ;;  %v15161_v20 = vld [vmem:[%s15806_s22 + $0x1350] sm:$0xff]  }
 0x286   : > { %13846 = vmatpush3.bf16.msra.mxu0 %v15123_v21  ;;  %10831 = vmatprep.mubr.bf16.mxu0 %v2781_v9  ;;  %v15160_v21 = vld [vmem:[%s15806_s22 + $0x1388] sm:$0xff]   ;;  %v15199_v9 = vld [vmem:[%s15806_s22 + $0x14d8] sm:$0xff]  }
 0x287   : > { %10792 = vmatmul.mubr.bf16.vlgmr.msra.gmra.mrb[68].mxu1 %v2741_v23  ;;  %13847 = vmatprep.subr.bf16.mxu0 %v15125_v24  ;;  %v15163_v23 = vld [vmem:[%s15806_s22 + $0x1310] sm:$0xff]   ;;  %v15165_v24 = vld [vmem:[%s15806_s22 + $0x1358] sm:$0xff]  }
 0x288   : > { %13868 = vmatpush3.bf16.msra.mxu1 %v15124_v22  ;;  %10871 = vmatprep.mubr.bf16.mxu1 %v2791_v14  ;;  %v15162_v22 = vld [vmem:[%s15806_s22 + $0x13d0] sm:$0xff]   ;;  %v15204_v14 = vld [vmem:[%s15806_s22 + $0x1420] sm:$0xff]  }
 0x289   : > { %13869 = vmatprep.subr.bf16.mxu1 %v15126_v25  ;;  %v15164_v25 = vld [vmem:[%s15806_s22 + $0x1390] sm:$0xff]  }
 0x28a   : > { %13848 = vmatpush3.bf16.msra.mxu0 %v15127_v26  ;;  %v15166_v26 = vld [vmem:[%s15806_s22 + $0x13d8] sm:$0xff]  }
 0x28b   : > { %13849 = vmatprep.subr.bf16.mxu0 %v15129_v28  ;;  %v15169_v28 = vld [vmem:[%s15806_s22 + $0x1360] sm:$0xff]  }
 0x28c   : > { %13870 = vmatpush3.bf16.msra.mxu1 %v15128_v27  ;;  %v15167_v27 = vld [vmem:[%s15806_s22 + $0x1318] sm:$0xff]  }
 0x28d   : > { %13871 = vmatprep.subr.bf16.mxu1 %v15130_v29  ;;  %v15168_v29 = vld [vmem:[%s15806_s22 + $0x1398] sm:$0xff]  }
 0x28e   : > { %13850 = vmatpush3.bf16.msra.mxu0 %v15131_v30  ;;  %v15170_v30 = vld [vmem:[%s15806_s22 + $0x13e0] sm:$0xff]  }
 0x28f   : > { %13851 = vmatprep.subr.bf16.mxu0 %v15133_v32  ;;  %v15173_v32 = vld [vmem:[%s15806_s22 + $0x1368] sm:$0xff]  }
 0x290   : > { %13872 = vmatpush3.bf16.msra.mxu1 %v15132_v31  ;;  %v15171_v31 = vld [vmem:[%s15806_s22 + $0x1320] sm:$0xff]  }
 0x291   : > { %13873 = vmatprep.subr.bf16.mxu1 %v15134_v33  ;;  %v15172_v33 = vld [vmem:[%s15806_s22 + $0x13a0] sm:$0xff]  }
 0x292   : > { %13852 = vmatpush3.bf16.msra.mxu0 %v15135_v34  ;;  %v15174_v34 = vld [vmem:[%s15806_s22 + $0x13e8] sm:$0xff]  }
 0x293   : > { %13853 = vmatprep.subr.bf16.mxu0 %v15137_v36 }
 0x294   : > { %13874 = vmatpush3.bf16.msra.mxu1 %v15136_v35  ;;  %v15175_v35 = vld [vmem:[%s15806_s22 + $0x1328] sm:$0xff]  }
 0x295   : > { %13875 = vmatprep.subr.bf16.mxu1 %v15138_v37  ;;  %v15177_v37 = vld [vmem:[%s15806_s22 + $0x1370] sm:$0xff]  }
 0x296   : > { %13854 = vmatpush3.bf16.msra.mxu0 %v15139_v38 }
 0x297   : > { %13855 = vmatprep.subr.bf16.mxu0 %v15141_v40 }
 0x298   : > { %13876 = vmatpush3.bf16.msra.mxu1 %v15140_v39  ;;  %v13553_v46 = vpop.f32.mrb[44].mxu0  ;;  %v15176_v39 = vld [vmem:[%s15806_s22 + $0x13a8] sm:$0xff]  }
 0x299   : > { %v13554_v48 = vpop.f32.mrb[45].mxu0  ;;  %13877 = vmatprep.subr.bf16.mxu1 %v15142_v41 }
 0x29a   : > { %v13575_v50 = vpop.f32.mrb[44].mxu1  ;;  %v13555_v51 = vadd.f32 %v13554_v48, %v13553_v46  ;;  %v13556_v52 = vpop.f32.mrb[46].mxu0  ;;  %13856 = vmatpush3.bf16.msra.mxu0 %v15143_v43 }
 0x29b   : > { %v13576_v56 = vpop.f32.mrb[45].mxu1  ;;  %v13557_v57 = vpop.f32.mrb[47].mxu0  ;;  %13857 = vmatprep.subr.bf16.mxu0 %v15145_v45  ;;  %v15179_v45 = vld [vmem:[%s15806_s22 + $0x1330] sm:$0xff]  }
 0x29c   : > { %v10274_v58 = vadd.f32 %v13555_v51, %v16541_v16  ;;  %v13577_v59 = vadd.f32 %v13576_v56, %v13575_v50  ;;  %v13578_v60 = vpop.f32.mrb[46].mxu1  ;;  %13878 = vmatpush3.bf16.msra.mxu1 %v15144_v44  ;;  %v2788_v16 = vrot.slane %v2760_v11, %v15863_v42  ;;  %v15178_v44 = vld [vmem:[%s15806_s22 + $0x13f0] sm:$0xff]   ;;  %v15181_v51 = vld [vmem:[%s15806_s22 + $0x1378] sm:$0xff]   ;;  %v15202_v11 = vld [vmem:[%s15806_s22 + $0x1460] sm:$0xff]  }
 0x29d   : > { %v13579_v61 = vpop.f32.mrb[47].mxu1  ;;  %13879 = vmatprep.subr.bf16.mxu1 %v15146_v47  ;;  %v15182_v56 = vld [vmem:[%s15806_s22 + $0x13f8] sm:$0xff]  }
 0x29e   : > { %v16578_v63 = vadd.f32 %v13577_v59, %v10274_v58  ;;  %13858 = vmatpush3.bf16.msra.mxu0 %v15147_v49  ;;  %v2792_v19 = vcombine.high %v2788_v16, %v2788_v16  ;;  %v15183_v57 = vld [vmem:[%s15806_s22 + $0x1338] sm:$0xff]   ;;  %v2774_v58 = vrot.slane %v16587_v8, %v15863_v42  ;;  %v15186_v59 = vld [vmem:[%s15806_s22 + $0x1440] sm:$0xff]   ;;  %v15197_v8 = vld [vmem:[%s15806_s22 + $0x1490] sm:$0xff]  }
 0x29f   : > { %13859 = vmatprep.subr.bf16.mxu0 %v15149_v54  ;;  %v15184_v60 = vld [vmem:[%s15806_s22 + $0x13b8] sm:$0xff]   ;;  %v15188_v61 = vld [vmem:[%s15806_s22 + $0x1400] sm:$0xff]  }
 0x2a0   : > { %13880 = vmatpush3.bf16.msra.mxu1 %v15148_v53  ;;  %v15180_v53 = vld [vmem:[%s15806_s22 + $0x13b0] sm:$0xff]  }
 0x2a1   : > { %13881 = vmatprep.subr.bf16.mxu1 %v15150_v55  ;;  %v15187_v55 = vld [vmem:[%s15806_s22 + $0x14c0] sm:$0xff]  }
 0x2a2   : > { %13860 = vmatpush3.bf16.msra.mxu0 %v15151_v62  ;;  %v2790_v62 = vcombine.high %v2774_v58, %v2774_v58 }
 0x2a3   : > { %13889 = vmatprep.subr.bf16.mxu0 %v15153_v2  ;;  %v15192_v2 = vld [vmem:[%s15806_s22 + $0x1408] sm:$0xff]  }
 0x2a4   : > { %13882 = vmatpush3.bf16.msra.mxu1 %v15152_v4  ;;  %v15193_v4 = vld [vmem:[%s15806_s22 + $0x1488] sm:$0xff]  }
 0x2a5   : > { %13911 = vmatprep.subr.bf16.mxu1 %v15154_v7  ;;  %10832 = vmatmul.mubr.bf16.vlgmr.msra.gmra.mrb[72].mxu0 %v2767_v6  ;;  %v15196_v6 = vld [vmem:[%s15806_s22 + $0x1410] sm:$0xff]   ;;  %v15198_v7 = vld [vmem:[%s15806_s22 + $0x1458] sm:$0xff]  }
 0x2a6   : > { %13890 = vmatpush3.bf16.msra.mxu0 %v15155_v10  ;;  %10911 = vmatprep.mubr.bf16.mxu0 %v2788_v16  ;;  %v15200_v10 = vld [vmem:[%s15806_s22 + $0x1418] sm:$0xff]   ;;  %v15205_v16 = vld [vmem:[%s15806_s22 + $0x14a0] sm:$0xff]  }
 0x2a7   : > { %10872 = vmatmul.mubr.bf16.vlgmr.msra.gmra.mrb[72].mxu1 %v2789_v12  ;;  %13891 = vmatprep.subr.bf16.mxu0 %v15157_v13  ;;  %v15201_v12 = vld [vmem:[%s15806_s22 + $0x1498] sm:$0xff]   ;;  %v15203_v13 = vld [vmem:[%s15806_s22 + $0x14e0] sm:$0xff]  }
 0x2a8   : > { %13912 = vmatpush3.bf16.msra.mxu1 %v15156_v15  ;;  %10951 = vmatprep.mubr.bf16.mxu1 %v2792_v19  ;;  %v15206_v15 = vld [vmem:[%s15806_s22 + $0x1468] sm:$0xff]  }
 0x2a9   : > { %13913 = vmatprep.subr.bf16.mxu1 %v15158_v17  ;;  %v15207_v17 = vld [vmem:[%s15806_s22 + $0x14e8] sm:$0xff]  }
 0x2aa   : > { %13892 = vmatpush3.bf16.msra.mxu0 %v15159_v18  ;;  %v15208_v18 = vld [vmem:[%s15806_s22 + $0x1428] sm:$0xff]  }
 0x2ab   : > { %13893 = vmatprep.subr.bf16.mxu0 %v15161_v20  ;;  %v15210_v20 = vld [vmem:[%s15806_s22 + $0x1470] sm:$0xff]  }
 0x2ac   : > { %13914 = vmatpush3.bf16.msra.mxu1 %v15160_v21 }
 0x2ad   : > { %13915 = vmatprep.subr.bf16.mxu1 %v15162_v22  ;;  %v15209_v22 = vld [vmem:[%s15806_s22 + $0x14a8] sm:$0xff]  }
 0x2ae   : > { %13894 = vmatpush3.bf16.msra.mxu0 %v15163_v23 }
 0x2af   : > { %13895 = vmatprep.subr.bf16.mxu0 %v15165_v24 }
 0x2b0   : > { %13916 = vmatpush3.bf16.msra.mxu1 %v15164_v25 }
 0x2b1   : > { %13917 = vmatprep.subr.bf16.mxu1 %v15166_v26  ;;  %v15211_v26 = vld [vmem:[%s15806_s22 + $0x14f0] sm:$0xff]  }
 0x2b2   : > { %13896 = vmatpush3.bf16.msra.mxu0 %v15167_v27  ;;  %v15212_v27 = vld [vmem:[%s15806_s22 + $0x1430] sm:$0xff]  }
 0x2b3   : > { %13897 = vmatprep.subr.bf16.mxu0 %v15169_v28 }
 0x2b4   : > { %13918 = vmatpush3.bf16.msra.mxu1 %v15168_v29 }
 0x2b5   : > { %13919 = vmatprep.subr.bf16.mxu1 %v15170_v30  ;;  %v15213_v30 = vld [vmem:[%s15806_s22 + $0x14b0] sm:$0xff]  }
 0x2b6   : > { %13898 = vmatpush3.bf16.msra.mxu0 %v15171_v31 }
 0x2b7   : > { %13899 = vmatprep.subr.bf16.mxu0 %v15173_v32 }
 0x2b8   : > { %v13597_v36 = vpop.f32.mrb[48].mxu0  ;;  %13920 = vmatpush3.bf16.msra.mxu1 %v15172_v33 }
 0x2b9   : > { %v13598_v38 = vpop.f32.mrb[49].mxu0  ;;  %13921 = vmatprep.subr.bf16.mxu1 %v15174_v34  ;;  %v15214_v34 = vld [vmem:[%s15806_s22 + $0x1478] sm:$0xff]  }
 0x2ba   : > { %v13619_v40 = vpop.f32.mrb[48].mxu1  ;;  %v13599_v41 = vadd.f32 %v13598_v38, %v13597_v36  ;;  %v13600_v43 = vpop.f32.mrb[50].mxu0  ;;  %13900 = vmatpush3.bf16.msra.mxu0 %v15175_v35  ;;  %v15215_v36 = vld [vmem:[%s15806_s22 + $0x14f8] sm:$0xff]  }
 0x2bb   : > { %v13620_v46 = vpop.f32.mrb[49].mxu1  ;;  %v13601_v47 = vpop.f32.mrb[51].mxu0  ;;  %13901 = vmatprep.subr.bf16.mxu0 %v15177_v37  ;;  %v15216_v38 = vld [vmem:[%s15806_s22 + $0x1438] sm:$0xff]  }
 0x2bc   : > { %v10354_v48 = vadd.f32 %v13599_v41, %v16578_v63  ;;  %v13621_v49 = vadd.f32 %v13620_v46, %v13619_v40  ;;  %v13622_v50 = vpop.f32.mrb[50].mxu1  ;;  %13922 = vmatpush3.bf16.msra.mxu1 %v15176_v39  ;;  %v15190_v63 = vld [vmem:[%s15806_s22 + $0x1448] sm:$0xff]   ;;  %v233_v39 = vld [vmem:[%s15819_s26 + $0x50] sm:$0xff]  ;;  %v15218_v41 = vld [vmem:[%s15806_s22 + $0x1540] sm:$0xff]  }
 0x2bd   : > { %v13623_v52 = vpop.f32.mrb[51].mxu1  ;;  %13923 = vmatprep.subr.bf16.mxu1 %v15178_v44  ;;  %v2800_v40 = vrot.slane %v233_v39, %v15863_v42  ;;  %v2793_v43 = vcombine.high %v233_v39, %v233_v39  ;;  %v15217_v44 = vld [vmem:[%s15806_s22 + $0x14b8] sm:$0xff]   ;;  %v15219_v47 = vld [vmem:[%s15806_s22 + $0x15c0] sm:$0xff]   ;;  %v15255_v39 = vld [vmem:[%s15806_s22 + $0x1648] sm:$0xff]  }
 0x2be   : > { %v16621_v54 = vadd.f32 %v13621_v49, %v10354_v48  ;;  %13902 = vmatpush3.bf16.msra.mxu0 %v15179_v45  ;;  %v15220_v49 = vld [vmem:[%s15806_s22 + $0x1500] sm:$0xff]  }
 0x2bf   : > { %13903 = vmatprep.subr.bf16.mxu0 %v15181_v51  ;;  %v2808_v45 = vcombine.high %v2800_v40, %v2800_v40  ;;  %v2816_v46 = vrot.slane %v2800_v40, %v15863_v42  ;;  %v16669_v48 = vrot.slane %v2793_v43, %v15863_v42  ;;  %v15221_v51 = vld [vmem:[%s15806_s22 + $0x1580] sm:$0xff]   ;;  %v15256_v40 = vld [vmem:[%s15806_s22 + $0x16c8] sm:$0xff]  }
 0x2c0   : > { %13924 = vmatpush3.bf16.msra.mxu1 %v15180_v53  ;;  %v15258_v43 = vld [vmem:[%s15806_s22 + $0x1688] sm:$0xff]  }
 0x2c1   : > { %13925 = vmatprep.subr.bf16.mxu1 %v15182_v56  ;;  %v2830_v50 = vrot.slane %v2808_v45, %v15863_v42  ;;  %v2809_v52 = vcombine.high %v16669_v48, %v16669_v48  ;;  %v2838_v53 = vcombine.high %v2816_v46, %v2816_v46  ;;  %v15260_v45 = vld [vmem:[%s15806_s22 + $0x16d0] sm:$0xff]  }
 0x2c2   : > { %13904 = vmatpush3.bf16.msra.mxu0 %v15183_v57  ;;  %v15223_v57 = vld [vmem:[%s15806_s22 + $0x15c8] sm:$0xff]  }
 0x2c3   : > { %13933 = vmatprep.subr.bf16.mxu0 %v15186_v59  ;;  %v2840_v56 = vcombine.high %v2830_v50, %v2830_v50  ;;  %v15224_v59 = vld [vmem:[%s15806_s22 + $0x1508] sm:$0xff]  }
 0x2c4   : > { %13926 = vmatpush3.bf16.msra.mxu1 %v15184_v60  ;;  %v15225_v60 = vld [vmem:[%s15806_s22 + $0x1588] sm:$0xff]  }
 0x2c5   : > { %10912 = vmatmul.mubr.bf16.vlgmr.msra.gmra.mrb[76].mxu0 %v2774_v58  ;;  %13955 = vmatprep.subr.bf16.mxu1 %v15187_v55  ;;  %v2837_v58 = vrot.slane %v2809_v52, %v15863_v42  ;;  %v15267_v52 = vld [vmem:[%s15806_s22 + $0x1660] sm:$0xff]  }
 0x2c6   : > { %13934 = vmatpush3.bf16.msra.mxu0 %v15188_v61  ;;  %10991 = vmatprep.mubr.bf16.mxu0 %v2830_v50  ;;  %v15226_v61 = vld [vmem:[%s15806_s22 + $0x1550] sm:$0xff]   ;;  %v15265_v50 = vld [vmem:[%s15806_s22 + $0x1618] sm:$0xff]  }
 0x2c7   : > { %10952 = vmatmul.mubr.bf16.vlgmr.msra.gmra.mrb[76].mxu1 %v2790_v62  ;;  %13935 = vmatprep.subr.bf16.mxu0 %v15190_v63  ;;  %v2841_v55 = vcombine.high %v2837_v58, %v2837_v58  ;;  %v15227_v62 = vld [vmem:[%s15806_s22 + $0x15d0] sm:$0xff]  }
 0x2c8   : > { %13956 = vmatpush3.bf16.msra.mxu1 %v15189_v0  ;;  %11031 = vmatprep.mubr.bf16.mxu1 %v2840_v56  ;;  %v15228_v63 = vld [vmem:[%s15806_s22 + $0x1510] sm:$0xff]   ;;  %v15270_v56 = vld [vmem:[%s15806_s22 + $0x16a0] sm:$0xff]  }
 0x2c9   : > { %13957 = vmatprep.subr.bf16.mxu1 %v15191_v1  ;;  %v15229_v0 = vld [vmem:[%s15806_s22 + $0x1590] sm:$0xff]   ;;  %v15230_v1 = vld [vmem:[%s15806_s22 + $0x1558] sm:$0xff]  }
 0x2ca   : > { %13936 = vmatpush3.bf16.msra.mxu0 %v15192_v2  ;;  %v15231_v2 = vld [vmem:[%s15806_s22 + $0x15d8] sm:$0xff]  }
 0x2cb   : > { %13937 = vmatprep.subr.bf16.mxu0 %v15194_v3  ;;  %v15232_v3 = vld [vmem:[%s15806_s22 + $0x1518] sm:$0xff]  }
 0x2cc   : > { %13958 = vmatpush3.bf16.msra.mxu1 %v15193_v4  ;;  %v15233_v4 = vld [vmem:[%s15806_s22 + $0x1598] sm:$0xff]  }
 0x2cd   : > { %13959 = vmatprep.subr.bf16.mxu1 %v15195_v5  ;;  %v15234_v5 = vld [vmem:[%s15806_s22 + $0x1560] sm:$0xff]  }
 0x2ce   : > { %13938 = vmatpush3.bf16.msra.mxu0 %v15196_v6  ;;  %v15235_v6 = vld [vmem:[%s15806_s22 + $0x15e0] sm:$0xff]  }
 0x2cf   : > { %13939 = vmatprep.subr.bf16.mxu0 %v15198_v7  ;;  %v15236_v7 = vld [vmem:[%s15806_s22 + $0x1520] sm:$0xff]  }
 0x2d0   : > { %13960 = vmatpush3.bf16.msra.mxu1 %v15197_v8  ;;  %v15237_v8 = vld [vmem:[%s15806_s22 + $0x15a0] sm:$0xff]  }
 0x2d1   : > { %13961 = vmatprep.subr.bf16.mxu1 %v15199_v9  ;;  %v15238_v9 = vld [vmem:[%s15806_s22 + $0x1568] sm:$0xff]  }
 0x2d2   : > { %13940 = vmatpush3.bf16.msra.mxu0 %v15200_v10  ;;  %v15239_v10 = vld [vmem:[%s15806_s22 + $0x15e8] sm:$0xff]  }
 0x2d3   : > { %13941 = vmatprep.subr.bf16.mxu0 %v15202_v11  ;;  %v15240_v11 = vld [vmem:[%s15806_s22 + $0x1528] sm:$0xff]  }
 0x2d4   : > { %13962 = vmatpush3.bf16.msra.mxu1 %v15201_v12 }
 0x2d5   : > { %13963 = vmatprep.subr.bf16.mxu1 %v15203_v13  ;;  %v15241_v13 = vld [vmem:[%s15806_s22 + $0x15a8] sm:$0xff]  }
 0x2d6   : > { %13942 = vmatpush3.bf16.msra.mxu0 %v15204_v14 }
 0x2d7   : > { %13943 = vmatprep.subr.bf16.mxu0 %v15206_v15  ;;  %v15242_v15 = vld [vmem:[%s15806_s22 + $0x1570] sm:$0xff]  }
 0x2d8   : > { %v13641_v19 = vpop.f32.mrb[52].mxu0  ;;  %13964 = vmatpush3.bf16.msra.mxu1 %v15205_v16 }
 0x2d9   : > { %v13642_v21 = vpop.f32.mrb[53].mxu0  ;;  %13965 = vmatprep.subr.bf16.mxu1 %v15207_v17 }
 0x2da   : > { %v13663_v23 = vpop.f32.mrb[52].mxu1  ;;  %v13643_v24 = vadd.f32 %v13642_v21, %v13641_v19  ;;  %v13644_v25 = vpop.f32.mrb[54].mxu0  ;;  %13944 = vmatpush3.bf16.msra.mxu0 %v15208_v18  ;;  %v15243_v19 = vld [vmem:[%s15806_s22 + $0x15f0] sm:$0xff]  }
 0x2db   : > { %v13664_v28 = vpop.f32.mrb[53].mxu1  ;;  %v13645_v29 = vpop.f32.mrb[55].mxu0  ;;  %13945 = vmatprep.subr.bf16.mxu0 %v15210_v20  ;;  %v15244_v20 = vld [vmem:[%s15806_s22 + $0x1530] sm:$0xff]  }
 0x2dc   : > { %v10434_v31 = vadd.f32 %v13643_v24, %v16621_v54  ;;  %v13665_v32 = vadd.f32 %v13664_v28, %v13663_v23  ;;  %v13666_v33 = vpop.f32.mrb[54].mxu1  ;;  %13966 = vmatpush3.bf16.msra.mxu1 %v15209_v22  ;;  %v15222_v54 = vld [vmem:[%s15806_s22 + $0x1548] sm:$0xff]   ;;  %v15246_v28 = vld [vmem:[%s15806_s22 + $0x1578] sm:$0xff]  }
 0x2dd   : > { %v13667_v35 = vpop.f32.mrb[55].mxu1  ;;  %13967 = vmatprep.subr.bf16.mxu1 %v15211_v26  ;;  %v15245_v26 = vld [vmem:[%s15806_s22 + $0x15b0] sm:$0xff]   ;;  %v2823_v33 = vrot.slane %v16669_v48, %v15863_v42  ;;  %v15263_v48 = vld [vmem:[%s15806_s22 + $0x1658] sm:$0xff]  }
 0x2de   : > { %v16659_v37 = vadd.f32 %v13665_v32, %v10434_v31  ;;  %13946 = vmatpush3.bf16.msra.mxu0 %v15212_v27  ;;  %v15248_v31 = vld [vmem:[%s15806_s22 + $0x1538] sm:$0xff]   ;;  %v15252_v35 = vld [vmem:[%s15806_s22 + $0x16c0] sm:$0xff]  }
 0x2df   : > { %13947 = vmatprep.subr.bf16.mxu0 %v15214_v34  ;;  %v15249_v32 = vld [vmem:[%s15806_s22 + $0x15b8] sm:$0xff]   ;;  %v15251_v34 = vld [vmem:[%s15806_s22 + $0x1640] sm:$0xff]  }
 0x2e0   : > { %13968 = vmatpush3.bf16.msra.mxu1 %v15213_v30  ;;  %v15247_v30 = vld [vmem:[%s15806_s22 + $0x15f8] sm:$0xff]  }
 0x2e1   : > { %13969 = vmatprep.subr.bf16.mxu1 %v15215_v36  ;;  %v15253_v36 = vld [vmem:[%s15806_s22 + $0x1600] sm:$0xff]  }
 0x2e2   : > { %13948 = vmatpush3.bf16.msra.mxu0 %v15216_v38  ;;  %v2839_v38 = vcombine.high %v2823_v33, %v2823_v33 }
 0x2e3   : > { %13977 = vmatprep.subr.bf16.mxu0 %v15218_v41  ;;  %v15257_v41 = vld [vmem:[%s15806_s22 + $0x1608] sm:$0xff]  }
 0x2e4   : > { %13970 = vmatpush3.bf16.msra.mxu1 %v15217_v44  ;;  %v15259_v44 = vld [vmem:[%s15806_s22 + $0x1650] sm:$0xff]  }
 0x2e5   : > { %13999 = vmatprep.subr.bf16.mxu1 %v15219_v47  ;;  %10992 = vmatmul.mubr.bf16.vlgmr.msra.gmra.mrb[80].mxu0 %v2816_v46  ;;  %v15261_v46 = vld [vmem:[%s15806_s22 + $0x1610] sm:$0xff]  }
 0x2e6   : > { %13978 = vmatpush3.bf16.msra.mxu0 %v15220_v49  ;;  %11071 = vmatprep.mubr.bf16.mxu0 %v2837_v58  ;;  %v15262_v47 = vld [vmem:[%s15806_s22 + $0x1690] sm:$0xff]   ;;  %v15264_v49 = vld [vmem:[%s15806_s22 + $0x16d8] sm:$0xff]   ;;  %v15272_v58 = vld [vmem:[%s15806_s22 + $0x16e8] sm:$0xff]  }
 0x2e7   : > { %11032 = vmatmul.mubr.bf16.vlgmr.msra.gmra.mrb[80].mxu1 %v2838_v53  ;;  %13979 = vmatprep.subr.bf16.mxu0 %v15222_v54  ;;  %v15268_v53 = vld [vmem:[%s15806_s22 + $0x16e0] sm:$0xff]  }
 0x2e8   : > { %14000 = vmatpush3.bf16.msra.mxu1 %v15221_v51  ;;  %11111 = vmatprep.mubr.bf16.mxu1 %v2841_v55  ;;  %v15266_v51 = vld [vmem:[%s15806_s22 + $0x1698] sm:$0xff]   ;;  %v15269_v54 = vld [vmem:[%s15806_s22 + $0x1620] sm:$0xff]   ;;  %v15274_v55 = vld [vmem:[%s15806_s22 + $0x16a8] sm:$0xff]  }
 0x2e9   : > { %14001 = vmatprep.subr.bf16.mxu1 %v15223_v57  ;;  %v15271_v57 = vld [vmem:[%s15806_s22 + $0x1668] sm:$0xff]  }
 0x2ea   : > { %13980 = vmatpush3.bf16.msra.mxu0 %v15224_v59  ;;  %v15273_v59 = vld [vmem:[%s15806_s22 + $0x1628] sm:$0xff]  }
 0x2eb   : > { %13981 = vmatprep.subr.bf16.mxu0 %v15226_v61 }
 0x2ec   : > { %14002 = vmatpush3.bf16.msra.mxu1 %v15225_v60 }
 0x2ed   : > { %14003 = vmatprep.subr.bf16.mxu1 %v15227_v62  ;;  %v15275_v62 = vld [vmem:[%s15806_s22 + $0x1670] sm:$0xff]  }
 0x2ee   : > { %13982 = vmatpush3.bf16.msra.mxu0 %v15228_v63 }
 0x2ef   : > { %13983 = vmatprep.subr.bf16.mxu0 %v15230_v1 }
 0x2f0   : > { %14004 = vmatpush3.bf16.msra.mxu1 %v15229_v0 }
 0x2f1   : > { %14005 = vmatprep.subr.bf16.mxu1 %v15231_v2  ;;  %v15276_v2 = vld [vmem:[%s15806_s22 + $0x16f0] sm:$0xff]  }
 0x2f2   : > { %13984 = vmatpush3.bf16.msra.mxu0 %v15232_v3  ;;  %v15277_v3 = vld [vmem:[%s15806_s22 + $0x1630] sm:$0xff]  }
 0x2f3   : > { %13985 = vmatprep.subr.bf16.mxu0 %v15234_v5 }
 0x2f4   : > { %14006 = vmatpush3.bf16.msra.mxu1 %v15233_v4 }
 0x2f5   : > { %14007 = vmatprep.subr.bf16.mxu1 %v15235_v6 }
 0x2f6   : > { %13986 = vmatpush3.bf16.msra.mxu0 %v15236_v7 }
 0x2f7   : > { %13987 = vmatprep.subr.bf16.mxu0 %v15238_v9  ;;  %v15278_v9 = vld [vmem:[%s15806_s22 + $0x16b0] sm:$0xff]  }
 0x2f8   : > { %v13685_v12 = vpop.f32.mrb[56].mxu0  ;;  %14008 = vmatpush3.bf16.msra.mxu1 %v15237_v8 }
 0x2f9   : > { %v13686_v14 = vpop.f32.mrb[57].mxu0  ;;  %14009 = vmatprep.subr.bf16.mxu1 %v15239_v10 }
 0x2fa   : > { %v13707_v16 = vpop.f32.mrb[56].mxu1  ;;  %v13687_v17 = vadd.f32 %v13686_v14, %v13685_v12  ;;  %v13688_v18 = vpop.f32.mrb[58].mxu0  ;;  %13988 = vmatpush3.bf16.msra.mxu0 %v15240_v11  ;;  %v15279_v11 = vld [vmem:[%s15806_s22 + $0x1678] sm:$0xff]  }
 0x2fb   : > { %v13708_v21 = vpop.f32.mrb[57].mxu1  ;;  %v13689_v22 = vpop.f32.mrb[59].mxu0  ;;  %13989 = vmatprep.subr.bf16.mxu0 %v15242_v15  ;;  %v15281_v14 = vld [vmem:[%s15806_s22 + $0x1638] sm:$0xff]  }
 0x2fc   : > { %v10514_v23 = vadd.f32 %v13687_v17, %v16659_v37  ;;  %v13709_v24 = vadd.f32 %v13708_v21, %v13707_v16  ;;  %v13710_v25 = vpop.f32.mrb[58].mxu1  ;;  %14010 = vmatpush3.bf16.msra.mxu1 %v15241_v13  ;;  %v15254_v37 = vld [vmem:[%s15806_s22 + $0x1680] sm:$0xff]   ;;  %v15280_v13 = vld [vmem:[%s15806_s22 + $0x16f8] sm:$0xff]  }
 0x2fd   : > { %v13711_v27 = vpop.f32.mrb[59].mxu1  ;;  %14011 = vmatprep.subr.bf16.mxu1 %v15243_v19  ;;  %v234_v15 = vld [vmem:[%s15819_s26 + $0x58] sm:$0xff]  ;;  %v15283_v17 = vld [vmem:[%s15806_s22 + $0x1740] sm:$0xff]  }
 0x2fe   : > { %v16703_v29 = vadd.f32 %v13709_v24, %v10514_v23  ;;  %13990 = vmatpush3.bf16.msra.mxu0 %v15244_v20  ;;  %v2849_v16 = vrot.slane %v234_v15, %v15863_v42  ;;  %v2842_v18 = vcombine.high %v234_v15, %v234_v15  ;;  %v15282_v19 = vld [vmem:[%s15806_s22 + $0x16b8] sm:$0xff]   ;;  %v15284_v22 = vld [vmem:[%s15806_s22 + $0x17c0] sm:$0xff]   ;;  %v15320_v15 = vld [vmem:[%s15806_s22 + $0x1848] sm:$0xff]  }
 0x2ff   : > { %13991 = vmatprep.subr.bf16.mxu0 %v15246_v28  ;;  %v15285_v24 = vld [vmem:[%s15806_s22 + $0x1700] sm:$0xff]  }
 0x300   : > { %14012 = vmatpush3.bf16.msra.mxu1 %v15245_v26  ;;  %v2857_v20 = vcombine.high %v2849_v16, %v2849_v16  ;;  %v2865_v21 = vrot.slane %v2849_v16, %v15863_v42  ;;  %v16751_v23 = vrot.slane %v2842_v18, %v15863_v42  ;;  %v15286_v26 = vld [vmem:[%s15806_s22 + $0x1780] sm:$0xff]   ;;  %v15321_v16 = vld [vmem:[%s15806_s22 + $0x18c8] sm:$0xff]  }
 0x301   : > { %14013 = vmatprep.subr.bf16.mxu1 %v15247_v30  ;;  %v15323_v18 = vld [vmem:[%s15806_s22 + $0x1888] sm:$0xff]  }
 0x302   : > { %13992 = vmatpush3.bf16.msra.mxu0 %v15248_v31  ;;  %v2879_v25 = vrot.slane %v2857_v20, %v15863_v42  ;;  %v2858_v27 = vcombine.high %v16751_v23, %v16751_v23  ;;  %v2887_v28 = vcombine.high %v2865_v21, %v2865_v21  ;;  %v15288_v31 = vld [vmem:[%s15806_s22 + $0x17c8] sm:$0xff]   ;;  %v15325_v20 = vld [vmem:[%s15806_s22 + $0x18d0] sm:$0xff]  }
 0x303   : > { %14021 = vmatprep.subr.bf16.mxu0 %v15251_v34  ;;  %v15290_v34 = vld [vmem:[%s15806_s22 + $0x1788] sm:$0xff]  }
 0x304   : > { %14014 = vmatpush3.bf16.msra.mxu1 %v15249_v32  ;;  %v2889_v30 = vcombine.high %v2879_v25, %v2879_v25  ;;  %v2886_v32 = vrot.slane %v2858_v27, %v15863_v42  ;;  %v15332_v27 = vld [vmem:[%s15806_s22 + $0x1860] sm:$0xff]  }
 0x305   : > { %11072 = vmatmul.mubr.bf16.vlgmr.msra.gmra.mrb[84].mxu0 %v2823_v33  ;;  %14043 = vmatprep.subr.bf16.mxu1 %v15252_v35  ;;  %v15289_v33 = vld [vmem:[%s15806_s22 + $0x1708] sm:$0xff]  }
 0x306   : > { %14022 = vmatpush3.bf16.msra.mxu0 %v15253_v36  ;;  %11151 = vmatprep.mubr.bf16.mxu0 %v2879_v25  ;;  %v2890_v35 = vcombine.high %v2886_v32, %v2886_v32  ;;  %v15291_v36 = vld [vmem:[%s15806_s22 + $0x1750] sm:$0xff]   ;;  %v15330_v25 = vld [vmem:[%s15806_s22 + $0x1818] sm:$0xff]  }
 0x307   : > { %11112 = vmatmul.mubr.bf16.vlgmr.msra.gmra.mrb[84].mxu1 %v2839_v38  ;;  %14023 = vmatprep.subr.bf16.mxu0 %v15255_v39  ;;  %v15293_v38 = vld [vmem:[%s15806_s22 + $0x1710] sm:$0xff]  }
 0x308   : > { %14044 = vmatpush3.bf16.msra.mxu1 %v15254_v37  ;;  %11191 = vmatprep.mubr.bf16.mxu1 %v2889_v30  ;;  %v15292_v37 = vld [vmem:[%s15806_s22 + $0x17d0] sm:$0xff]   ;;  %v15335_v30 = vld [vmem:[%s15806_s22 + $0x18a0] sm:$0xff]  }
 0x309   : > { %14045 = vmatprep.subr.bf16.mxu1 %v15256_v40  ;;  %v15294_v39 = vld [vmem:[%s15806_s22 + $0x1790] sm:$0xff]   ;;  %v15295_v40 = vld [vmem:[%s15806_s22 + $0x1758] sm:$0xff]  }
 0x30a   : > { %14024 = vmatpush3.bf16.msra.mxu0 %v15257_v41  ;;  %v15296_v41 = vld [vmem:[%s15806_s22 + $0x17d8] sm:$0xff]  }
 0x30b   : > { %14025 = vmatprep.subr.bf16.mxu0 %v15259_v44  ;;  %v15298_v44 = vld [vmem:[%s15806_s22 + $0x1798] sm:$0xff]  }
 0x30c   : > { %14046 = vmatpush3.bf16.msra.mxu1 %v15258_v43  ;;  %v15297_v43 = vld [vmem:[%s15806_s22 + $0x1718] sm:$0xff]  }
 0x30d   : > { %14047 = vmatprep.subr.bf16.mxu1 %v15260_v45  ;;  %v15299_v45 = vld [vmem:[%s15806_s22 + $0x1760] sm:$0xff]  }
 0x30e   : > { %14026 = vmatpush3.bf16.msra.mxu0 %v15261_v46  ;;  %v15300_v46 = vld [vmem:[%s15806_s22 + $0x17e0] sm:$0xff]  }
 0x30f   : > { %14027 = vmatprep.subr.bf16.mxu0 %v15263_v48  ;;  %v15302_v48 = vld [vmem:[%s15806_s22 + $0x17a0] sm:$0xff]  }
 0x310   : > { %14048 = vmatpush3.bf16.msra.mxu1 %v15262_v47  ;;  %v15301_v47 = vld [vmem:[%s15806_s22 + $0x1720] sm:$0xff]  }
 0x311   : > { %14049 = vmatprep.subr.bf16.mxu1 %v15264_v49  ;;  %v15303_v49 = vld [vmem:[%s15806_s22 + $0x1768] sm:$0xff]  }
 0x312   : > { %14028 = vmatpush3.bf16.msra.mxu0 %v15265_v50  ;;  %v15304_v50 = vld [vmem:[%s15806_s22 + $0x17e8] sm:$0xff]  }
 0x313   : > { %14029 = vmatprep.subr.bf16.mxu0 %v15267_v52  ;;  %v15305_v52 = vld [vmem:[%s15806_s22 + $0x1728] sm:$0xff]  }
 0x314   : > { %14050 = vmatpush3.bf16.msra.mxu1 %v15266_v51 }
 0x315   : > { %14051 = vmatprep.subr.bf16.mxu1 %v15268_v53 }
 0x316   : > { %14030 = vmatpush3.bf16.msra.mxu0 %v15269_v54  ;;  %v15306_v54 = vld [vmem:[%s15806_s22 + $0x17a8] sm:$0xff]  }
 0x317   : > { %14031 = vmatprep.subr.bf16.mxu0 %v15271_v57 }
 0x318   : > { %v13729_v60 = vpop.f32.mrb[60].mxu0  ;;  %14052 = vmatpush3.bf16.msra.mxu1 %v15270_v56 }
 0x319   : > { %v13730_v61 = vpop.f32.mrb[61].mxu0  ;;  %14053 = vmatprep.subr.bf16.mxu1 %v15272_v58 }
 0x31a   : > { %v13751_v63 = vpop.f32.mrb[60].mxu1  ;;  %v13731_v0 = vadd.f32 %v13730_v61, %v13729_v60  ;;  %v13732_v1 = vpop.f32.mrb[62].mxu0  ;;  %14032 = vmatpush3.bf16.msra.mxu0 %v15273_v59  ;;  %v15307_v59 = vld [vmem:[%s15806_s22 + $0x1770] sm:$0xff]  }
 0x31b   : > { %v13752_v4 = vpop.f32.mrb[61].mxu1  ;;  %v13733_v5 = vpop.f32.mrb[63].mxu0  ;;  %14033 = vmatprep.subr.bf16.mxu0 %v15275_v62  ;;  %v15308_v60 = vld [vmem:[%s15806_s22 + $0x17f0] sm:$0xff]  }
 0x31c   : > { %v10594_v6 = vadd.f32 %v13731_v0, %v16703_v29  ;;  %v13753_v7 = vadd.f32 %v13752_v4, %v13751_v63  ;;  %v13754_v8 = vpop.f32.mrb[62].mxu1  ;;  %14054 = vmatpush3.bf16.msra.mxu1 %v15274_v55  ;;  %v15287_v29 = vld [vmem:[%s15806_s22 + $0x1748] sm:$0xff]   ;;  %v15309_v1 = vld [vmem:[%s15806_s22 + $0x1730] sm:$0xff]   ;;  %v15311_v5 = vld [vmem:[%s15806_s22 + $0x1778] sm:$0xff]  }
 0x31d   : > { %v13755_v10 = vpop.f32.mrb[63].mxu1  ;;  %14055 = vmatprep.subr.bf16.mxu1 %v15276_v2  ;;  %v15314_v8 = vld [vmem:[%s15806_s22 + $0x17b8] sm:$0xff]  }
 0x31e   : > { %v16740_v12 = vadd.f32 %v13753_v7, %v10594_v6  ;;  %14034 = vmatpush3.bf16.msra.mxu0 %v15277_v3  ;;  %v15310_v3 = vld [vmem:[%s15806_s22 + $0x17b0] sm:$0xff]   ;;  %v15312_v6 = vld [vmem:[%s15806_s22 + $0x17f8] sm:$0xff]   ;;  %v15316_v10 = vld [vmem:[%s15806_s22 + $0x1840] sm:$0xff]  }
 0x31f   : > { %14035 = vmatprep.subr.bf16.mxu0 %v15279_v11  ;;  %v15313_v7 = vld [vmem:[%s15806_s22 + $0x1738] sm:$0xff]   ;;  %v15317_v11 = vld [vmem:[%s15806_s22 + $0x18c0] sm:$0xff]  }
 0x320   : > { %14056 = vmatpush3.bf16.msra.mxu1 %v15278_v9  ;;  %v2872_v9 = vrot.slane %v16751_v23, %v15863_v42  ;;  %v15328_v23 = vld [vmem:[%s15806_s22 + $0x1858] sm:$0xff]  }
 0x321   : > { %14057 = vmatprep.subr.bf16.mxu1 %v15280_v13  ;;  %v15319_v13 = vld [vmem:[%s15806_s22 + $0x1880] sm:$0xff]  }
 0x322   : > { %14036 = vmatpush3.bf16.msra.mxu0 %v15281_v14  ;;  %v2888_v14 = vcombine.high %v2872_v9, %v2872_v9 }
 0x323   : > { %14065 = vmatprep.subr.bf16.mxu0 %v15283_v17  ;;  %v15322_v17 = vld [vmem:[%s15806_s22 + $0x1808] sm:$0xff]  }
 0x324   : > { %14058 = vmatpush3.bf16.msra.mxu1 %v15282_v19  ;;  %v15324_v19 = vld [vmem:[%s15806_s22 + $0x1850] sm:$0xff]  }
 0x325   : > { %14087 = vmatprep.subr.bf16.mxu1 %v15284_v22  ;;  %11152 = vmatmul.mubr.bf16.vlgmr.msra.gmra.mrb[88].mxu0 %v2865_v21  ;;  %v15326_v21 = vld [vmem:[%s15806_s22 + $0x1810] sm:$0xff]  }
 0x326   : > { %14066 = vmatpush3.bf16.msra.mxu0 %v15285_v24  ;;  %11231 = vmatprep.mubr.bf16.mxu0 %v2886_v32  ;;  %v15327_v22 = vld [vmem:[%s15806_s22 + $0x1890] sm:$0xff]   ;;  %v15329_v24 = vld [vmem:[%s15806_s22 + $0x18d8] sm:$0xff]   ;;  %v15337_v32 = vld [vmem:[%s15806_s22 + $0x18e8] sm:$0xff]  }
 0x327   : > { %11192 = vmatmul.mubr.bf16.vlgmr.msra.gmra.mrb[88].mxu1 %v2887_v28  ;;  %14067 = vmatprep.subr.bf16.mxu0 %v15287_v29  ;;  %v15333_v28 = vld [vmem:[%s15806_s22 + $0x18e0] sm:$0xff]  }
 0x328   : > { %14088 = vmatpush3.bf16.msra.mxu1 %v15286_v26  ;;  %11271 = vmatprep.mubr.bf16.mxu1 %v2890_v35  ;;  %v15331_v26 = vld [vmem:[%s15806_s22 + $0x1898] sm:$0xff]   ;;  %v15334_v29 = vld [vmem:[%s15806_s22 + $0x1820] sm:$0xff]  }
 0x329   : > { %14089 = vmatprep.subr.bf16.mxu1 %v15288_v31  ;;  %v15336_v31 = vld [vmem:[%s15806_s22 + $0x1868] sm:$0xff]  }
 0x32a   : > { %14068 = vmatpush3.bf16.msra.mxu0 %v15289_v33 }
 0x32b   : > { %14069 = vmatprep.subr.bf16.mxu0 %v15291_v36  ;;  %v15339_v36 = vld [vmem:[%s15806_s22 + $0x18a8] sm:$0xff]  }
 0x32c   : > { %14090 = vmatpush3.bf16.msra.mxu1 %v15290_v34  ;;  %v15338_v34 = vld [vmem:[%s15806_s22 + $0x1828] sm:$0xff]  }
 0x32d   : > { %14091 = vmatprep.subr.bf16.mxu1 %v15292_v37 }
 0x32e   : > { %14070 = vmatpush3.bf16.msra.mxu0 %v15293_v38 }
 0x32f   : > { %14071 = vmatprep.subr.bf16.mxu0 %v15295_v40  ;;  %v15340_v40 = vld [vmem:[%s15806_s22 + $0x1870] sm:$0xff]  }
 0x330   : > { %14092 = vmatpush3.bf16.msra.mxu1 %v15294_v39 }
 0x331   : > { %14093 = vmatprep.subr.bf16.mxu1 %v15296_v41  ;;  %v15341_v41 = vld [vmem:[%s15806_s22 + $0x18f0] sm:$0xff]  }
 0x332   : > { %14072 = vmatpush3.bf16.msra.mxu0 %v15297_v43 }
 0x333   : > { %14073 = vmatprep.subr.bf16.mxu0 %v15299_v45 }
 0x334   : > { %14094 = vmatpush3.bf16.msra.mxu1 %v15298_v44 }
 0x335   : > { %14095 = vmatprep.subr.bf16.mxu1 %v15300_v46 }
 0x336   : > { %14074 = vmatpush3.bf16.msra.mxu0 %v15301_v47 }
 0x337   : > { %14075 = vmatprep.subr.bf16.mxu0 %v15303_v49 }
 0x338   : > { %v13773_v51 = vpop.f32.mrb[64].mxu0  ;;  %14096 = vmatpush3.bf16.msra.mxu1 %v15302_v48  ;;  %v15342_v48 = vld [vmem:[%s15806_s22 + $0x1830] sm:$0xff]  }
 0x339   : > { %v13774_v53 = vpop.f32.mrb[65].mxu0  ;;  %14097 = vmatprep.subr.bf16.mxu1 %v15304_v50  ;;  %v15343_v50 = vld [vmem:[%s15806_s22 + $0x18b0] sm:$0xff]  }
 0x33a   : > { %v13795_v56 = vpop.f32.mrb[64].mxu1  ;;  %v13775_v57 = vadd.f32 %v13774_v53, %v13773_v51  ;;  %v13776_v58 = vpop.f32.mrb[66].mxu0  ;;  %14076 = vmatpush3.bf16.msra.mxu0 %v15305_v52  ;;  %v15344_v52 = vld [vmem:[%s15806_s22 + $0x1878] sm:$0xff]  }
 0x33b   : > { %v13796_v55 = vpop.f32.mrb[65].mxu1  ;;  %v13777_v61 = vpop.f32.mrb[67].mxu0  ;;  %14077 = vmatprep.subr.bf16.mxu0 %v15307_v59  ;;  %v15345_v53 = vld [vmem:[%s15806_s22 + $0x18f8] sm:$0xff]   ;;  %v15348_v58 = vld [vmem:[%s15806_s22 + $0x1940] sm:$0xff]  }
 0x33c   : > { %v10674_v62 = vadd.f32 %v13775_v57, %v16740_v12  ;;  %v13797_v63 = vadd.f32 %v13796_v55, %v13795_v56  ;;  %v13798_v0 = vpop.f32.mrb[66].mxu1  ;;  %14098 = vmatpush3.bf16.msra.mxu1 %v15306_v54  ;;  %v15318_v12 = vld [vmem:[%s15806_s22 + $0x1800] sm:$0xff]   ;;  %v15346_v54 = vld [vmem:[%s15806_s22 + $0x1838] sm:$0xff]  }
 0x33d   : > { %v13799_v2 = vpop.f32.mrb[67].mxu1  ;;  %14099 = vmatprep.subr.bf16.mxu1 %v15308_v60  ;;  %v235_v56 = vld [vmem:[%s15819_s26 + $0x60] sm:$0xff]  ;;  %v15347_v60 = vld [vmem:[%s15806_s22 + $0x18b8] sm:$0xff]  }
 0x33e   : > { %v16784_v4 = vadd.f32 %v13797_v63, %v10674_v62  ;;  %14078 = vmatpush3.bf16.msra.mxu0 %v15309_v1  ;;  %v2898_v57 = vrot.slane %v235_v56, %v15863_v42  ;;  %v2891_v59 = vcombine.high %v235_v56, %v235_v56  ;;  %v15349_v62 = vld [vmem:[%s15806_s22 + $0x19c0] sm:$0xff]   ;;  %v15385_v56 = vld [vmem:[%s15806_s22 + $0x1a48] sm:$0xff]  }
 0x33f   : > { %14079 = vmatprep.subr.bf16.mxu0 %v15311_v5  ;;  %v15350_v0 = vld [vmem:[%s15806_s22 + $0x1900] sm:$0xff]   ;;  %v15352_v5 = vld [vmem:[%s15806_s22 + $0x1948] sm:$0xff]  }
 0x340   : > { %14100 = vmatpush3.bf16.msra.mxu1 %v15310_v3  ;;  %v2906_v55 = vcombine.high %v2898_v57, %v2898_v57  ;;  %v2914_v61 = vrot.slane %v2898_v57, %v15863_v42  ;;  %v16833_v63 = vrot.slane %v2891_v59, %v15863_v42  ;;  %v15351_v2 = vld [vmem:[%s15806_s22 + $0x1980] sm:$0xff]   ;;  %v15386_v57 = vld [vmem:[%s15806_s22 + $0x1ac8] sm:$0xff]  }
 0x341   : > { %14101 = vmatprep.subr.bf16.mxu1 %v15312_v6  ;;  %v15388_v59 = vld [vmem:[%s15806_s22 + $0x1a88] sm:$0xff]  }
 0x342   : > { %14080 = vmatpush3.bf16.msra.mxu0 %v15313_v7  ;;  %v2928_v1 = vrot.slane %v2906_v55, %v15863_v42  ;;  %v2907_v3 = vcombine.high %v16833_v63, %v16833_v63  ;;  %v15353_v7 = vld [vmem:[%s15806_s22 + $0x19c8] sm:$0xff]   ;;  %v15390_v55 = vld [vmem:[%s15806_s22 + $0x1ad0] sm:$0xff]  }
 0x343   : > { %14109 = vmatprep.subr.bf16.mxu0 %v15316_v10  ;;  %v15355_v10 = vld [vmem:[%s15806_s22 + $0x1988] sm:$0xff]  }
 0x344   : > { %14102 = vmatpush3.bf16.msra.mxu1 %v15314_v8  ;;  %v2938_v6 = vcombine.high %v2928_v1, %v2928_v1  ;;  %v2935_v8 = vrot.slane %v2907_v3, %v15863_v42  ;;  %v15397_v3 = vld [vmem:[%s15806_s22 + $0x1a60] sm:$0xff]  }
 0x345   : > { %11232 = vmatmul.mubr.bf16.vlgmr.msra.gmra.mrb[92].mxu0 %v2872_v9  ;;  %14131 = vmatprep.subr.bf16.mxu1 %v15317_v11  ;;  %v15354_v9 = vld [vmem:[%s15806_s22 + $0x1908] sm:$0xff]  }
 0x346   : > { %14110 = vmatpush3.bf16.msra.mxu0 %v15318_v12  ;;  %11311 = vmatprep.mubr.bf16.mxu0 %v2928_v1  ;;  %v2939_v11 = vcombine.high %v2935_v8, %v2935_v8  ;;  %v15356_v12 = vld [vmem:[%s15806_s22 + $0x1950] sm:$0xff]   ;;  %v15395_v1 = vld [vmem:[%s15806_s22 + $0x1a18] sm:$0xff]  }
 0x347   : > { %11272 = vmatmul.mubr.bf16.vlgmr.msra.gmra.mrb[92].mxu1 %v2888_v14  ;;  %14111 = vmatprep.subr.bf16.mxu0 %v15320_v15  ;;  %v15358_v14 = vld [vmem:[%s15806_s22 + $0x1910] sm:$0xff]  }
 0x348   : > { %14132 = vmatpush3.bf16.msra.mxu1 %v15319_v13  ;;  %11351 = vmatprep.mubr.bf16.mxu1 %v2938_v6  ;;  %v15357_v13 = vld [vmem:[%s15806_s22 + $0x19d0] sm:$0xff]   ;;  %v15400_v6 = vld [vmem:[%s15806_s22 + $0x1aa0] sm:$0xff]  }
 0x349   : > { %14133 = vmatprep.subr.bf16.mxu1 %v15321_v16  ;;  %v15359_v15 = vld [vmem:[%s15806_s22 + $0x1990] sm:$0xff]   ;;  %v15360_v16 = vld [vmem:[%s15806_s22 + $0x1958] sm:$0xff]  }
 0x34a   : > { %14112 = vmatpush3.bf16.msra.mxu0 %v15322_v17  ;;  %v15361_v17 = vld [vmem:[%s15806_s22 + $0x19d8] sm:$0xff]  }
 0x34b   : > { %14113 = vmatprep.subr.bf16.mxu0 %v15324_v19  ;;  %v15363_v19 = vld [vmem:[%s15806_s22 + $0x1998] sm:$0xff]  }
 0x34c   : > { %14134 = vmatpush3.bf16.msra.mxu1 %v15323_v18  ;;  %v15362_v18 = vld [vmem:[%s15806_s22 + $0x1918] sm:$0xff]  }
 0x34d   : > { %14135 = vmatprep.subr.bf16.mxu1 %v15325_v20  ;;  %v15364_v20 = vld [vmem:[%s15806_s22 + $0x1960] sm:$0xff]  }
 0x34e   : > { %14114 = vmatpush3.bf16.msra.mxu0 %v15326_v21  ;;  %v15365_v21 = vld [vmem:[%s15806_s22 + $0x19e0] sm:$0xff]  }
 0x34f   : > { %14115 = vmatprep.subr.bf16.mxu0 %v15328_v23  ;;  %v15367_v23 = vld [vmem:[%s15806_s22 + $0x19a0] sm:$0xff]  }
 0x350   : > { %14136 = vmatpush3.bf16.msra.mxu1 %v15327_v22  ;;  %v15366_v22 = vld [vmem:[%s15806_s22 + $0x1920] sm:$0xff]  }
 0x351   : > { %14137 = vmatprep.subr.bf16.mxu1 %v15329_v24  ;;  %v15368_v24 = vld [vmem:[%s15806_s22 + $0x1968] sm:$0xff]  }
 0x352   : > { %14116 = vmatpush3.bf16.msra.mxu0 %v15330_v25  ;;  %v15369_v25 = vld [vmem:[%s15806_s22 + $0x19e8] sm:$0xff]  }
 0x353   : > { %14117 = vmatprep.subr.bf16.mxu0 %v15332_v27  ;;  %v15370_v27 = vld [vmem:[%s15806_s22 + $0x1928] sm:$0xff]  }
 0x354   : > { %14138 = vmatpush3.bf16.msra.mxu1 %v15331_v26 }
 0x355   : > { %14139 = vmatprep.subr.bf16.mxu1 %v15333_v28 }
 0x356   : > { %14118 = vmatpush3.bf16.msra.mxu0 %v15334_v29  ;;  %v15371_v29 = vld [vmem:[%s15806_s22 + $0x19a8] sm:$0xff]  }
 0x357   : > { %14119 = vmatprep.subr.bf16.mxu0 %v15336_v31 }
 0x358   : > { %v13817_v33 = vpop.f32.mrb[68].mxu0  ;;  %14140 = vmatpush3.bf16.msra.mxu1 %v15335_v30 }
 0x359   : > { %v13818_v35 = vpop.f32.mrb[69].mxu0  ;;  %14141 = vmatprep.subr.bf16.mxu1 %v15337_v32 }
 0x35a   : > { %v13839_v37 = vpop.f32.mrb[68].mxu1  ;;  %v13819_v38 = vadd.f32 %v13818_v35, %v13817_v33  ;;  %v13820_v39 = vpop.f32.mrb[70].mxu0  ;;  %14120 = vmatpush3.bf16.msra.mxu0 %v15338_v34  ;;  %v15372_v33 = vld [vmem:[%s15806_s22 + $0x1970] sm:$0xff]  }
 0x35b   : > { %v13840_v43 = vpop.f32.mrb[69].mxu1  ;;  %v13821_v44 = vpop.f32.mrb[71].mxu0  ;;  %14121 = vmatprep.subr.bf16.mxu0 %v15340_v40  ;;  %v15373_v34 = vld [vmem:[%s15806_s22 + $0x19f0] sm:$0xff]  }
 0x35c   : > { %v10754_v45 = vadd.f32 %v13819_v38, %v16784_v4  ;;  %v13841_v46 = vadd.f32 %v13840_v43, %v13839_v37  ;;  %v13842_v47 = vpop.f32.mrb[70].mxu1  ;;  %14142 = vmatpush3.bf16.msra.mxu1 %v15339_v36  ;;  %v2936_v4 = vcombine.high %v2914_v61, %v2914_v61  ;;  %v15374_v40 = vld [vmem:[%s15806_s22 + $0x1930] sm:$0xff]  }
 0x35d   : > { %v13843_v49 = vpop.f32.mrb[71].mxu1  ;;  %14143 = vmatprep.subr.bf16.mxu1 %v15341_v41  ;;  %v15375_v43 = vld [vmem:[%s15806_s22 + $0x19b0] sm:$0xff]   ;;  %v15378_v47 = vld [vmem:[%s15806_s22 + $0x1938] sm:$0xff]  }
 0x35e   : > { %v16821_v51 = vadd.f32 %v13841_v46, %v10754_v45  ;;  %14122 = vmatpush3.bf16.msra.mxu0 %v15342_v48  ;;  %v15376_v45 = vld [vmem:[%s15806_s22 + $0x1978] sm:$0xff]   ;;  %v2921_v49 = vrot.slane %v16833_v63, %v15863_v42 }
 0x35f   : > { %14123 = vmatprep.subr.bf16.mxu0 %v15344_v52  ;;  %v15377_v46 = vld [vmem:[%s15806_s22 + $0x19f8] sm:$0xff]   ;;  %v15383_v52 = vld [vmem:[%s15806_s22 + $0x1a00] sm:$0xff]  }
 0x360   : > { %14144 = vmatpush3.bf16.msra.mxu1 %v15343_v50  ;;  %v15379_v48 = vld [vmem:[%s15806_s22 + $0x19b8] sm:$0xff]   ;;  %v15381_v50 = vld [vmem:[%s15806_s22 + $0x1a40] sm:$0xff]  }
 0x361   : > { %14145 = vmatprep.subr.bf16.mxu1 %v15345_v53  ;;  %v15384_v53 = vld [vmem:[%s15806_s22 + $0x1a80] sm:$0xff]   ;;  %v15393_v63 = vld [vmem:[%s15806_s22 + $0x1a58] sm:$0xff]  }
 0x362   : > { %14124 = vmatpush3.bf16.msra.mxu0 %v15346_v54  ;;  %v2937_v54 = vcombine.high %v2921_v49, %v2921_v49 }
 0x363   : > { %14153 = vmatprep.subr.bf16.mxu0 %v15348_v58  ;;  %v15387_v58 = vld [vmem:[%s15806_s22 + $0x1a08] sm:$0xff]  }
 0x364   : > { %14146 = vmatpush3.bf16.msra.mxu1 %v15347_v60  ;;  %v15389_v60 = vld [vmem:[%s15806_s22 + $0x1a50] sm:$0xff]  }
 0x365   : > { %14175 = vmatprep.subr.bf16.mxu1 %v15349_v62  ;;  %11312 = vmatmul.mubr.bf16.vlgmr.msra.gmra.mrb[96].mxu0 %v2914_v61  ;;  %v15391_v61 = vld [vmem:[%s15806_s22 + $0x1a10] sm:$0xff]  }
 0x366   : > { %14154 = vmatpush3.bf16.msra.mxu0 %v15350_v0  ;;  %11391 = vmatprep.mubr.bf16.mxu0 %v2935_v8  ;;  %v15392_v62 = vld [vmem:[%s15806_s22 + $0x1a90] sm:$0xff]   ;;  %v15394_v0 = vld [vmem:[%s15806_s22 + $0x1ad8] sm:$0xff]   ;;  %v15402_v8 = vld [vmem:[%s15806_s22 + $0x1ae8] sm:$0xff]  }
 0x367   : > { %11352 = vmatmul.mubr.bf16.vlgmr.msra.gmra.mrb[96].mxu1 %v2936_v4  ;;  %14155 = vmatprep.subr.bf16.mxu0 %v15352_v5  ;;  %v15398_v4 = vld [vmem:[%s15806_s22 + $0x1ae0] sm:$0xff]  }
 0x368   : > { %14176 = vmatpush3.bf16.msra.mxu1 %v15351_v2  ;;  %11431 = vmatprep.mubr.bf16.mxu1 %v2939_v11  ;;  %v15396_v2 = vld [vmem:[%s15806_s22 + $0x1a98] sm:$0xff]   ;;  %v15399_v5 = vld [vmem:[%s15806_s22 + $0x1a20] sm:$0xff]  }
 0x369   : > { %14177 = vmatprep.subr.bf16.mxu1 %v15353_v7  ;;  %v15401_v7 = vld [vmem:[%s15806_s22 + $0x1a68] sm:$0xff]  }
 0x36a   : > { %14156 = vmatpush3.bf16.msra.mxu0 %v15354_v9 }
 0x36b   : > { %14157 = vmatprep.subr.bf16.mxu0 %v15356_v12  ;;  %v15404_v12 = vld [vmem:[%s15806_s22 + $0x1aa8] sm:$0xff]  }
 0x36c   : > { %14178 = vmatpush3.bf16.msra.mxu1 %v15355_v10  ;;  %v15403_v10 = vld [vmem:[%s15806_s22 + $0x1a28] sm:$0xff]  }
 0x36d   : > { %14179 = vmatprep.subr.bf16.mxu1 %v15357_v13 }
 0x36e   : > { %14158 = vmatpush3.bf16.msra.mxu0 %v15358_v14 }
 0x36f   : > { %14159 = vmatprep.subr.bf16.mxu0 %v15360_v16  ;;  %v15405_v16 = vld [vmem:[%s15806_s22 + $0x1a70] sm:$0xff]  }
 0x370   : > { %14180 = vmatpush3.bf16.msra.mxu1 %v15359_v15 }
 0x371   : > { %14181 = vmatprep.subr.bf16.mxu1 %v15361_v17  ;;  %v15406_v17 = vld [vmem:[%s15806_s22 + $0x1af0] sm:$0xff]  }
 0x372   : > { %14160 = vmatpush3.bf16.msra.mxu0 %v15362_v18 }
 0x373   : > { %14161 = vmatprep.subr.bf16.mxu0 %v15364_v20 }
 0x374   : > { %14182 = vmatpush3.bf16.msra.mxu1 %v15363_v19 }
 0x375   : > { %14183 = vmatprep.subr.bf16.mxu1 %v15365_v21 }
 0x376   : > { %14162 = vmatpush3.bf16.msra.mxu0 %v15366_v22 }
 0x377   : > { %14163 = vmatprep.subr.bf16.mxu0 %v15368_v24 }
 0x378   : > { %v13861_v26 = vpop.f32.mrb[72].mxu0  ;;  %14184 = vmatpush3.bf16.msra.mxu1 %v15367_v23  ;;  %v15407_v23 = vld [vmem:[%s15806_s22 + $0x1a30] sm:$0xff]  }
 0x379   : > { %v13862_v28 = vpop.f32.mrb[73].mxu0  ;;  %14185 = vmatprep.subr.bf16.mxu1 %v15369_v25  ;;  %v15408_v25 = vld [vmem:[%s15806_s22 + $0x1ab0] sm:$0xff]  }
 0x37a   : > { %v13883_v30 = vpop.f32.mrb[72].mxu1  ;;  %v13863_v31 = vadd.f32 %v13862_v28, %v13861_v26  ;;  %v13864_v32 = vpop.f32.mrb[74].mxu0  ;;  %14164 = vmatpush3.bf16.msra.mxu0 %v15370_v27  ;;  %v15409_v27 = vld [vmem:[%s15806_s22 + $0x1a78] sm:$0xff]  }
 0x37b   : > { %v13884_v35 = vpop.f32.mrb[73].mxu1  ;;  %v13865_v36 = vpop.f32.mrb[75].mxu0  ;;  %14165 = vmatprep.subr.bf16.mxu0 %v15372_v33  ;;  %v15410_v28 = vld [vmem:[%s15806_s22 + $0x1af8] sm:$0xff]   ;;  %v15413_v32 = vld [vmem:[%s15806_s22 + $0x1b40] sm:$0xff]  }
 0x37c   : > { %v10834_v37 = vadd.f32 %v13863_v31, %v16821_v51  ;;  %v13885_v38 = vadd.f32 %v13884_v35, %v13883_v30  ;;  %v13886_v39 = vpop.f32.mrb[74].mxu1  ;;  %14186 = vmatpush3.bf16.msra.mxu1 %v15371_v29  ;;  %v15382_v51 = vld [vmem:[%s15806_s22 + $0x1ac0] sm:$0xff]   ;;  %v15411_v29 = vld [vmem:[%s15806_s22 + $0x1a38] sm:$0xff]   ;;  %v236_v30 = vld [vmem:[%s15819_s26 + $0x68] sm:$0xff] }
 0x37d   : > { %v13887_v41 = vpop.f32.mrb[75].mxu1  ;;  %14187 = vmatprep.subr.bf16.mxu1 %v15373_v34  ;;  %v2947_v31 = vrot.slane %v236_v30, %v15863_v42  ;;  %v2940_v33 = vcombine.high %v236_v30, %v236_v30  ;;  %v15412_v34 = vld [vmem:[%s15806_s22 + $0x1ab8] sm:$0xff]   ;;  %v15415_v39 = vld [vmem:[%s15806_s22 + $0x1b00] sm:$0xff]   ;;  %v15450_v30 = vld [vmem:[%s15806_s22 + $0x1c48] sm:$0xff]  }
 0x37e   : > { %v16866_v44 = vadd.f32 %v13885_v38, %v10834_v37  ;;  %14166 = vmatpush3.bf16.msra.mxu0 %v15374_v40  ;;  %v15414_v37 = vld [vmem:[%s15806_s22 + $0x1bc0] sm:$0xff]  }
 0x37f   : > { %14167 = vmatprep.subr.bf16.mxu0 %v15376_v45  ;;  %v2955_v35 = vcombine.high %v2947_v31, %v2947_v31  ;;  %v2963_v36 = vrot.slane %v2947_v31, %v15863_v42  ;;  %v16915_v38 = vrot.slane %v2940_v33, %v15863_v42  ;;  %v15416_v41 = vld [vmem:[%s15806_s22 + $0x1b80] sm:$0xff]   ;;  %v15417_v45 = vld [vmem:[%s15806_s22 + $0x1b48] sm:$0xff]  }
 0x380   : > { %14188 = vmatpush3.bf16.msra.mxu1 %v15375_v43  ;;  %v15451_v31 = vld [vmem:[%s15806_s22 + $0x1cc8] sm:$0xff]  }
 0x381   : > { %14189 = vmatprep.subr.bf16.mxu1 %v15377_v46  ;;  %v2977_v40 = vrot.slane %v2955_v35, %v15863_v42  ;;  %v2956_v43 = vcombine.high %v16915_v38, %v16915_v38  ;;  %v15453_v33 = vld [vmem:[%s15806_s22 + $0x1c88] sm:$0xff]   ;;  %v15455_v35 = vld [vmem:[%s15806_s22 + $0x1cd0] sm:$0xff]  }
 0x382   : > { %14168 = vmatpush3.bf16.msra.mxu0 %v15378_v47  ;;  %v15418_v47 = vld [vmem:[%s15806_s22 + $0x1bc8] sm:$0xff]  }
 0x383   : > { %14197 = vmatprep.subr.bf16.mxu0 %v15381_v50  ;;  %v2987_v46 = vcombine.high %v2977_v40, %v2977_v40  ;;  %v15420_v50 = vld [vmem:[%s15806_s22 + $0x1b88] sm:$0xff]  }
 0x384   : > { %14190 = vmatpush3.bf16.msra.mxu1 %v15379_v48  ;;  %v2984_v48 = vrot.slane %v2956_v43, %v15863_v42  ;;  %v15462_v43 = vld [vmem:[%s15806_s22 + $0x1c60] sm:$0xff]  }
 0x385   : > { %11392 = vmatmul.mubr.bf16.vlgmr.msra.gmra.mrb[100].mxu0 %v2921_v49  ;;  %14219 = vmatprep.subr.bf16.mxu1 %v15382_v51  ;;  %v15419_v49 = vld [vmem:[%s15806_s22 + $0x1b08] sm:$0xff]  }
 0x386   : > { %14198 = vmatpush3.bf16.msra.mxu0 %v15383_v52  ;;  %11471 = vmatprep.mubr.bf16.mxu0 %v2977_v40  ;;  %v2988_v51 = vcombine.high %v2984_v48, %v2984_v48  ;;  %v15421_v52 = vld [vmem:[%s15806_s22 + $0x1b50] sm:$0xff]   ;;  %v15460_v40 = vld [vmem:[%s15806_s22 + $0x1c18] sm:$0xff]  }
 0x387   : > { %11432 = vmatmul.mubr.bf16.vlgmr.msra.gmra.mrb[100].mxu1 %v2937_v54  ;;  %14199 = vmatprep.subr.bf16.mxu0 %v15385_v56  ;;  %v15423_v54 = vld [vmem:[%s15806_s22 + $0x1b10] sm:$0xff]  }
 0x388   : > { %14220 = vmatpush3.bf16.msra.mxu1 %v15384_v53  ;;  %11511 = vmatprep.mubr.bf16.mxu1 %v2987_v46  ;;  %v15422_v53 = vld [vmem:[%s15806_s22 + $0x1bd0] sm:$0xff]   ;;  %v15465_v46 = vld [vmem:[%s15806_s22 + $0x1ca0] sm:$0xff]  }
 0x389   : > { %14221 = vmatprep.subr.bf16.mxu1 %v15386_v57  ;;  %v15424_v56 = vld [vmem:[%s15806_s22 + $0x1b90] sm:$0xff]   ;;  %v15425_v57 = vld [vmem:[%s15806_s22 + $0x1b58] sm:$0xff]  }
 0x38a   : > { %14200 = vmatpush3.bf16.msra.mxu0 %v15387_v58  ;;  %v15426_v58 = vld [vmem:[%s15806_s22 + $0x1bd8] sm:$0xff]  }
 0x38b   : > { %14201 = vmatprep.subr.bf16.mxu0 %v15389_v60  ;;  %v15428_v60 = vld [vmem:[%s15806_s22 + $0x1b98] sm:$0xff]  }
 0x38c   : > { %14222 = vmatpush3.bf16.msra.mxu1 %v15388_v59  ;;  %v15427_v59 = vld [vmem:[%s15806_s22 + $0x1b18] sm:$0xff]  }
 0x38d   : > { %14223 = vmatprep.subr.bf16.mxu1 %v15390_v55  ;;  %v15429_v55 = vld [vmem:[%s15806_s22 + $0x1b60] sm:$0xff]  }
 0x38e   : > { %14202 = vmatpush3.bf16.msra.mxu0 %v15391_v61  ;;  %v15430_v61 = vld [vmem:[%s15806_s22 + $0x1be0] sm:$0xff]  }
 0x38f   : > { %14203 = vmatprep.subr.bf16.mxu0 %v15393_v63  ;;  %v15432_v63 = vld [vmem:[%s15806_s22 + $0x1ba0] sm:$0xff]  }
 0x390   : > { %14224 = vmatpush3.bf16.msra.mxu1 %v15392_v62  ;;  %v15431_v62 = vld [vmem:[%s15806_s22 + $0x1b20] sm:$0xff]  }
 0x391   : > { %14225 = vmatprep.subr.bf16.mxu1 %v15394_v0  ;;  %v15433_v0 = vld [vmem:[%s15806_s22 + $0x1b68] sm:$0xff]  }
 0x392   : > { %14204 = vmatpush3.bf16.msra.mxu0 %v15395_v1  ;;  %v15434_v1 = vld [vmem:[%s15806_s22 + $0x1be8] sm:$0xff]  }
 0x393   : > { %14205 = vmatprep.subr.bf16.mxu0 %v15397_v3  ;;  %v15435_v3 = vld [vmem:[%s15806_s22 + $0x1b28] sm:$0xff]  }
 0x394   : > { %14226 = vmatpush3.bf16.msra.mxu1 %v15396_v2 }
 0x395   : > { %14227 = vmatprep.subr.bf16.mxu1 %v15398_v4 }
 0x396   : > { %14206 = vmatpush3.bf16.msra.mxu0 %v15399_v5  ;;  %v15436_v5 = vld [vmem:[%s15806_s22 + $0x1ba8] sm:$0xff]  }
 0x397   : > { %14207 = vmatprep.subr.bf16.mxu0 %v15401_v7 }
 0x398   : > { %v13905_v9 = vpop.f32.mrb[76].mxu0  ;;  %14228 = vmatpush3.bf16.msra.mxu1 %v15400_v6 }
 0x399   : > { %v13906_v11 = vpop.f32.mrb[77].mxu0  ;;  %14229 = vmatprep.subr.bf16.mxu1 %v15402_v8 }
 0x39a   : > { %v13927_v13 = vpop.f32.mrb[76].mxu1  ;;  %v13907_v14 = vadd.f32 %v13906_v11, %v13905_v9  ;;  %v13908_v15 = vpop.f32.mrb[78].mxu0  ;;  %14208 = vmatpush3.bf16.msra.mxu0 %v15403_v10  ;;  %v15437_v9 = vld [vmem:[%s15806_s22 + $0x1b70] sm:$0xff]  }
 0x39b   : > { %v13928_v18 = vpop.f32.mrb[77].mxu1  ;;  %v13909_v19 = vpop.f32.mrb[79].mxu0  ;;  %14209 = vmatprep.subr.bf16.mxu0 %v15405_v16  ;;  %v15438_v10 = vld [vmem:[%s15806_s22 + $0x1bf0] sm:$0xff]  }
 0x39c   : > { %v10914_v20 = vadd.f32 %v13907_v14, %v16866_v44  ;;  %v13929_v21 = vadd.f32 %v13928_v18, %v13927_v13  ;;  %v13930_v22 = vpop.f32.mrb[78].mxu1  ;;  %14230 = vmatpush3.bf16.msra.mxu1 %v15404_v12  ;;  %v2985_v44 = vcombine.high %v2963_v36, %v2963_v36  ;;  %v15439_v16 = vld [vmem:[%s15806_s22 + $0x1b30] sm:$0xff]  }
 0x39d   : > { %v13931_v24 = vpop.f32.mrb[79].mxu1  ;;  %14231 = vmatprep.subr.bf16.mxu1 %v15406_v17  ;;  %v15440_v18 = vld [vmem:[%s15806_s22 + $0x1bb0] sm:$0xff]   ;;  %v15443_v22 = vld [vmem:[%s15806_s22 + $0x1b38] sm:$0xff]  }
 0x39e   : > { %v16903_v26 = vadd.f32 %v13929_v21, %v10914_v20  ;;  %14210 = vmatpush3.bf16.msra.mxu0 %v15407_v23  ;;  %v15441_v20 = vld [vmem:[%s15806_s22 + $0x1b78] sm:$0xff]   ;;  %v2970_v24 = vrot.slane %v16915_v38, %v15863_v42 }
 0x39f   : > { %14211 = vmatprep.subr.bf16.mxu0 %v15409_v27  ;;  %v15442_v21 = vld [vmem:[%s15806_s22 + $0x1bf8] sm:$0xff]   ;;  %v15448_v27 = vld [vmem:[%s15806_s22 + $0x1c00] sm:$0xff]  }
 0x3a0   : > { %14232 = vmatpush3.bf16.msra.mxu1 %v15408_v25  ;;  %v15444_v23 = vld [vmem:[%s15806_s22 + $0x1bb8] sm:$0xff]   ;;  %v15446_v25 = vld [vmem:[%s15806_s22 + $0x1c40] sm:$0xff]  }
 0x3a1   : > { %14233 = vmatprep.subr.bf16.mxu1 %v15410_v28  ;;  %v15449_v28 = vld [vmem:[%s15806_s22 + $0x1c80] sm:$0xff]   ;;  %v15458_v38 = vld [vmem:[%s15806_s22 + $0x1c58] sm:$0xff]  }
 0x3a2   : > { %14212 = vmatpush3.bf16.msra.mxu0 %v15411_v29  ;;  %v2986_v29 = vcombine.high %v2970_v24, %v2970_v24 }
 0x3a3   : > { %14241 = vmatprep.subr.bf16.mxu0 %v15413_v32  ;;  %v15452_v32 = vld [vmem:[%s15806_s22 + $0x1c08] sm:$0xff]  }
 0x3a4   : > { %14234 = vmatpush3.bf16.msra.mxu1 %v15412_v34  ;;  %v15454_v34 = vld [vmem:[%s15806_s22 + $0x1c50] sm:$0xff]  }
 0x3a5   : > { %14263 = vmatprep.subr.bf16.mxu1 %v15414_v37  ;;  %11472 = vmatmul.mubr.bf16.vlgmr.msra.gmra.mrb[104].mxu0 %v2963_v36  ;;  %v15456_v36 = vld [vmem:[%s15806_s22 + $0x1c10] sm:$0xff]  }
 0x3a6   : > { %14242 = vmatpush3.bf16.msra.mxu0 %v15415_v39  ;;  %11551 = vmatprep.mubr.bf16.mxu0 %v2984_v48  ;;  %v15457_v37 = vld [vmem:[%s15806_s22 + $0x1c90] sm:$0xff]   ;;  %v15459_v39 = vld [vmem:[%s15806_s22 + $0x1cd8] sm:$0xff]   ;;  %v15467_v48 = vld [vmem:[%s15806_s22 + $0x1ce8] sm:$0xff]  }
 0x3a7   : > { %11512 = vmatmul.mubr.bf16.vlgmr.msra.gmra.mrb[104].mxu1 %v2985_v44  ;;  %14243 = vmatprep.subr.bf16.mxu0 %v15417_v45  ;;  %v15463_v44 = vld [vmem:[%s15806_s22 + $0x1ce0] sm:$0xff]  }
 0x3a8   : > { %14264 = vmatpush3.bf16.msra.mxu1 %v15416_v41  ;;  %11591 = vmatprep.mubr.bf16.mxu1 %v2988_v51  ;;  %v15461_v41 = vld [vmem:[%s15806_s22 + $0x1c98] sm:$0xff]   ;;  %v15464_v45 = vld [vmem:[%s15806_s22 + $0x1c20] sm:$0xff]  }
 0x3a9   : > { %14265 = vmatprep.subr.bf16.mxu1 %v15418_v47  ;;  %v15466_v47 = vld [vmem:[%s15806_s22 + $0x1c68] sm:$0xff]  }
 0x3aa   : > { %14244 = vmatpush3.bf16.msra.mxu0 %v15419_v49 }
 0x3ab   : > { %14245 = vmatprep.subr.bf16.mxu0 %v15421_v52  ;;  %v15469_v52 = vld [vmem:[%s15806_s22 + $0x1ca8] sm:$0xff]  }
 0x3ac   : > { %14266 = vmatpush3.bf16.msra.mxu1 %v15420_v50  ;;  %v15468_v50 = vld [vmem:[%s15806_s22 + $0x1c28] sm:$0xff]  }
 0x3ad   : > { %14267 = vmatprep.subr.bf16.mxu1 %v15422_v53 }
 0x3ae   : > { %14246 = vmatpush3.bf16.msra.mxu0 %v15423_v54 }
 0x3af   : > { %14247 = vmatprep.subr.bf16.mxu0 %v15425_v57  ;;  %v15470_v57 = vld [vmem:[%s15806_s22 + $0x1c70] sm:$0xff]  }
 0x3b0   : > { %14268 = vmatpush3.bf16.msra.mxu1 %v15424_v56 }
 0x3b1   : > { %14269 = vmatprep.subr.bf16.mxu1 %v15426_v58  ;;  %v15471_v58 = vld [vmem:[%s15806_s22 + $0x1cf0] sm:$0xff]  }
 0x3b2   : > { %14248 = vmatpush3.bf16.msra.mxu0 %v15427_v59 }
 0x3b3   : > { %14249 = vmatprep.subr.bf16.mxu0 %v15429_v55 }
 0x3b4   : > { %14270 = vmatpush3.bf16.msra.mxu1 %v15428_v60 }
 0x3b5   : > { %14271 = vmatprep.subr.bf16.mxu1 %v15430_v61 }
 0x3b6   : > { %14250 = vmatpush3.bf16.msra.mxu0 %v15431_v62 }
 0x3b7   : > { %14251 = vmatprep.subr.bf16.mxu0 %v15433_v0 }
 0x3b8   : > { %v13949_v2 = vpop.f32.mrb[80].mxu0  ;;  %14272 = vmatpush3.bf16.msra.mxu1 %v15432_v63  ;;  %v15472_v63 = vld [vmem:[%s15806_s22 + $0x1c30] sm:$0xff]  }
 0x3b9   : > { %v13950_v4 = vpop.f32.mrb[81].mxu0  ;;  %14273 = vmatprep.subr.bf16.mxu1 %v15434_v1  ;;  %v15473_v1 = vld [vmem:[%s15806_s22 + $0x1cb0] sm:$0xff]  }
 0x3ba   : > { %v13971_v6 = vpop.f32.mrb[80].mxu1  ;;  %v13951_v7 = vadd.f32 %v13950_v4, %v13949_v2  ;;  %v13952_v8 = vpop.f32.mrb[82].mxu0  ;;  %14252 = vmatpush3.bf16.msra.mxu0 %v15435_v3  ;;  %v15474_v3 = vld [vmem:[%s15806_s22 + $0x1c78] sm:$0xff]  }
 0x3bb   : > { %v13972_v11 = vpop.f32.mrb[81].mxu1  ;;  %v13953_v12 = vpop.f32.mrb[83].mxu0  ;;  %14253 = vmatprep.subr.bf16.mxu0 %v15437_v9  ;;  %v15475_v4 = vld [vmem:[%s15806_s22 + $0x1cf8] sm:$0xff]   ;;  %v15478_v8 = vld [vmem:[%s15806_s22 + $0x1d40] sm:$0xff]  }
 0x3bc   : > { %v10994_v13 = vadd.f32 %v13951_v7, %v16903_v26  ;;  %v13973_v14 = vadd.f32 %v13972_v11, %v13971_v6  ;;  %v13974_v15 = vpop.f32.mrb[82].mxu1  ;;  %14274 = vmatpush3.bf16.msra.mxu1 %v15436_v5  ;;  %v15447_v26 = vld [vmem:[%s15806_s22 + $0x1cc0] sm:$0xff]   ;;  %v15476_v5 = vld [vmem:[%s15806_s22 + $0x1c38] sm:$0xff]   ;;  %v237_v6 = vld [vmem:[%s15819_s26 + $0x70] sm:$0xff] }
 0x3bd   : > { %v13975_v17 = vpop.f32.mrb[83].mxu1  ;;  %14275 = vmatprep.subr.bf16.mxu1 %v15438_v10  ;;  %v2996_v7 = vrot.slane %v237_v6, %v15863_v42  ;;  %v2989_v9 = vcombine.high %v237_v6, %v237_v6  ;;  %v15477_v10 = vld [vmem:[%s15806_s22 + $0x1cb8] sm:$0xff]   ;;  %v15480_v15 = vld [vmem:[%s15806_s22 + $0x1d00] sm:$0xff]   ;;  %v15515_v6 = vld [vmem:[%s15806_s22 + $0x1e48] sm:$0xff]  }
 0x3be   : > { %v16948_v19 = vadd.f32 %v13973_v14, %v10994_v13  ;;  %14254 = vmatpush3.bf16.msra.mxu0 %v15439_v16  ;;  %v15479_v13 = vld [vmem:[%s15806_s22 + $0x1dc0] sm:$0xff]  }
 0x3bf   : > { %14255 = vmatprep.subr.bf16.mxu0 %v15441_v20  ;;  %v3004_v11 = vcombine.high %v2996_v7, %v2996_v7  ;;  %v3012_v12 = vrot.slane %v2996_v7, %v15863_v42  ;;  %v16997_v14 = vrot.slane %v2989_v9, %v15863_v42  ;;  %v15481_v17 = vld [vmem:[%s15806_s22 + $0x1d80] sm:$0xff]   ;;  %v15482_v20 = vld [vmem:[%s15806_s22 + $0x1d48] sm:$0xff]  }
 0x3c0   : > { %14276 = vmatpush3.bf16.msra.mxu1 %v15440_v18  ;;  %v15516_v7 = vld [vmem:[%s15806_s22 + $0x1ec8] sm:$0xff]  }
 0x3c1   : > { %14277 = vmatprep.subr.bf16.mxu1 %v15442_v21  ;;  %v3026_v16 = vrot.slane %v3004_v11, %v15863_v42  ;;  %v3005_v18 = vcombine.high %v16997_v14, %v16997_v14  ;;  %v15518_v9 = vld [vmem:[%s15806_s22 + $0x1e88] sm:$0xff]   ;;  %v15520_v11 = vld [vmem:[%s15806_s22 + $0x1ed0] sm:$0xff]  }
 0x3c2   : > { %14256 = vmatpush3.bf16.msra.mxu0 %v15443_v22  ;;  %v15483_v22 = vld [vmem:[%s15806_s22 + $0x1dc8] sm:$0xff]  }
 0x3c3   : > { %14285 = vmatprep.subr.bf16.mxu0 %v15446_v25  ;;  %v3036_v21 = vcombine.high %v3026_v16, %v3026_v16  ;;  %v15485_v25 = vld [vmem:[%s15806_s22 + $0x1d88] sm:$0xff]  }
 0x3c4   : > { %14278 = vmatpush3.bf16.msra.mxu1 %v15444_v23  ;;  %v3033_v23 = vrot.slane %v3005_v18, %v15863_v42  ;;  %v15527_v18 = vld [vmem:[%s15806_s22 + $0x1e60] sm:$0xff]  }
 0x3c5   : > { %11552 = vmatmul.mubr.bf16.vlgmr.msra.gmra.mrb[108].mxu0 %v2970_v24  ;;  %14307 = vmatprep.subr.bf16.mxu1 %v15447_v26  ;;  %v15484_v24 = vld [vmem:[%s15806_s22 + $0x1d08] sm:$0xff]  }
 0x3c6   : > { %14286 = vmatpush3.bf16.msra.mxu0 %v15448_v27  ;;  %11631 = vmatprep.mubr.bf16.mxu0 %v3026_v16  ;;  %v3037_v26 = vcombine.high %v3033_v23, %v3033_v23  ;;  %v15486_v27 = vld [vmem:[%s15806_s22 + $0x1d50] sm:$0xff]   ;;  %v15525_v16 = vld [vmem:[%s15806_s22 + $0x1e18] sm:$0xff]  }
 0x3c7   : > { %11592 = vmatmul.mubr.bf16.vlgmr.msra.gmra.mrb[108].mxu1 %v2986_v29  ;;  %14287 = vmatprep.subr.bf16.mxu0 %v15450_v30  ;;  %v15488_v29 = vld [vmem:[%s15806_s22 + $0x1d10] sm:$0xff]  }
 0x3c8   : > { %14308 = vmatpush3.bf16.msra.mxu1 %v15449_v28  ;;  %11671 = vmatprep.mubr.bf16.mxu1 %v3036_v21  ;;  %v15487_v28 = vld [vmem:[%s15806_s22 + $0x1dd0] sm:$0xff]   ;;  %v15530_v21 = vld [vmem:[%s15806_s22 + $0x1ea0] sm:$0xff]  }
 0x3c9   : > { %14309 = vmatprep.subr.bf16.mxu1 %v15451_v31  ;;  %v15489_v30 = vld [vmem:[%s15806_s22 + $0x1d90] sm:$0xff]   ;;  %v15490_v31 = vld [vmem:[%s15806_s22 + $0x1d58] sm:$0xff]  }
 0x3ca   : > { %14288 = vmatpush3.bf16.msra.mxu0 %v15452_v32  ;;  %v15491_v32 = vld [vmem:[%s15806_s22 + $0x1dd8] sm:$0xff]  }
 0x3cb   : > { %14289 = vmatprep.subr.bf16.mxu0 %v15454_v34  ;;  %v15493_v34 = vld [vmem:[%s15806_s22 + $0x1d98] sm:$0xff]  }
 0x3cc   : > { %14310 = vmatpush3.bf16.msra.mxu1 %v15453_v33  ;;  %v15492_v33 = vld [vmem:[%s15806_s22 + $0x1d18] sm:$0xff]  }
 0x3cd   : > { %14311 = vmatprep.subr.bf16.mxu1 %v15455_v35  ;;  %v15494_v35 = vld [vmem:[%s15806_s22 + $0x1d60] sm:$0xff]  }
 0x3ce   : > { %14290 = vmatpush3.bf16.msra.mxu0 %v15456_v36  ;;  %v15495_v36 = vld [vmem:[%s15806_s22 + $0x1de0] sm:$0xff]  }
 0x3cf   : > { %14291 = vmatprep.subr.bf16.mxu0 %v15458_v38  ;;  %v15497_v38 = vld [vmem:[%s15806_s22 + $0x1da0] sm:$0xff]  }
 0x3d0   : > { %14312 = vmatpush3.bf16.msra.mxu1 %v15457_v37  ;;  %v15496_v37 = vld [vmem:[%s15806_s22 + $0x1d20] sm:$0xff]  }
 0x3d1   : > { %14313 = vmatprep.subr.bf16.mxu1 %v15459_v39  ;;  %v15498_v39 = vld [vmem:[%s15806_s22 + $0x1d68] sm:$0xff]  }
 0x3d2   : > { %14292 = vmatpush3.bf16.msra.mxu0 %v15460_v40  ;;  %v15499_v40 = vld [vmem:[%s15806_s22 + $0x1de8] sm:$0xff]  }
 0x3d3   : > { %14293 = vmatprep.subr.bf16.mxu0 %v15462_v43  ;;  %v15500_v43 = vld [vmem:[%s15806_s22 + $0x1d28] sm:$0xff]  }
 0x3d4   : > { %14314 = vmatpush3.bf16.msra.mxu1 %v15461_v41 }
 0x3d5   : > { %14315 = vmatprep.subr.bf16.mxu1 %v15463_v44 }
 0x3d6   : > { %14294 = vmatpush3.bf16.msra.mxu0 %v15464_v45  ;;  %v15501_v45 = vld [vmem:[%s15806_s22 + $0x1da8] sm:$0xff]  }
 0x3d7   : > { %14295 = vmatprep.subr.bf16.mxu0 %v15466_v47 }
 0x3d8   : > { %v13993_v49 = vpop.f32.mrb[84].mxu0  ;;  %14316 = vmatpush3.bf16.msra.mxu1 %v15465_v46 }
 0x3d9   : > { %v13994_v51 = vpop.f32.mrb[85].mxu0  ;;  %14317 = vmatprep.subr.bf16.mxu1 %v15467_v48 }
 0x3da   : > { %v14015_v53 = vpop.f32.mrb[84].mxu1  ;;  %v13995_v54 = vadd.f32 %v13994_v51, %v13993_v49  ;;  %v13996_v56 = vpop.f32.mrb[86].mxu0  ;;  %14296 = vmatpush3.bf16.msra.mxu0 %v15468_v50  ;;  %v15502_v49 = vld [vmem:[%s15806_s22 + $0x1d70] sm:$0xff]  }
 0x3db   : > { %v14016_v59 = vpop.f32.mrb[85].mxu1  ;;  %v13997_v60 = vpop.f32.mrb[87].mxu0  ;;  %14297 = vmatprep.subr.bf16.mxu0 %v15470_v57  ;;  %v15503_v50 = vld [vmem:[%s15806_s22 + $0x1df0] sm:$0xff]  }
 0x3dc   : > { %v11074_v55 = vadd.f32 %v13995_v54, %v16948_v19  ;;  %v14017_v61 = vadd.f32 %v14016_v59, %v14015_v53  ;;  %v14018_v62 = vpop.f32.mrb[86].mxu1  ;;  %14318 = vmatpush3.bf16.msra.mxu1 %v15469_v52  ;;  %v3034_v19 = vcombine.high %v3012_v12, %v3012_v12  ;;  %v15504_v57 = vld [vmem:[%s15806_s22 + $0x1d30] sm:$0xff]  }
 0x3dd   : > { %v14019_v0 = vpop.f32.mrb[87].mxu1  ;;  %14319 = vmatprep.subr.bf16.mxu1 %v15471_v58  ;;  %v15505_v59 = vld [vmem:[%s15806_s22 + $0x1db0] sm:$0xff]   ;;  %v15508_v62 = vld [vmem:[%s15806_s22 + $0x1d38] sm:$0xff]  }
 0x3de   : > { %v16985_v2 = vadd.f32 %v14017_v61, %v11074_v55  ;;  %14298 = vmatpush3.bf16.msra.mxu0 %v15472_v63  ;;  %v15506_v55 = vld [vmem:[%s15806_s22 + $0x1d78] sm:$0xff]   ;;  %v3019_v0 = vrot.slane %v16997_v14, %v15863_v42 }
 0x3df   : > { %14299 = vmatprep.subr.bf16.mxu0 %v15474_v3  ;;  %v15507_v61 = vld [vmem:[%s15806_s22 + $0x1df8] sm:$0xff]   ;;  %v15513_v3 = vld [vmem:[%s15806_s22 + $0x1e00] sm:$0xff]  }
 0x3e0   : > { %14320 = vmatpush3.bf16.msra.mxu1 %v15473_v1  ;;  %v15509_v63 = vld [vmem:[%s15806_s22 + $0x1db8] sm:$0xff]   ;;  %v15511_v1 = vld [vmem:[%s15806_s22 + $0x1e40] sm:$0xff]  }
 0x3e1   : > { %14321 = vmatprep.subr.bf16.mxu1 %v15475_v4  ;;  %v15514_v4 = vld [vmem:[%s15806_s22 + $0x1e80] sm:$0xff]   ;;  %v15523_v14 = vld [vmem:[%s15806_s22 + $0x1e58] sm:$0xff]  }
 0x3e2   : > { %14300 = vmatpush3.bf16.msra.mxu0 %v15476_v5  ;;  %v3035_v5 = vcombine.high %v3019_v0, %v3019_v0 }
 0x3e3   : > { %14329 = vmatprep.subr.bf16.mxu0 %v15478_v8  ;;  %v15517_v8 = vld [vmem:[%s15806_s22 + $0x1e08] sm:$0xff]  }
 0x3e4   : > { %14322 = vmatpush3.bf16.msra.mxu1 %v15477_v10  ;;  %v15519_v10 = vld [vmem:[%s15806_s22 + $0x1e50] sm:$0xff]  }
 0x3e5   : > { %14351 = vmatprep.subr.bf16.mxu1 %v15479_v13  ;;  %11632 = vmatmul.mubr.bf16.vlgmr.msra.gmra.mrb[112].mxu0 %v3012_v12  ;;  %v15521_v12 = vld [vmem:[%s15806_s22 + $0x1e10] sm:$0xff]  }
 0x3e6   : > { %14330 = vmatpush3.bf16.msra.mxu0 %v15480_v15  ;;  %11711 = vmatprep.mubr.bf16.mxu0 %v3033_v23  ;;  %v15522_v13 = vld [vmem:[%s15806_s22 + $0x1e90] sm:$0xff]   ;;  %v15524_v15 = vld [vmem:[%s15806_s22 + $0x1ed8] sm:$0xff]   ;;  %v15532_v23 = vld [vmem:[%s15806_s22 + $0x1ee8] sm:$0xff]  }
 0x3e7   : > { %11672 = vmatmul.mubr.bf16.vlgmr.msra.gmra.mrb[112].mxu1 %v3034_v19  ;;  %14331 = vmatprep.subr.bf16.mxu0 %v15482_v20  ;;  %v15528_v19 = vld [vmem:[%s15806_s22 + $0x1ee0] sm:$0xff]  }
 0x3e8   : > { %14352 = vmatpush3.bf16.msra.mxu1 %v15481_v17  ;;  %11751 = vmatprep.mubr.bf16.mxu1 %v3037_v26  ;;  %v15526_v17 = vld [vmem:[%s15806_s22 + $0x1e98] sm:$0xff]   ;;  %v15529_v20 = vld [vmem:[%s15806_s22 + $0x1e20] sm:$0xff]  }
 0x3e9   : > { %14353 = vmatprep.subr.bf16.mxu1 %v15483_v22  ;;  %v15531_v22 = vld [vmem:[%s15806_s22 + $0x1e68] sm:$0xff]  }
 0x3ea   : > { %14332 = vmatpush3.bf16.msra.mxu0 %v15484_v24 }
 0x3eb   : > { %14333 = vmatprep.subr.bf16.mxu0 %v15486_v27  ;;  %v15534_v27 = vld [vmem:[%s15806_s22 + $0x1ea8] sm:$0xff]  }
 0x3ec   : > { %14354 = vmatpush3.bf16.msra.mxu1 %v15485_v25  ;;  %v15533_v25 = vld [vmem:[%s15806_s22 + $0x1e28] sm:$0xff]  }
 0x3ed   : > { %14355 = vmatprep.subr.bf16.mxu1 %v15487_v28 }
 0x3ee   : > { %14334 = vmatpush3.bf16.msra.mxu0 %v15488_v29 }
 0x3ef   : > { %14335 = vmatprep.subr.bf16.mxu0 %v15490_v31  ;;  %v15535_v31 = vld [vmem:[%s15806_s22 + $0x1e70] sm:$0xff]  }
 0x3f0   : > { %14356 = vmatpush3.bf16.msra.mxu1 %v15489_v30 }
 0x3f1   : > { %14357 = vmatprep.subr.bf16.mxu1 %v15491_v32  ;;  %v15536_v32 = vld [vmem:[%s15806_s22 + $0x1ef0] sm:$0xff]  }
 0x3f2   : > { %14336 = vmatpush3.bf16.msra.mxu0 %v15492_v33 }
 0x3f3   : > { %14337 = vmatprep.subr.bf16.mxu0 %v15494_v35 }
 0x3f4   : > { %14358 = vmatpush3.bf16.msra.mxu1 %v15493_v34 }
 0x3f5   : > { %14359 = vmatprep.subr.bf16.mxu1 %v15495_v36 }
 0x3f6   : > { %14338 = vmatpush3.bf16.msra.mxu0 %v15496_v37 }
 0x3f7   : > { %14339 = vmatprep.subr.bf16.mxu0 %v15498_v39 }
 0x3f8   : > { %v14037_v41 = vpop.f32.mrb[88].mxu0  ;;  %14360 = vmatpush3.bf16.msra.mxu1 %v15497_v38  ;;  %v15537_v38 = vld [vmem:[%s15806_s22 + $0x1e30] sm:$0xff]  }
 0x3f9   : > { %v14038_v44 = vpop.f32.mrb[89].mxu0  ;;  %14361 = vmatprep.subr.bf16.mxu1 %v15499_v40  ;;  %v15538_v40 = vld [vmem:[%s15806_s22 + $0x1eb0] sm:$0xff]  }
 0x3fa   : > { %v14059_v46 = vpop.f32.mrb[88].mxu1  ;;  %v14039_v47 = vadd.f32 %v14038_v44, %v14037_v41  ;;  %v14040_v48 = vpop.f32.mrb[90].mxu0  ;;  %14340 = vmatpush3.bf16.msra.mxu0 %v15500_v43  ;;  %v15539_v43 = vld [vmem:[%s15806_s22 + $0x1e78] sm:$0xff]  }
 0x3fb   : > { %v14060_v51 = vpop.f32.mrb[89].mxu1  ;;  %v14041_v52 = vpop.f32.mrb[91].mxu0  ;;  %14341 = vmatprep.subr.bf16.mxu0 %v15502_v49  ;;  %v15540_v44 = vld [vmem:[%s15806_s22 + $0x1ef8] sm:$0xff]   ;;  %v15543_v48 = vld [vmem:[%s15806_s22 + $0x1f40] sm:$0xff]  }
 0x3fc   : > { %v11154_v53 = vadd.f32 %v14039_v47, %v16985_v2  ;;  %v14061_v54 = vadd.f32 %v14060_v51, %v14059_v46  ;;  %v14062_v56 = vpop.f32.mrb[90].mxu1  ;;  %14362 = vmatpush3.bf16.msra.mxu1 %v15501_v45  ;;  %v15512_v2 = vld [vmem:[%s15806_s22 + $0x1ec0] sm:$0xff]   ;;  %v15541_v45 = vld [vmem:[%s15806_s22 + $0x1e38] sm:$0xff]  }
 0x3fd   : > { %v14063_v58 = vpop.f32.mrb[91].mxu1  ;;  %14363 = vmatprep.subr.bf16.mxu1 %v15503_v50  ;;  %v238_v46 = vld [vmem:[%s15819_s26 + $0x78] sm:$0xff] }
 0x3fe   : > { %v17030_v60 = vadd.f32 %v14061_v54, %v11154_v53  ;;  %14342 = vmatpush3.bf16.msra.mxu0 %v15504_v57  ;;  %v3045_v47 = vrot.slane %v238_v46, %v15863_v42  ;;  %v3038_v49 = vcombine.high %v238_v46, %v238_v46  ;;  %v15542_v50 = vld [vmem:[%s15806_s22 + $0x1eb8] sm:$0xff]   ;;  %v15544_v53 = vld [vmem:[%s15806_s22 + $0x1fc0] sm:$0xff]  }
 0x3ff   : > { %14343 = vmatprep.subr.bf16.mxu0 %v15506_v55  ;;  %v15545_v57 = vld [vmem:[%s15806_s22 + $0x1f00] sm:$0xff]  }
 0x400   : > { %14364 = vmatpush3.bf16.msra.mxu1 %v15505_v59  ;;  %v3053_v51 = vcombine.high %v3045_v47, %v3045_v47  ;;  %v3061_v52 = vrot.slane %v3045_v47, %v15863_v42  ;;  %v17079_v54 = vrot.slane %v3038_v49, %v15863_v42 }
 0x401   : > { %14365 = vmatprep.subr.bf16.mxu1 %v15507_v61  ;;  %v15546_v61 = vld [vmem:[%s15806_s22 + $0x1f80] sm:$0xff]  }
 0x402   : > { %14344 = vmatpush3.bf16.msra.mxu0 %v15508_v62  ;;  %v3075_v56 = vrot.slane %v3053_v51, %v15863_v42  ;;  %v3054_v58 = vcombine.high %v17079_v54, %v17079_v54  ;;  %v3083_v59 = vcombine.high %v3061_v52, %v3061_v52 }
 0x403   : > { %14373 = vmatprep.subr.bf16.mxu0 %v15511_v1 }
 0x404   : > { %14366 = vmatpush3.bf16.msra.mxu1 %v15509_v63  ;;  %v3085_v55 = vcombine.high %v3075_v56, %v3075_v56  ;;  %v3082_v62 = vrot.slane %v3054_v58, %v15863_v42  ;;  %v15548_v63 = vld [vmem:[%s15806_s22 + $0x1fc8] sm:$0xff]  }
 0x405   : > { %11712 = vmatmul.mubr.bf16.vlgmr.msra.gmra.mrb[116].mxu0 %v3019_v0  ;;  %14395 = vmatprep.subr.bf16.mxu1 %v15512_v2  ;;  %v15549_v0 = vld [vmem:[%s15806_s22 + $0x1f08] sm:$0xff]   ;;  %v15551_v2 = vld [vmem:[%s15806_s22 + $0x1f50] sm:$0xff]  }
 0x406   : > { %14374 = vmatpush3.bf16.msra.mxu0 %v15513_v3  ;;  %11791 = vmatprep.mubr.bf16.mxu0 %v3075_v56  ;;  %v3086_v1 = vcombine.high %v3082_v62, %v3082_v62  ;;  %v15550_v3 = vld [vmem:[%s15806_s22 + $0x1f88] sm:$0xff]  }
 0x407   : > { %11752 = vmatmul.mubr.bf16.vlgmr.msra.gmra.mrb[116].mxu1 %v3035_v5  ;;  %14375 = vmatprep.subr.bf16.mxu0 %v15515_v6  ;;  %v15553_v5 = vld [vmem:[%s15806_s22 + $0x1f10] sm:$0xff]   ;;  %v15555_v6 = vld [vmem:[%s15806_s22 + $0x1f58] sm:$0xff]  }
 0x408   : > { %14396 = vmatpush3.bf16.msra.mxu1 %v15514_v4  ;;  %11831 = vmatprep.mubr.bf16.mxu1 %v3085_v55  ;;  %v15552_v4 = vld [vmem:[%s15806_s22 + $0x1fd0] sm:$0xff]  }
 0x409   : > { %14397 = vmatprep.subr.bf16.mxu1 %v15516_v7  ;;  %v15554_v7 = vld [vmem:[%s15806_s22 + $0x1f90] sm:$0xff]  }
 0x40a   : > { %14376 = vmatpush3.bf16.msra.mxu0 %v15517_v8  ;;  %v15556_v8 = vld [vmem:[%s15806_s22 + $0x1fd8] sm:$0xff]  }
 0x40b   : > { %14377 = vmatprep.subr.bf16.mxu0 %v15519_v10  ;;  %v15559_v10 = vld [vmem:[%s15806_s22 + $0x1f60] sm:$0xff]  }
 0x40c   : > { %14398 = vmatpush3.bf16.msra.mxu1 %v15518_v9  ;;  %v15557_v9 = vld [vmem:[%s15806_s22 + $0x1f18] sm:$0xff]  }
 0x40d   : > { %14399 = vmatprep.subr.bf16.mxu1 %v15520_v11  ;;  %v15558_v11 = vld [vmem:[%s15806_s22 + $0x1f98] sm:$0xff]  }
 0x40e   : > { %14378 = vmatpush3.bf16.msra.mxu0 %v15521_v12  ;;  %v15560_v12 = vld [vmem:[%s15806_s22 + $0x1fe0] sm:$0xff]  }
 0x40f   : > { %14379 = vmatprep.subr.bf16.mxu0 %v15523_v14  ;;  %v15563_v14 = vld [vmem:[%s15806_s22 + $0x1f68] sm:$0xff]  }
 0x410   : > { %14400 = vmatpush3.bf16.msra.mxu1 %v15522_v13  ;;  %v15561_v13 = vld [vmem:[%s15806_s22 + $0x1f20] sm:$0xff]  }
 0x411   : > { %14401 = vmatprep.subr.bf16.mxu1 %v15524_v15  ;;  %v15562_v15 = vld [vmem:[%s15806_s22 + $0x1fa0] sm:$0xff]  }
 0x412   : > { %14380 = vmatpush3.bf16.msra.mxu0 %v15525_v16 }
 0x413   : > { %14381 = vmatprep.subr.bf16.mxu0 %v15527_v18 }
 0x414   : > { %14402 = vmatpush3.bf16.msra.mxu1 %v15526_v17  ;;  %v15564_v17 = vld [vmem:[%s15806_s22 + $0x1fe8] sm:$0xff]  }
 0x415   : > { %14403 = vmatprep.subr.bf16.mxu1 %v15528_v19  ;;  %v15565_v19 = vld [vmem:[%s15806_s22 + $0x1f28] sm:$0xff]  }
 0x416   : > { %14382 = vmatpush3.bf16.msra.mxu0 %v15529_v20 }
 0x417   : > { %14383 = vmatprep.subr.bf16.mxu0 %v15531_v22 }
 0x418   : > { %v14081_v24 = vpop.f32.mrb[92].mxu0  ;;  %14404 = vmatpush3.bf16.msra.mxu1 %v15530_v21 }
 0x419   : > { %v14082_v26 = vpop.f32.mrb[93].mxu0  ;;  %14405 = vmatprep.subr.bf16.mxu1 %v15532_v23  ;;  %v15566_v23 = vld [vmem:[%s15806_s22 + $0x1fa8] sm:$0xff]  }
 0x41a   : > { %v14103_v28 = vpop.f32.mrb[92].mxu1  ;;  %v14083_v29 = vadd.f32 %v14082_v26, %v14081_v24  ;;  %v14084_v30 = vpop.f32.mrb[94].mxu0  ;;  %14384 = vmatpush3.bf16.msra.mxu0 %v15533_v25  ;;  %v15567_v24 = vld [vmem:[%s15806_s22 + $0x1f70] sm:$0xff]  }
 0x41b   : > { %v14104_v33 = vpop.f32.mrb[93].mxu1  ;;  %v14085_v34 = vpop.f32.mrb[95].mxu0  ;;  %14385 = vmatprep.subr.bf16.mxu0 %v15535_v31  ;;  %v15568_v30 = vld [vmem:[%s15806_s22 + $0x1ff0] sm:$0xff]  }
 0x41c   : > { %v11234_v35 = vadd.f32 %v14083_v29, %v17030_v60  ;;  %v14105_v36 = vadd.f32 %v14104_v33, %v14103_v28  ;;  %v14106_v37 = vpop.f32.mrb[94].mxu1  ;;  %14406 = vmatpush3.bf16.msra.mxu1 %v15534_v27  ;;  %v15547_v60 = vld [vmem:[%s15806_s22 + $0x1f48] sm:$0xff]   ;;  %v15571_v34 = vld [vmem:[%s15806_s22 + $0x1f78] sm:$0xff]  }
 0x41d   : > { %v14107_v39 = vpop.f32.mrb[95].mxu1  ;;  %14407 = vmatprep.subr.bf16.mxu1 %v15536_v32  ;;  %v15569_v32 = vld [vmem:[%s15806_s22 + $0x1f30] sm:$0xff]   ;;  %v15573_v37 = vld [vmem:[%s15806_s22 + $0x1f38] sm:$0xff]  }
 0x41e   : > { %v17067_v41 = vadd.f32 %v14105_v36, %v11234_v35  ;;  %14386 = vmatpush3.bf16.msra.mxu0 %v15537_v38  ;;  %v15570_v35 = vld [vmem:[%s15806_s22 + $0x1fb0] sm:$0xff]   ;;  %v15572_v36 = vld [vmem:[%s15806_s22 + $0x1ff8] sm:$0xff]   ;;  %v3068_v38 = vrot.slane %v17079_v54, %v15863_v42 }
 0x41f   : > { %14387 = vmatprep.subr.bf16.mxu0 %v15539_v43  ;;  %v15574_v39 = vld [vmem:[%s15806_s22 + $0x1fb8] sm:$0xff]  }
 0x420   : > { %14408 = vmatpush3.bf16.msra.mxu1 %v15538_v40  ;;  %v3084_v40 = vcombine.high %v3068_v38, %v3068_v38 }
 0x421   : > { %14409 = vmatprep.subr.bf16.mxu1 %v15540_v44 }
 0x422   : > { %14388 = vmatpush3.bf16.msra.mxu0 %v15541_v45 }
 0x423   : > { %14417 = vmatprep.subr.bf16.mxu0 %v15543_v48 }
 0x424   : > { %14410 = vmatpush3.bf16.msra.mxu1 %v15542_v50 }
 0x425   : > { %14439 = vmatprep.subr.bf16.mxu1 %v15544_v53  ;;  %11792 = vmatmul.mubr.bf16.vlgmr.msra.gmra.mrb[120].mxu0 %v3061_v52 }
 0x426   : > { %14418 = vmatpush3.bf16.msra.mxu0 %v15545_v57  ;;  %11871 = vmatprep.mubr.bf16.mxu0 %v3082_v62 }
 0x427   : > { %11832 = vmatmul.mubr.bf16.vlgmr.msra.gmra.mrb[120].mxu1 %v3083_v59  ;;  %14419 = vmatprep.subr.bf16.mxu0 %v15547_v60 }
 0x428   : > { %14440 = vmatpush3.bf16.msra.mxu1 %v15546_v61  ;;  %11911 = vmatprep.mubr.bf16.mxu1 %v3086_v1 }
 0x429   : > { %14441 = vmatprep.subr.bf16.mxu1 %v15548_v63 }
 0x42a   : > { %14420 = vmatpush3.bf16.msra.mxu0 %v15549_v0 }
 0x42b   : > { %14421 = vmatprep.subr.bf16.mxu0 %v15551_v2 }
 0x42c   : > { %14442 = vmatpush3.bf16.msra.mxu1 %v15550_v3 }
 0x42d   : > { %14443 = vmatprep.subr.bf16.mxu1 %v15552_v4 }
 0x42e   : > { %14422 = vmatpush3.bf16.msra.mxu0 %v15553_v5 }
 0x42f   : > { %14423 = vmatprep.subr.bf16.mxu0 %v15555_v6 }
 0x430   : > { %14444 = vmatpush3.bf16.msra.mxu1 %v15554_v7 }
 0x431   : > { %14445 = vmatprep.subr.bf16.mxu1 %v15556_v8 }
 0x432   : > { %14424 = vmatpush3.bf16.msra.mxu0 %v15557_v9 }
 0x433   : > { %14425 = vmatprep.subr.bf16.mxu0 %v15559_v10 }
 0x434   : > { %14446 = vmatpush3.bf16.msra.mxu1 %v15558_v11 }
 0x435   : > { %14447 = vmatprep.subr.bf16.mxu1 %v15560_v12 }
 0x436   : > { %14426 = vmatpush3.bf16.msra.mxu0 %v15561_v13 }
 0x437   : > { %14427 = vmatprep.subr.bf16.mxu0 %v15563_v14 }
 0x438   : > { %v14125_v16 = vpop.f32.mrb[96].mxu0  ;;  %14448 = vmatpush3.bf16.msra.mxu1 %v15562_v15 }
 0x439   : > { %v14126_v18 = vpop.f32.mrb[97].mxu0  ;;  %14449 = vmatprep.subr.bf16.mxu1 %v15564_v17 }
 0x43a   : > { %v14147_v20 = vpop.f32.mrb[96].mxu1  ;;  %v14127_v21 = vadd.f32 %v14126_v18, %v14125_v16  ;;  %v14128_v22 = vpop.f32.mrb[98].mxu0  ;;  %14428 = vmatpush3.bf16.msra.mxu0 %v15565_v19 }
 0x43b   : > { %v14148_v25 = vpop.f32.mrb[97].mxu1  ;;  %v14129_v26 = vpop.f32.mrb[99].mxu0  ;;  %14429 = vmatprep.subr.bf16.mxu0 %v15567_v24 }
 0x43c   : > { %v11314_v27 = vadd.f32 %v14127_v21, %v17067_v41  ;;  %v14149_v28 = vadd.f32 %v14148_v25, %v14147_v20  ;;  %v14150_v29 = vpop.f32.mrb[98].mxu1  ;;  %14450 = vmatpush3.bf16.msra.mxu1 %v15566_v23 }
 0x43d   : > { %v14151_v31 = vpop.f32.mrb[99].mxu1  ;;  %14451 = vmatprep.subr.bf16.mxu1 %v15568_v30 }
 0x43e   : > { %v11354_v33 = vadd.f32 %v14149_v28, %v11314_v27  ;;  %14430 = vmatpush3.bf16.msra.mxu0 %v15569_v32 }
 0x43f   : > { %14431 = vmatprep.subr.bf16.mxu0 %v15571_v34 }
 0x440   : > { %14452 = vmatpush3.bf16.msra.mxu1 %v15570_v35 }
 0x441   : > { %14453 = vmatprep.subr.bf16.mxu1 %v15572_v36 }
 0x442   : > { %14432 = vmatpush3.bf16.msra.mxu0 %v15573_v37 }
 0x444   : > { %14454 = vmatpush3.bf16.msra.mxu1 %v15574_v39 }
 0x445   : > { %11872 = vmatmul.mubr.bf16.vlgmr.msra.gmra.mrb[124].mxu0 %v3068_v38 }
 0x447   : > { %11912 = vmatmul.mubr.bf16.vlgmr.msra.gmra.mrb[124].mxu1 %v3084_v40 }
 0x458   : > { %v14169_v41 = vpop.f32.mrb[100].mxu0 }
 0x459   : > { %v14170_v43 = vpop.f32.mrb[101].mxu0 }
 0x45a   : > { %v14191_v44 = vpop.f32.mrb[100].mxu1  ;;  %v14171_v45 = vadd.f32 %v14170_v43, %v14169_v41  ;;  %v14172_v46 = vpop.f32.mrb[102].mxu0 }
 0x45b   : > { %v14192_v47 = vpop.f32.mrb[101].mxu1  ;;  %v14173_v48 = vpop.f32.mrb[103].mxu0 }
 0x45c   : > { %v11394_v49 = vadd.f32 %v14171_v45, %v11354_v33  ;;  %v14193_v50 = vadd.f32 %v14192_v47, %v14191_v44  ;;  %v14194_v51 = vpop.f32.mrb[102].mxu1 }
 0x45d   : > { %v14195_v52 = vpop.f32.mrb[103].mxu1 }
 0x45e   : > { %v11434_v42 = vadd.f32 %v14193_v50, %v11394_v49 }
 0x478   : > { %v14213_v53 = vpop.f32.mrb[104].mxu0 }
 0x479   : > { %v14214_v54 = vpop.f32.mrb[105].mxu0 }
 0x47a   : > { %v14235_v56 = vpop.f32.mrb[104].mxu1  ;;  %v14215_v57 = vadd.f32 %v14214_v54, %v14213_v53  ;;  %v14216_v58 = vpop.f32.mrb[106].mxu0 }
 0x47b   : > { %v14236_v59 = vpop.f32.mrb[105].mxu1  ;;  %v14217_v60 = vpop.f32.mrb[107].mxu0 }
 0x47c   : > { %v11474_v55 = vadd.f32 %v14215_v57, %v11434_v42  ;;  %v14237_v61 = vadd.f32 %v14236_v59, %v14235_v56  ;;  %v14238_v62 = vpop.f32.mrb[106].mxu1  ;;  %v222_v60 = vld [vmem:[%s15824_s28] sm:$0x3] }
 0x47d   : > { %v14239_v63 = vpop.f32.mrb[107].mxu1 }
 0x47e   : > { %v11514_v0 = vadd.f32 %v14237_v61, %v11474_v55 }
 0x498   : > { %v14257_v1 = vpop.f32.mrb[108].mxu0 }
 0x499   : > { %v14258_v2 = vpop.f32.mrb[109].mxu0 }
 0x49a   : > { %v14279_v3 = vpop.f32.mrb[108].mxu1  ;;  %v14259_v4 = vadd.f32 %v14258_v2, %v14257_v1  ;;  %v14260_v5 = vpop.f32.mrb[110].mxu0 }
 0x49b   : > { %v14280_v6 = vpop.f32.mrb[109].mxu1  ;;  %v14261_v7 = vpop.f32.mrb[111].mxu0 }
 0x49c   : > { %v11554_v8 = vadd.f32 %v14259_v4, %v11514_v0  ;;  %v14281_v9 = vadd.f32 %v14280_v6, %v14279_v3  ;;  %v14282_v10 = vpop.f32.mrb[110].mxu1 }
 0x49d   : > { %v14283_v11 = vpop.f32.mrb[111].mxu1 }
 0x49e   : > { %v11594_v12 = vadd.f32 %v14281_v9, %v11554_v8 }
 0x4b8   : > { %v14301_v13 = vpop.f32.mrb[112].mxu0 }
 0x4b9   : > { %v14302_v14 = vpop.f32.mrb[113].mxu0 }
 0x4ba   : > { %v14323_v15 = vpop.f32.mrb[112].mxu1  ;;  %v14303_v16 = vadd.f32 %v14302_v14, %v14301_v13  ;;  %v14304_v17 = vpop.f32.mrb[114].mxu0 }
 0x4bb   : > { %v14324_v18 = vpop.f32.mrb[113].mxu1  ;;  %v14305_v19 = vpop.f32.mrb[115].mxu0 }
 0x4bc   : > { %v11634_v20 = vadd.f32 %v14303_v16, %v11594_v12  ;;  %v14325_v21 = vadd.f32 %v14324_v18, %v14323_v15  ;;  %v14326_v22 = vpop.f32.mrb[114].mxu1 }
 0x4bd   : > { %v14327_v23 = vpop.f32.mrb[115].mxu1 }
 0x4be   : > { %v11674_v24 = vadd.f32 %v14325_v21, %v11634_v20 }
 0x4d8   : > { %v14345_v25 = vpop.f32.mrb[116].mxu0 }
 0x4d9   : > { %v14346_v26 = vpop.f32.mrb[117].mxu0 }
 0x4da   : > { %v14367_v27 = vpop.f32.mrb[116].mxu1  ;;  %v14347_v28 = vadd.f32 %v14346_v26, %v14345_v25  ;;  %v14348_v29 = vpop.f32.mrb[118].mxu0 }
 0x4db   : > { %v14368_v30 = vpop.f32.mrb[117].mxu1  ;;  %v14349_v31 = vpop.f32.mrb[119].mxu0 }
 0x4dc   : > { %v11714_v32 = vadd.f32 %v14347_v28, %v11674_v24  ;;  %v14369_v33 = vadd.f32 %v14368_v30, %v14367_v27  ;;  %v14370_v34 = vpop.f32.mrb[118].mxu1 }
 0x4dd   : > { %v14371_v35 = vpop.f32.mrb[119].mxu1 }
 0x4de   : > { %v11754_v36 = vadd.f32 %v14369_v33, %v11714_v32 }
 0x4f8   : > { %v14389_v37 = vpop.f32.mrb[120].mxu0 }
 0x4f9   : > { %v14390_v38 = vpop.f32.mrb[121].mxu0 }
 0x4fa   : > { %v14411_v39 = vpop.f32.mrb[120].mxu1  ;;  %v14391_v40 = vadd.f32 %v14390_v38, %v14389_v37  ;;  %v14392_v41 = vpop.f32.mrb[122].mxu0 }
 0x4fb   : > { %v14412_v43 = vpop.f32.mrb[121].mxu1  ;;  %v14393_v44 = vpop.f32.mrb[123].mxu0 }
 0x4fc   : > { %v11794_v45 = vadd.f32 %v14391_v40, %v11754_v36  ;;  %v14413_v46 = vadd.f32 %v14412_v43, %v14411_v39  ;;  %v14414_v47 = vpop.f32.mrb[122].mxu1 }
 0x4fd   : > { %v14415_v48 = vpop.f32.mrb[123].mxu1 }
 0x4fe   : > { %v11834_v49 = vadd.f32 %v14413_v46, %v11794_v45 }
 0x518   : > { %v14433_v50 = vpop.f32.mrb[124].mxu0 }
 0x519   : > { %v14434_v51 = vpop.f32.mrb[125].mxu0 }
 0x51a   : > { %v14455_v52 = vpop.f32.mrb[124].mxu1  ;;  %v14435_v42 = vadd.f32 %v14434_v51, %v14433_v50  ;;  %v14436_v53 = vpop.f32.mrb[126].mxu0 }
 0x51b   : > { %v14456_v54 = vpop.f32.mrb[125].mxu1  ;;  %v14437_v56 = vpop.f32.mrb[127].mxu0 }
 0x51c   : > { %v11874_v57 = vadd.f32 %v14435_v42, %v11834_v49  ;;  %v14457_v58 = vadd.f32 %v14456_v54, %v14455_v52  ;;  %v14458_v59 = vpop.f32.mrb[126].mxu1 }
 0x51d   : > { %v14459_v55 = vpop.f32.mrb[127].mxu1 }
 0x51e   : > { %v11914_v61 = vadd.f32 %v14457_v58, %v11874_v57 }
 0x520   : > { %v11919_v62 = vadd.f32 %v11914_v61, %v222_v60 }
 0x522   : > { %11920 = vst [vmem:[%s15824_s28] sm:$0x3] %v11919_v62 }
 0x523 PF: > { %s15_s16 = sadd.s32 1, %s15672_s16   ;;  %s17150_s9 = smov %s15648_s10 }
 0x524   : > { %p12_p6 = scmp.ge.s32.totalorder %s15_s16, 18   ;;  %s17151_s10 = smov %s15652_s11 }
 0x525   : > { %s17152_s11 = smov %s15760_s3  ;;  %s17153_s12 = smov %s15664_s14 }
 0x526   : > { %s17154_s13 = smov %s15668_s15  ;;  %s17155_s14 = smov %s17158_s18 }
 0x527   : > { %s17156_s15 = smov %s17162_s19  ;;  %14 = sbr.rel (!%p12_p6) target bundleno = 5 (0x5), region = 75 }
 0x52e   :  { %11940 = vsyncpa [#allocation3], 1 }
 0x52f   :  { %11942 = vsyncpa [#allocation3 + $0x1], 1 }

</bundles_post_ra>
